<compile_context>
chip_gen: v5e
topology: v5e:2x2
jax: 0.10.0
libtpu: 0.0.40
codegen_flags: <defaults>
</compile_context>

<pallas_src>
import math

import jax
import jax.numpy as jnp
from jax.experimental import pallas as pl
from jax.experimental.pallas import tpu as pltpu

# ---------------- static network geometry ----------------
# Input length 16 makes the final pooled length exactly 5 (fc1 expects 128*5).
L_IN, C_IN = 16, 32

K1, P1, S1, C1 = 8, 8, 1, 64          # conv1
K2, P2, S2, C2 = 16, 16, 2, 128       # conv2
K3, P3, S3, C3 = 16, 16, 2, 128       # conv3
PK, PS = 3, 2                         # MaxPool1d(kernel=3, stride=2)

FC1_OUT = 256
N_CLS = 2
N_PAD = 128                           # lane-dense padded logits width
NEG_BIG = -1e30


def _conv_len(l, k, p, s):
    return (l + 2 * p - k) // s + 1


def _pool_len(l):
    return (l - PK) // PS + 1


L1C = _conv_len(L_IN, K1, P1, S1)     # 25
L1P = _pool_len(L1C)                  # 12
L2C = _conv_len(L1P, K2, P2, S2)      # 15
L2P = _pool_len(L2C)                  # 7
L3C = _conv_len(L2P, K3, P3, S3)      # 12
L3P = _pool_len(L3C)                  # 5   -> 128*5 = fc1 input

A2_LEN = L1P + 2 * P2                 # 44 (zero-padded conv2 input)
A3_LEN = L2P + 2 * P3                 # 39 (zero-padded conv3 input)


# ---------------- fused Pallas kernel (one batch element per grid step) ----------------
def _netlarge_kernel(x_ref, w1_ref, b1_ref, w2_ref, b2_ref, w3_ref, b3_ref,
                     wf1_ref, bf1_ref, wf2_ref, bf2_ref,
                     o_ref,
                     y1_ref, a2_ref, y2_ref, a3_ref, y3_ref):
    f32, bf16 = jnp.float32, jnp.bfloat16

    def pool3x2(y_ref, l_out):
        # MaxPool1d(3, 2): elementwise max of three stride-2 row slices (VPU only).
        t0 = y_ref[pl.ds(0, l_out, stride=PS), :]
        t1 = y_ref[pl.ds(1, l_out, stride=PS), :]
        t2 = y_ref[pl.ds(2, l_out, stride=PS), :]
        return jnp.maximum(jnp.maximum(t0, t1), t2)

    # -------- stage 1: conv1(32->64, k=8, s=1, pad pre-applied) + ReLU + pool --------
    x0 = x_ref[0]                                            # (L_IN + 2*P1, C_IN) bf16
    acc = jnp.zeros((L1C, C1), f32)
    for k in range(K1):                                      # conv as K accumulated matmuls
        acc += jnp.dot(x0[k:k + L1C, :], w1_ref[k], preferred_element_type=f32)
    y1_ref[...] = jnp.maximum(acc + b1_ref[...], 0.0)
    a2_ref[...] = jnp.zeros_like(a2_ref)                     # zero padding for conv2
    a2_ref[pl.ds(P2, L1P), :] = pool3x2(y1_ref, L1P)

    # -------- stage 2: conv2(64->128, k=16, s=2) + ReLU + pool --------
    acc = jnp.zeros((L2C, C2), f32)
    for k in range(K2):
        tap = a2_ref[pl.ds(k, L2C, stride=S2), :].astype(bf16)
        acc += jnp.dot(tap, w2_ref[k], preferred_element_type=f32)
    y2_ref[...] = jnp.maximum(acc + b2_ref[...], 0.0)
    a3_ref[...] = jnp.zeros_like(a3_ref)                     # zero padding for conv3
    a3_ref[pl.ds(P3, L2P), :] = pool3x2(y2_ref, L2P)

    # -------- stage 3: conv3(128->128, k=16, s=2) + ReLU + pool --------
    acc = jnp.zeros((L3C, C3), f32)
    for k in range(K3):
        tap = a3_ref[pl.ds(k, L3C, stride=S3), :].astype(bf16)
        acc += jnp.dot(tap, w3_ref[k], preferred_element_type=f32)
    y3_ref[...] = jnp.maximum(acc + b3_ref[...], 0.0)
    p3 = pool3x2(y3_ref, L3P).astype(bf16)                   # (L3P, 128)

    # -------- head: fc1 + ReLU (+ dropout=identity in eval) + fc2 + log_softmax --------
    # TODO(synk): training-mode dropout RNG not implemented (inference semantics only)
    h = jnp.zeros((1, FC1_OUT), f32)
    for r in range(L3P):                                     # fc1 over (c*L3P + l)-flattened feats
        h += jnp.dot(p3[r:r + 1, :], wf1_ref[r], preferred_element_type=f32)
    h = jnp.maximum(h + bf1_ref[...], 0.0)
    logits = jnp.dot(h.astype(bf16), wf2_ref[...],
                     preferred_element_type=f32) + bf2_ref[...]   # (1, 128); pad lanes ~ -1e30
    m = jnp.max(logits, axis=1, keepdims=True)
    z = logits - m
    lse = jnp.log(jnp.sum(jnp.exp(z), axis=1, keepdims=True))
    o_ref[0] = z - lse                                       # lane-dense 128-wide store


def _broadcast_spec(shape):
    zeros = (0,) * len(shape)
    return pl.BlockSpec(tuple(shape), lambda b, _z=zeros: _z)


@jax.jit
def net_large_forward(x_ncw, params):
    """x_ncw: (B, 32, L) float32 in PyTorch NCW layout. Returns (B, 2) log-probs."""
    bsz = x_ncw.shape[0]
    # channels-last, zero-pad for conv1, bf16 MXU operand
    x = jnp.transpose(x_ncw, (0, 2, 1))
    x = jnp.pad(x, ((0, 0), (P1, P1), (0, 0))).astype(jnp.bfloat16)   # (B, L+2*P1, C_IN)
    l_pad1 = x.shape[1]

    grid_spec = pltpu.PrefetchScalarGridSpec(
        num_scalar_prefetch=0,
        grid=(bsz,),
        in_specs=[
            pl.BlockSpec((1, l_pad1, C_IN), lambda b: (b, 0, 0)),
            _broadcast_spec(params["w1"].shape), _broadcast_spec(params["b1"].shape),
            _broadcast_spec(params["w2"].shape), _broadcast_spec(params["b2"].shape),
            _broadcast_spec(params["w3"].shape), _broadcast_spec(params["b3"].shape),
            _broadcast_spec(params["wf1"].shape), _broadcast_spec(params["bf1"].shape),
            _broadcast_spec(params["wf2"].shape), _broadcast_spec(params["bf2"].shape),
        ],
        out_specs=pl.BlockSpec((1, 1, N_PAD), lambda b: (b, 0, 0)),
        scratch_shapes=[
            pltpu.VMEM((L1C, C1), jnp.float32),      # conv1 output
            pltpu.VMEM((A2_LEN, C1), jnp.float32),   # pooled1 + zero pad
            pltpu.VMEM((L2C, C2), jnp.float32),      # conv2 output
            pltpu.VMEM((A3_LEN, C2), jnp.float32),   # pooled2 + zero pad
            pltpu.VMEM((L3C, C3), jnp.float32),      # conv3 output
        ],
    )
    out_pad = pl.pallas_call(
        _netlarge_kernel,
        out_shape=jax.ShapeDtypeStruct((bsz, 1, N_PAD), jnp.float32),
        grid_spec=grid_spec,
        compiler_params=pltpu.CompilerParams(dimension_semantics=("parallel",)),
    )(x, params["w1"], params["b1"], params["w2"], params["b2"],
      params["w3"], params["b3"], params["wf1"], params["bf1"],
      params["wf2"], params["bf2"])
    return out_pad[:, 0, :N_CLS]


# ---------------- parameter construction (PyTorch layouts -> kernel layouts) ----------------
def init_params(key):
    k1, k2, k3, k4, k5 = jax.random.split(key, 5)

    def uniform(k, shape, fan_in):
        bound = 1.0 / math.sqrt(fan_in)
        return jax.random.uniform(k, shape, jnp.float32, -bound, bound)

    def conv_param(k, c_out, c_in, ksz):
        kw, kb = jax.random.split(k)
        w = uniform(kw, (c_out, c_in, ksz), c_in * ksz)       # PyTorch Conv1d layout
        b = uniform(kb, (c_out,), c_in * ksz)
        # per-tap weights (K, Cin, Cout): conv = sum_k tap_k @ w[k]
        return jnp.transpose(w, (2, 1, 0)).astype(jnp.bfloat16), b.reshape(1, c_out)

    def linear_param(k, d_out, d_in):
        kw, kb = jax.random.split(k)
        return uniform(kw, (d_out, d_in), d_in), uniform(kb, (d_out,), d_in)

    p = {}
    p["w1"], p["b1"] = conv_param(k1, C1, C_IN, K1)
    p["w2"], p["b2"] = conv_param(k2, C2, C1, K2)
    p["w3"], p["b3"] = conv_param(k3, C3, C2, K3)

    wf1, bf1 = linear_param(k4, FC1_OUT, C3 * L3P)            # (256, 640), (256,)
    # PyTorch flattens (B, C, L) with index c*L + l; reorder to (L, C, out) so the
    # kernel accumulates over pooled rows of channels-last features directly.
    p["wf1"] = jnp.transpose(wf1.reshape(FC1_OUT, C3, L3P), (2, 1, 0)).astype(jnp.bfloat16)
    p["bf1"] = bf1.reshape(1, FC1_OUT)

    wf2, bf2 = linear_param(k5, N_CLS, FC1_OUT)               # (2, 256), (2,)
    w2p = jnp.zeros((FC1_OUT, N_PAD), jnp.float32).at[:, :N_CLS].set(wf2.T)
    b2p = jnp.full((1, N_PAD), NEG_BIG, jnp.float32).at[0, :N_CLS].set(bf2)
    p["wf2"] = w2p.astype(jnp.bfloat16)                       # zero-padded to 128 lanes
    p["bf2"] = b2p                                            # -1e30 bias on pad classes
    return p


if __name__ == "__main__":
    key = jax.random.PRNGKey(0)
    k_in, k_par = jax.random.split(key)

    B = 2
    x = jax.random.normal(k_in, (B, C_IN, L_IN), jnp.float32)  # NCW, like PyTorch
    params = init_params(k_par)

    out = net_large_forward(x, params)
    out = jax.block_until_ready(out)

    assert out.shape == (B, N_CLS), out.shape
    assert bool(jnp.all(jnp.isfinite(out)))
    # log_softmax rows must exponentiate-sum to 1
    assert bool(jnp.allclose(jnp.exp(out).sum(axis=1), 1.0, atol=1e-4))
    print("KERNEL_OK")
</pallas_src>

<mosaic_0001>
module attributes {stable_mosaic.version = 11 : i64} {
  func.func @_netlarge_kernel(%arg0: i32, %arg1: memref<1x32x32xbf16, #tpu.memory_space<vmem>>, %arg2: memref<8x32x64xbf16, #tpu.memory_space<vmem>>, %arg3: memref<1x64xf32, #tpu.memory_space<vmem>>, %arg4: memref<16x64x128xbf16, #tpu.memory_space<vmem>>, %arg5: memref<1x128xf32, #tpu.memory_space<vmem>>, %arg6: memref<16x128x128xbf16, #tpu.memory_space<vmem>>, %arg7: memref<1x128xf32, #tpu.memory_space<vmem>>, %arg8: memref<5x128x256xbf16, #tpu.memory_space<vmem>>, %arg9: memref<1x256xf32, #tpu.memory_space<vmem>>, %arg10: memref<256x128xbf16, #tpu.memory_space<vmem>>, %arg11: memref<1x128xf32, #tpu.memory_space<vmem>>, %arg12: memref<1x1x128xf32, #tpu.memory_space<vmem>>, %arg13: memref<25x64xf32, #tpu.memory_space<vmem>>, %arg14: memref<44x64xf32, #tpu.memory_space<vmem>>, %arg15: memref<15x128xf32, #tpu.memory_space<vmem>>, %arg16: memref<39x128xf32, #tpu.memory_space<vmem>>, %arg17: memref<12x128xf32, #tpu.memory_space<vmem>>) attributes {dimension_semantics = [#tpu.dimension_semantics<parallel>], iteration_bounds = array<i64: 2>, scalar_prefetch = 0 : i64, scratch_operands = 5 : i64, tpu.core_type = #tpu.core_type<tc>, window_params = [{transform_indices = @transform_0, window_bounds = array<i64: 1, 32, 32>}, {pipeline_mode = #tpu.pipeline_mode<synchronous>, transform_indices = @transform_1, window_bounds = array<i64: 8, 32, 64>}, {pipeline_mode = #tpu.pipeline_mode<synchronous>, transform_indices = @transform_2, window_bounds = array<i64: 1, 64>}, {pipeline_mode = #tpu.pipeline_mode<synchronous>, transform_indices = @transform_3, window_bounds = array<i64: 16, 64, 128>}, {pipeline_mode = #tpu.pipeline_mode<synchronous>, transform_indices = @transform_4, window_bounds = array<i64: 1, 128>}, {pipeline_mode = #tpu.pipeline_mode<synchronous>, transform_indices = @transform_5, window_bounds = array<i64: 16, 128, 128>}, {pipeline_mode = #tpu.pipeline_mode<synchronous>, transform_indices = @transform_6, window_bounds = array<i64: 1, 128>}, {pipeline_mode = #tpu.pipeline_mode<synchronous>, transform_indices = @transform_7, window_bounds = array<i64: 5, 128, 256>}, {pipeline_mode = #tpu.pipeline_mode<synchronous>, transform_indices = @transform_8, window_bounds = array<i64: 1, 256>}, {pipeline_mode = #tpu.pipeline_mode<synchronous>, transform_indices = @transform_9, window_bounds = array<i64: 256, 128>}, {pipeline_mode = #tpu.pipeline_mode<synchronous>, transform_indices = @transform_10, window_bounds = array<i64: 1, 128>}, {transform_indices = @transform_11, window_bounds = array<i64: 1, 1, 128>}]} {
    %c0 = arith.constant 0 : index
    %c0_0 = arith.constant 0 : index
    %c0_1 = arith.constant 0 : index
    %0 = vector.load %arg1[%c0, %c0_0, %c0_1] : memref<1x32x32xbf16, #tpu.memory_space<vmem>>, vector<1x32x32xbf16>
    %1 = vector.shape_cast %0 : vector<1x32x32xbf16> to vector<32x32xbf16>
    %cst = arith.constant 0.000000e+00 : f32
    %2 = vector.broadcast %cst : f32 to vector<25x64xf32>
    %3 = vector.extract_strided_slice %1 {offsets = [0, 0], sizes = [25, 32], strides = [1, 1]} : vector<32x32xbf16> to vector<25x32xbf16>
    %c0_2 = arith.constant 0 : index
    %c0_3 = arith.constant 0 : index
    %c0_4 = arith.constant 0 : index
    %4 = vector.load %arg2[%c0_2, %c0_3, %c0_4] : memref<8x32x64xbf16, #tpu.memory_space<vmem>>, vector<1x32x64xbf16>
    %5 = vector.shape_cast %4 : vector<1x32x64xbf16> to vector<32x64xbf16>
    %cst_5 = arith.constant dense<0.000000e+00> : vector<25x64xf32>
    %6 = tpu.matmul %3, %5, %cst_5 {dimension_numbers = #tpu.dot_dimension_numbers<[1], [0], [0], [1], [0, 0, 1, 1], [], []>} : vector<25x32xbf16>, vector<32x64xbf16>, vector<25x64xf32> -> vector<25x64xf32>
    %7 = arith.addf %2, %6 : vector<25x64xf32>
    %8 = vector.extract_strided_slice %1 {offsets = [1, 0], sizes = [25, 32], strides = [1, 1]} : vector<32x32xbf16> to vector<25x32xbf16>
    %c1 = arith.constant 1 : index
    %c0_6 = arith.constant 0 : index
    %c0_7 = arith.constant 0 : index
    %9 = vector.load %arg2[%c1, %c0_6, %c0_7] : memref<8x32x64xbf16, #tpu.memory_space<vmem>>, vector<1x32x64xbf16>
    %10 = vector.shape_cast %9 : vector<1x32x64xbf16> to vector<32x64xbf16>
    %cst_8 = arith.constant dense<0.000000e+00> : vector<25x64xf32>
    %11 = tpu.matmul %8, %10, %cst_8 {dimension_numbers = #tpu.dot_dimension_numbers<[1], [0], [0], [1], [0, 0, 1, 1], [], []>} : vector<25x32xbf16>, vector<32x64xbf16>, vector<25x64xf32> -> vector<25x64xf32>
    %12 = arith.addf %7, %11 : vector<25x64xf32>
    %13 = vector.extract_strided_slice %1 {offsets = [2, 0], sizes = [25, 32], strides = [1, 1]} : vector<32x32xbf16> to vector<25x32xbf16>
    %c2 = arith.constant 2 : index
    %c0_9 = arith.constant 0 : index
    %c0_10 = arith.constant 0 : index
    %14 = vector.load %arg2[%c2, %c0_9, %c0_10] : memref<8x32x64xbf16, #tpu.memory_space<vmem>>, vector<1x32x64xbf16>
    %15 = vector.shape_cast %14 : vector<1x32x64xbf16> to vector<32x64xbf16>
    %cst_11 = arith.constant dense<0.000000e+00> : vector<25x64xf32>
    %16 = tpu.matmul %13, %15, %cst_11 {dimension_numbers = #tpu.dot_dimension_numbers<[1], [0], [0], [1], [0, 0, 1, 1], [], []>} : vector<25x32xbf16>, vector<32x64xbf16>, vector<25x64xf32> -> vector<25x64xf32>
    %17 = arith.addf %12, %16 : vector<25x64xf32>
    %18 = vector.extract_strided_slice %1 {offsets = [3, 0], sizes = [25, 32], strides = [1, 1]} : vector<32x32xbf16> to vector<25x32xbf16>
    %c3 = arith.constant 3 : index
    %c0_12 = arith.constant 0 : index
    %c0_13 = arith.constant 0 : index
    %19 = vector.load %arg2[%c3, %c0_12, %c0_13] : memref<8x32x64xbf16, #tpu.memory_space<vmem>>, vector<1x32x64xbf16>
    %20 = vector.shape_cast %19 : vector<1x32x64xbf16> to vector<32x64xbf16>
    %cst_14 = arith.constant dense<0.000000e+00> : vector<25x64xf32>
    %21 = tpu.matmul %18, %20, %cst_14 {dimension_numbers = #tpu.dot_dimension_numbers<[1], [0], [0], [1], [0, 0, 1, 1], [], []>} : vector<25x32xbf16>, vector<32x64xbf16>, vector<25x64xf32> -> vector<25x64xf32>
    %22 = arith.addf %17, %21 : vector<25x64xf32>
    %23 = vector.extract_strided_slice %1 {offsets = [4, 0], sizes = [25, 32], strides = [1, 1]} : vector<32x32xbf16> to vector<25x32xbf16>
    %c4 = arith.constant 4 : index
    %c0_15 = arith.constant 0 : index
    %c0_16 = arith.constant 0 : index
    %24 = vector.load %arg2[%c4, %c0_15, %c0_16] : memref<8x32x64xbf16, #tpu.memory_space<vmem>>, vector<1x32x64xbf16>
    %25 = vector.shape_cast %24 : vector<1x32x64xbf16> to vector<32x64xbf16>
    %cst_17 = arith.constant dense<0.000000e+00> : vector<25x64xf32>
    %26 = tpu.matmul %23, %25, %cst_17 {dimension_numbers = #tpu.dot_dimension_numbers<[1], [0], [0], [1], [0, 0, 1, 1], [], []>} : vector<25x32xbf16>, vector<32x64xbf16>, vector<25x64xf32> -> vector<25x64xf32>
    %27 = arith.addf %22, %26 : vector<25x64xf32>
    %28 = vector.extract_strided_slice %1 {offsets = [5, 0], sizes = [25, 32], strides = [1, 1]} : vector<32x32xbf16> to vector<25x32xbf16>
    %c5 = arith.constant 5 : index
    %c0_18 = arith.constant 0 : index
    %c0_19 = arith.constant 0 : index
    %29 = vector.load %arg2[%c5, %c0_18, %c0_19] : memref<8x32x64xbf16, #tpu.memory_space<vmem>>, vector<1x32x64xbf16>
    %30 = vector.shape_cast %29 : vector<1x32x64xbf16> to vector<32x64xbf16>
    %cst_20 = arith.constant dense<0.000000e+00> : vector<25x64xf32>
    %31 = tpu.matmul %28, %30, %cst_20 {dimension_numbers = #tpu.dot_dimension_numbers<[1], [0], [0], [1], [0, 0, 1, 1], [], []>} : vector<25x32xbf16>, vector<32x64xbf16>, vector<25x64xf32> -> vector<25x64xf32>
    %32 = arith.addf %27, %31 : vector<25x64xf32>
    %33 = vector.extract_strided_slice %1 {offsets = [6, 0], sizes = [25, 32], strides = [1, 1]} : vector<32x32xbf16> to vector<25x32xbf16>
    %c6 = arith.constant 6 : index
    %c0_21 = arith.constant 0 : index
    %c0_22 = arith.constant 0 : index
    %34 = vector.load %arg2[%c6, %c0_21, %c0_22] : memref<8x32x64xbf16, #tpu.memory_space<vmem>>, vector<1x32x64xbf16>
    %35 = vector.shape_cast %34 : vector<1x32x64xbf16> to vector<32x64xbf16>
    %cst_23 = arith.constant dense<0.000000e+00> : vector<25x64xf32>
    %36 = tpu.matmul %33, %35, %cst_23 {dimension_numbers = #tpu.dot_dimension_numbers<[1], [0], [0], [1], [0, 0, 1, 1], [], []>} : vector<25x32xbf16>, vector<32x64xbf16>, vector<25x64xf32> -> vector<25x64xf32>
    %37 = arith.addf %32, %36 : vector<25x64xf32>
    %38 = vector.extract_strided_slice %1 {offsets = [7, 0], sizes = [25, 32], strides = [1, 1]} : vector<32x32xbf16> to vector<25x32xbf16>
    %c7 = arith.constant 7 : index
    %c0_24 = arith.constant 0 : index
    %c0_25 = arith.constant 0 : index
    %39 = vector.load %arg2[%c7, %c0_24, %c0_25] : memref<8x32x64xbf16, #tpu.memory_space<vmem>>, vector<1x32x64xbf16>
    %40 = vector.shape_cast %39 : vector<1x32x64xbf16> to vector<32x64xbf16>
    %cst_26 = arith.constant dense<0.000000e+00> : vector<25x64xf32>
    %41 = tpu.matmul %38, %40, %cst_26 {dimension_numbers = #tpu.dot_dimension_numbers<[1], [0], [0], [1], [0, 0, 1, 1], [], []>} : vector<25x32xbf16>, vector<32x64xbf16>, vector<25x64xf32> -> vector<25x64xf32>
    %42 = arith.addf %37, %41 : vector<25x64xf32>
    %c0_27 = arith.constant 0 : index
    %c0_28 = arith.constant 0 : index
    %43 = vector.load %arg3[%c0_27, %c0_28] : memref<1x64xf32, #tpu.memory_space<vmem>>, vector<1x64xf32>
    %44 = vector.broadcast %43 : vector<1x64xf32> to vector<25x64xf32>
    %45 = arith.addf %42, %44 : vector<25x64xf32>
    %cst_29 = arith.constant 0.000000e+00 : f32
    %46 = vector.broadcast %cst_29 : f32 to vector<25x64xf32>
    %47 = arith.maximumf %45, %46 : vector<25x64xf32>
    %c0_30 = arith.constant 0 : index
    %c0_31 = arith.constant 0 : index
    %48 = vector.load %arg13[%c0_30, %c0_31] : memref<25x64xf32, #tpu.memory_space<vmem>>, vector<25x64xf32>
    tpu.vector_store %arg13[%c0_30, %c0_31], %47 {strides = array<i32>} : memref<25x64xf32, #tpu.memory_space<vmem>>, vector<25x64xf32>,
    %cst_32 = arith.constant 0.000000e+00 : f32
    %49 = vector.broadcast %cst_32 : f32 to vector<44x64xf32>
    %c0_33 = arith.constant 0 : index
    %c0_34 = arith.constant 0 : index
    %50 = vector.load %arg14[%c0_33, %c0_34] : memref<44x64xf32, #tpu.memory_space<vmem>>, vector<44x64xf32>
    tpu.vector_store %arg14[%c0_33, %c0_34], %49 {strides = array<i32>} : memref<44x64xf32, #tpu.memory_space<vmem>>, vector<44x64xf32>,
    %c0_35 = arith.constant 0 : index
    %c0_36 = arith.constant 0 : index
    %51 = tpu.strided_load %arg13[%c0_35, %c0_36] {strides = array<i32: 2, 1>} : memref<25x64xf32, #tpu.memory_space<vmem>>, vector<12x64xf32>
    %c1_37 = arith.constant 1 : index
    %c0_38 = arith.constant 0 : index
    %52 = tpu.strided_load %arg13[%c1_37, %c0_38] {strides = array<i32: 2, 1>} : memref<25x64xf32, #tpu.memory_space<vmem>>, vector<12x64xf32>
    %c2_39 = arith.constant 2 : index
    %c0_40 = arith.constant 0 : index
    %53 = tpu.strided_load %arg13[%c2_39, %c0_40] {strides = array<i32: 2, 1>} : memref<25x64xf32, #tpu.memory_space<vmem>>, vector<12x64xf32>
    %54 = arith.maximumf %51, %52 : vector<12x64xf32>
    %55 = arith.maximumf %54, %53 : vector<12x64xf32>
    %c16 = arith.constant 16 : index
    %c0_41 = arith.constant 0 : index
    %56 = vector.load %arg14[%c16, %c0_41] : memref<44x64xf32, #tpu.memory_space<vmem>>, vector<12x64xf32>
    tpu.vector_store %arg14[%c16, %c0_41], %55 {strides = array<i32>} : memref<44x64xf32, #tpu.memory_space<vmem>>, vector<12x64xf32>,
    %cst_42 = arith.constant 0.000000e+00 : f32
    %57 = vector.broadcast %cst_42 : f32 to vector<15x128xf32>
    %c0_43 = arith.constant 0 : index
    %c0_44 = arith.constant 0 : index
    %58 = tpu.strided_load %arg14[%c0_43, %c0_44] {strides = array<i32: 2, 1>} : memref<44x64xf32, #tpu.memory_space<vmem>>, vector<15x64xf32>
    %59 = arith.truncf %58 : vector<15x64xf32> to vector<15x64xbf16>
    %c0_45 = arith.constant 0 : index
    %c0_46 = arith.constant 0 : index
    %c0_47 = arith.constant 0 : index
    %60 = vector.load %arg4[%c0_45, %c0_46, %c0_47] : memref<16x64x128xbf16, #tpu.memory_space<vmem>>, vector<1x64x128xbf16>
    %61 = vector.shape_cast %60 : vector<1x64x128xbf16> to vector<64x128xbf16>
    %cst_48 = arith.constant dense<0.000000e+00> : vector<15x128xf32>
    %62 = tpu.matmul %59, %61, %cst_48 {dimension_numbers = #tpu.dot_dimension_numbers<[1], [0], [0], [1], [0, 0, 1, 1], [], []>} : vector<15x64xbf16>, vector<64x128xbf16>, vector<15x128xf32> -> vector<15x128xf32>
    %63 = arith.addf %57, %62 : vector<15x128xf32>
    %c1_49 = arith.constant 1 : index
    %c0_50 = arith.constant 0 : index
    %64 = tpu.strided_load %arg14[%c1_49, %c0_50] {strides = array<i32: 2, 1>} : memref<44x64xf32, #tpu.memory_space<vmem>>, vector<15x64xf32>
    %65 = arith.truncf %64 : vector<15x64xf32> to vector<15x64xbf16>
    %c1_51 = arith.constant 1 : index
    %c0_52 = arith.constant 0 : index
    %c0_53 = arith.constant 0 : index
    %66 = vector.load %arg4[%c1_51, %c0_52, %c0_53] : memref<16x64x128xbf16, #tpu.memory_space<vmem>>, vector<1x64x128xbf16>
    %67 = vector.shape_cast %66 : vector<1x64x128xbf16> to vector<64x128xbf16>
    %cst_54 = arith.constant dense<0.000000e+00> : vector<15x128xf32>
    %68 = tpu.matmul %65, %67, %cst_54 {dimension_numbers = #tpu.dot_dimension_numbers<[1], [0], [0], [1], [0, 0, 1, 1], [], []>} : vector<15x64xbf16>, vector<64x128xbf16>, vector<15x128xf32> -> vector<15x128xf32>
    %69 = arith.addf %63, %68 : vector<15x128xf32>
    %c2_55 = arith.constant 2 : index
    %c0_56 = arith.constant 0 : index
    %70 = tpu.strided_load %arg14[%c2_55, %c0_56] {strides = array<i32: 2, 1>} : memref<44x64xf32, #tpu.memory_space<vmem>>, vector<15x64xf32>
    %71 = arith.truncf %70 : vector<15x64xf32> to vector<15x64xbf16>
    %c2_57 = arith.constant 2 : index
    %c0_58 = arith.constant 0 : index
    %c0_59 = arith.constant 0 : index
    %72 = vector.load %arg4[%c2_57, %c0_58, %c0_59] : memref<16x64x128xbf16, #tpu.memory_space<vmem>>, vector<1x64x128xbf16>
    %73 = vector.shape_cast %72 : vector<1x64x128xbf16> to vector<64x128xbf16>
    %cst_60 = arith.constant dense<0.000000e+00> : vector<15x128xf32>
    %74 = tpu.matmul %71, %73, %cst_60 {dimension_numbers = #tpu.dot_dimension_numbers<[1], [0], [0], [1], [0, 0, 1, 1], [], []>} : vector<15x64xbf16>, vector<64x128xbf16>, vector<15x128xf32> -> vector<15x128xf32>
    %75 = arith.addf %69, %74 : vector<15x128xf32>
    %c3_61 = arith.constant 3 : index
    %c0_62 = arith.constant 0 : index
    %76 = tpu.strided_load %arg14[%c3_61, %c0_62] {strides = array<i32: 2, 1>} : memref<44x64xf32, #tpu.memory_space<vmem>>, vector<15x64xf32>
    %77 = arith.truncf %76 : vector<15x64xf32> to vector<15x64xbf16>
    %c3_63 = arith.constant 3 : index
    %c0_64 = arith.constant 0 : index
    %c0_65 = arith.constant 0 : index
    %78 = vector.load %arg4[%c3_63, %c0_64, %c0_65] : memref<16x64x128xbf16, #tpu.memory_space<vmem>>, vector<1x64x128xbf16>
    %79 = vector.shape_cast %78 : vector<1x64x128xbf16> to vector<64x128xbf16>
    %cst_66 = arith.constant dense<0.000000e+00> : vector<15x128xf32>
    %80 = tpu.matmul %77, %79, %cst_66 {dimension_numbers = #tpu.dot_dimension_numbers<[1], [0], [0], [1], [0, 0, 1, 1], [], []>} : vector<15x64xbf16>, vector<64x128xbf16>, vector<15x128xf32> -> vector<15x128xf32>
    %81 = arith.addf %75, %80 : vector<15x128xf32>
    %c4_67 = arith.constant 4 : index
    %c0_68 = arith.constant 0 : index
    %82 = tpu.strided_load %arg14[%c4_67, %c0_68] {strides = array<i32: 2, 1>} : memref<44x64xf32, #tpu.memory_space<vmem>>, vector<15x64xf32>
    %83 = arith.truncf %82 : vector<15x64xf32> to vector<15x64xbf16>
    %c4_69 = arith.constant 4 : index
    %c0_70 = arith.constant 0 : index
    %c0_71 = arith.constant 0 : index
    %84 = vector.load %arg4[%c4_69, %c0_70, %c0_71] : memref<16x64x128xbf16, #tpu.memory_space<vmem>>, vector<1x64x128xbf16>
    %85 = vector.shape_cast %84 : vector<1x64x128xbf16> to vector<64x128xbf16>
    %cst_72 = arith.constant dense<0.000000e+00> : vector<15x128xf32>
    %86 = tpu.matmul %83, %85, %cst_72 {dimension_numbers = #tpu.dot_dimension_numbers<[1], [0], [0], [1], [0, 0, 1, 1], [], []>} : vector<15x64xbf16>, vector<64x128xbf16>, vector<15x128xf32> -> vector<15x128xf32>
    %87 = arith.addf %81, %86 : vector<15x128xf32>
    %c5_73 = arith.constant 5 : index
    %c0_74 = arith.constant 0 : index
    %88 = tpu.strided_load %arg14[%c5_73, %c0_74] {strides = array<i32: 2, 1>} : memref<44x64xf32, #tpu.memory_space<vmem>>, vector<15x64xf32>
    %89 = arith.truncf %88 : vector<15x64xf32> to vector<15x64xbf16>
    %c5_75 = arith.constant 5 : index
    %c0_76 = arith.constant 0 : index
    %c0_77 = arith.constant 0 : index
    %90 = vector.load %arg4[%c5_75, %c0_76, %c0_77] : memref<16x64x128xbf16, #tpu.memory_space<vmem>>, vector<1x64x128xbf16>
    %91 = vector.shape_cast %90 : vector<1x64x128xbf16> to vector<64x128xbf16>
    %cst_78 = arith.constant dense<0.000000e+00> : vector<15x128xf32>
    %92 = tpu.matmul %89, %91, %cst_78 {dimension_numbers = #tpu.dot_dimension_numbers<[1], [0], [0], [1], [0, 0, 1, 1], [], []>} : vector<15x64xbf16>, vector<64x128xbf16>, vector<15x128xf32> -> vector<15x128xf32>
    %93 = arith.addf %87, %92 : vector<15x128xf32>
    %c6_79 = arith.constant 6 : index
    %c0_80 = arith.constant 0 : index
    %94 = tpu.strided_load %arg14[%c6_79, %c0_80] {strides = array<i32: 2, 1>} : memref<44x64xf32, #tpu.memory_space<vmem>>, vector<15x64xf32>
    %95 = arith.truncf %94 : vector<15x64xf32> to vector<15x64xbf16>
    %c6_81 = arith.constant 6 : index
    %c0_82 = arith.constant 0 : index
    %c0_83 = arith.constant 0 : index
    %96 = vector.load %arg4[%c6_81, %c0_82, %c0_83] : memref<16x64x128xbf16, #tpu.memory_space<vmem>>, vector<1x64x128xbf16>
    %97 = vector.shape_cast %96 : vector<1x64x128xbf16> to vector<64x128xbf16>
    %cst_84 = arith.constant dense<0.000000e+00> : vector<15x128xf32>
    %98 = tpu.matmul %95, %97, %cst_84 {dimension_numbers = #tpu.dot_dimension_numbers<[1], [0], [0], [1], [0, 0, 1, 1], [], []>} : vector<15x64xbf16>, vector<64x128xbf16>, vector<15x128xf32> -> vector<15x128xf32>
    %99 = arith.addf %93, %98 : vector<15x128xf32>
    %c7_85 = arith.constant 7 : index
    %c0_86 = arith.constant 0 : index
    %100 = tpu.strided_load %arg14[%c7_85, %c0_86] {strides = array<i32: 2, 1>} : memref<44x64xf32, #tpu.memory_space<vmem>>, vector<15x64xf32>
    %101 = arith.truncf %100 : vector<15x64xf32> to vector<15x64xbf16>
    %c7_87 = arith.constant 7 : index
    %c0_88 = arith.constant 0 : index
    %c0_89 = arith.constant 0 : index
    %102 = vector.load %arg4[%c7_87, %c0_88, %c0_89] : memref<16x64x128xbf16, #tpu.memory_space<vmem>>, vector<1x64x128xbf16>
    %103 = vector.shape_cast %102 : vector<1x64x128xbf16> to vector<64x128xbf16>
    %cst_90 = arith.constant dense<0.000000e+00> : vector<15x128xf32>
    %104 = tpu.matmul %101, %103, %cst_90 {dimension_numbers = #tpu.dot_dimension_numbers<[1], [0], [0], [1], [0, 0, 1, 1], [], []>} : vector<15x64xbf16>, vector<64x128xbf16>, vector<15x128xf32> -> vector<15x128xf32>
    %105 = arith.addf %99, %104 : vector<15x128xf32>
    %c8 = arith.constant 8 : index
    %c0_91 = arith.constant 0 : index
    %106 = tpu.strided_load %arg14[%c8, %c0_91] {strides = array<i32: 2, 1>} : memref<44x64xf32, #tpu.memory_space<vmem>>, vector<15x64xf32>
    %107 = arith.truncf %106 : vector<15x64xf32> to vector<15x64xbf16>
    %c8_92 = arith.constant 8 : index
    %c0_93 = arith.constant 0 : index
    %c0_94 = arith.constant 0 : index
    %108 = vector.load %arg4[%c8_92, %c0_93, %c0_94] : memref<16x64x128xbf16, #tpu.memory_space<vmem>>, vector<1x64x128xbf16>
    %109 = vector.shape_cast %108 : vector<1x64x128xbf16> to vector<64x128xbf16>
    %cst_95 = arith.constant dense<0.000000e+00> : vector<15x128xf32>
    %110 = tpu.matmul %107, %109, %cst_95 {dimension_numbers = #tpu.dot_dimension_numbers<[1], [0], [0], [1], [0, 0, 1, 1], [], []>} : vector<15x64xbf16>, vector<64x128xbf16>, vector<15x128xf32> -> vector<15x128xf32>
    %111 = arith.addf %105, %110 : vector<15x128xf32>
    %c9 = arith.constant 9 : index
    %c0_96 = arith.constant 0 : index
    %112 = tpu.strided_load %arg14[%c9, %c0_96] {strides = array<i32: 2, 1>} : memref<44x64xf32, #tpu.memory_space<vmem>>, vector<15x64xf32>
    %113 = arith.truncf %112 : vector<15x64xf32> to vector<15x64xbf16>
    %c9_97 = arith.constant 9 : index
    %c0_98 = arith.constant 0 : index
    %c0_99 = arith.constant 0 : index
    %114 = vector.load %arg4[%c9_97, %c0_98, %c0_99] : memref<16x64x128xbf16, #tpu.memory_space<vmem>>, vector<1x64x128xbf16>
    %115 = vector.shape_cast %114 : vector<1x64x128xbf16> to vector<64x128xbf16>
    %cst_100 = arith.constant dense<0.000000e+00> : vector<15x128xf32>
    %116 = tpu.matmul %113, %115, %cst_100 {dimension_numbers = #tpu.dot_dimension_numbers<[1], [0], [0], [1], [0, 0, 1, 1], [], []>} : vector<15x64xbf16>, vector<64x128xbf16>, vector<15x128xf32> -> vector<15x128xf32>
    %117 = arith.addf %111, %116 : vector<15x128xf32>
    %c10 = arith.constant 10 : index
    %c0_101 = arith.constant 0 : index
    %118 = tpu.strided_load %arg14[%c10, %c0_101] {strides = array<i32: 2, 1>} : memref<44x64xf32, #tpu.memory_space<vmem>>, vector<15x64xf32>
    %119 = arith.truncf %118 : vector<15x64xf32> to vector<15x64xbf16>
    %c10_102 = arith.constant 10 : index
    %c0_103 = arith.constant 0 : index
    %c0_104 = arith.constant 0 : index
    %120 = vector.load %arg4[%c10_102, %c0_103, %c0_104] : memref<16x64x128xbf16, #tpu.memory_space<vmem>>, vector<1x64x128xbf16>
    %121 = vector.shape_cast %120 : vector<1x64x128xbf16> to vector<64x128xbf16>
    %cst_105 = arith.constant dense<0.000000e+00> : vector<15x128xf32>
    %122 = tpu.matmul %119, %121, %cst_105 {dimension_numbers = #tpu.dot_dimension_numbers<[1], [0], [0], [1], [0, 0, 1, 1], [], []>} : vector<15x64xbf16>, vector<64x128xbf16>, vector<15x128xf32> -> vector<15x128xf32>
    %123 = arith.addf %117, %122 : vector<15x128xf32>
    %c11 = arith.constant 11 : index
    %c0_106 = arith.constant 0 : index
    %124 = tpu.strided_load %arg14[%c11, %c0_106] {strides = array<i32: 2, 1>} : memref<44x64xf32, #tpu.memory_space<vmem>>, vector<15x64xf32>
    %125 = arith.truncf %124 : vector<15x64xf32> to vector<15x64xbf16>
    %c11_107 = arith.constant 11 : index
    %c0_108 = arith.constant 0 : index
    %c0_109 = arith.constant 0 : index
    %126 = vector.load %arg4[%c11_107, %c0_108, %c0_109] : memref<16x64x128xbf16, #tpu.memory_space<vmem>>, vector<1x64x128xbf16>
    %127 = vector.shape_cast %126 : vector<1x64x128xbf16> to vector<64x128xbf16>
    %cst_110 = arith.constant dense<0.000000e+00> : vector<15x128xf32>
    %128 = tpu.matmul %125, %127, %cst_110 {dimension_numbers = #tpu.dot_dimension_numbers<[1], [0], [0], [1], [0, 0, 1, 1], [], []>} : vector<15x64xbf16>, vector<64x128xbf16>, vector<15x128xf32> -> vector<15x128xf32>
    %129 = arith.addf %123, %128 : vector<15x128xf32>
    %c12 = arith.constant 12 : index
    %c0_111 = arith.constant 0 : index
    %130 = tpu.strided_load %arg14[%c12, %c0_111] {strides = array<i32: 2, 1>} : memref<44x64xf32, #tpu.memory_space<vmem>>, vector<15x64xf32>
    %131 = arith.truncf %130 : vector<15x64xf32> to vector<15x64xbf16>
    %c12_112 = arith.constant 12 : index
    %c0_113 = arith.constant 0 : index
    %c0_114 = arith.constant 0 : index
    %132 = vector.load %arg4[%c12_112, %c0_113, %c0_114] : memref<16x64x128xbf16, #tpu.memory_space<vmem>>, vector<1x64x128xbf16>
    %133 = vector.shape_cast %132 : vector<1x64x128xbf16> to vector<64x128xbf16>
    %cst_115 = arith.constant dense<0.000000e+00> : vector<15x128xf32>
    %134 = tpu.matmul %131, %133, %cst_115 {dimension_numbers = #tpu.dot_dimension_numbers<[1], [0], [0], [1], [0, 0, 1, 1], [], []>} : vector<15x64xbf16>, vector<64x128xbf16>, vector<15x128xf32> -> vector<15x128xf32>
    %135 = arith.addf %129, %134 : vector<15x128xf32>
    %c13 = arith.constant 13 : index
    %c0_116 = arith.constant 0 : index
    %136 = tpu.strided_load %arg14[%c13, %c0_116] {strides = array<i32: 2, 1>} : memref<44x64xf32, #tpu.memory_space<vmem>>, vector<15x64xf32>
    %137 = arith.truncf %136 : vector<15x64xf32> to vector<15x64xbf16>
    %c13_117 = arith.constant 13 : index
    %c0_118 = arith.constant 0 : index
    %c0_119 = arith.constant 0 : index
    %138 = vector.load %arg4[%c13_117, %c0_118, %c0_119] : memref<16x64x128xbf16, #tpu.memory_space<vmem>>, vector<1x64x128xbf16>
    %139 = vector.shape_cast %138 : vector<1x64x128xbf16> to vector<64x128xbf16>
    %cst_120 = arith.constant dense<0.000000e+00> : vector<15x128xf32>
    %140 = tpu.matmul %137, %139, %cst_120 {dimension_numbers = #tpu.dot_dimension_numbers<[1], [0], [0], [1], [0, 0, 1, 1], [], []>} : vector<15x64xbf16>, vector<64x128xbf16>, vector<15x128xf32> -> vector<15x128xf32>
    %141 = arith.addf %135, %140 : vector<15x128xf32>
    %c14 = arith.constant 14 : index
    %c0_121 = arith.constant 0 : index
    %142 = tpu.strided_load %arg14[%c14, %c0_121] {strides = array<i32: 2, 1>} : memref<44x64xf32, #tpu.memory_space<vmem>>, vector<15x64xf32>
    %143 = arith.truncf %142 : vector<15x64xf32> to vector<15x64xbf16>
    %c14_122 = arith.constant 14 : index
    %c0_123 = arith.constant 0 : index
    %c0_124 = arith.constant 0 : index
    %144 = vector.load %arg4[%c14_122, %c0_123, %c0_124] : memref<16x64x128xbf16, #tpu.memory_space<vmem>>, vector<1x64x128xbf16>
    %145 = vector.shape_cast %144 : vector<1x64x128xbf16> to vector<64x128xbf16>
    %cst_125 = arith.constant dense<0.000000e+00> : vector<15x128xf32>
    %146 = tpu.matmul %143, %145, %cst_125 {dimension_numbers = #tpu.dot_dimension_numbers<[1], [0], [0], [1], [0, 0, 1, 1], [], []>} : vector<15x64xbf16>, vector<64x128xbf16>, vector<15x128xf32> -> vector<15x128xf32>
    %147 = arith.addf %141, %146 : vector<15x128xf32>
    %c15 = arith.constant 15 : index
    %c0_126 = arith.constant 0 : index
    %148 = tpu.strided_load %arg14[%c15, %c0_126] {strides = array<i32: 2, 1>} : memref<44x64xf32, #tpu.memory_space<vmem>>, vector<15x64xf32>
    %149 = arith.truncf %148 : vector<15x64xf32> to vector<15x64xbf16>
    %c15_127 = arith.constant 15 : index
    %c0_128 = arith.constant 0 : index
    %c0_129 = arith.constant 0 : index
    %150 = vector.load %arg4[%c15_127, %c0_128, %c0_129] : memref<16x64x128xbf16, #tpu.memory_space<vmem>>, vector<1x64x128xbf16>
    %151 = vector.shape_cast %150 : vector<1x64x128xbf16> to vector<64x128xbf16>
    %cst_130 = arith.constant dense<0.000000e+00> : vector<15x128xf32>
    %152 = tpu.matmul %149, %151, %cst_130 {dimension_numbers = #tpu.dot_dimension_numbers<[1], [0], [0], [1], [0, 0, 1, 1], [], []>} : vector<15x64xbf16>, vector<64x128xbf16>, vector<15x128xf32> -> vector<15x128xf32>
    %153 = arith.addf %147, %152 : vector<15x128xf32>
    %c0_131 = arith.constant 0 : index
    %c0_132 = arith.constant 0 : index
    %154 = vector.load %arg5[%c0_131, %c0_132] : memref<1x128xf32, #tpu.memory_space<vmem>>, vector<1x128xf32>
    %155 = vector.broadcast %154 : vector<1x128xf32> to vector<15x128xf32>
    %156 = arith.addf %153, %155 : vector<15x128xf32>
    %cst_133 = arith.constant 0.000000e+00 : f32
    %157 = vector.broadcast %cst_133 : f32 to vector<15x128xf32>
    %158 = arith.maximumf %156, %157 : vector<15x128xf32>
    %c0_134 = arith.constant 0 : index
    %c0_135 = arith.constant 0 : index
    %159 = vector.load %arg15[%c0_134, %c0_135] : memref<15x128xf32, #tpu.memory_space<vmem>>, vector<15x128xf32>
    tpu.vector_store %arg15[%c0_134, %c0_135], %158 {strides = array<i32>} : memref<15x128xf32, #tpu.memory_space<vmem>>, vector<15x128xf32>,
    %cst_136 = arith.constant 0.000000e+00 : f32
    %160 = vector.broadcast %cst_136 : f32 to vector<39x128xf32>
    %c0_137 = arith.constant 0 : index
    %c0_138 = arith.constant 0 : index
    %161 = vector.load %arg16[%c0_137, %c0_138] : memref<39x128xf32, #tpu.memory_space<vmem>>, vector<39x128xf32>
    tpu.vector_store %arg16[%c0_137, %c0_138], %160 {strides = array<i32>} : memref<39x128xf32, #tpu.memory_space<vmem>>, vector<39x128xf32>,
    %c0_139 = arith.constant 0 : index
    %c0_140 = arith.constant 0 : index
    %162 = tpu.strided_load %arg15[%c0_139, %c0_140] {strides = array<i32: 2, 1>} : memref<15x128xf32, #tpu.memory_space<vmem>>, vector<7x128xf32>
    %c1_141 = arith.constant 1 : index
    %c0_142 = arith.constant 0 : index
    %163 = tpu.strided_load %arg15[%c1_141, %c0_142] {strides = array<i32: 2, 1>} : memref<15x128xf32, #tpu.memory_space<vmem>>, vector<7x128xf32>
    %c2_143 = arith.constant 2 : index
    %c0_144 = arith.constant 0 : index
    %164 = tpu.strided_load %arg15[%c2_143, %c0_144] {strides = array<i32: 2, 1>} : memref<15x128xf32, #tpu.memory_space<vmem>>, vector<7x128xf32>
    %165 = arith.maximumf %162, %163 : vector<7x128xf32>
    %166 = arith.maximumf %165, %164 : vector<7x128xf32>
    %c16_145 = arith.constant 16 : index
    %c0_146 = arith.constant 0 : index
    %167 = vector.load %arg16[%c16_145, %c0_146] : memref<39x128xf32, #tpu.memory_space<vmem>>, vector<7x128xf32>
    tpu.vector_store %arg16[%c16_145, %c0_146], %166 {strides = array<i32>} : memref<39x128xf32, #tpu.memory_space<vmem>>, vector<7x128xf32>,
    %cst_147 = arith.constant 0.000000e+00 : f32
    %168 = vector.broadcast %cst_147 : f32 to vector<12x128xf32>
    %c0_148 = arith.constant 0 : index
    %c0_149 = arith.constant 0 : index
    %169 = tpu.strided_load %arg16[%c0_148, %c0_149] {strides = array<i32: 2, 1>} : memref<39x128xf32, #tpu.memory_space<vmem>>, vector<12x128xf32>
    %170 = arith.truncf %169 : vector<12x128xf32> to vector<12x128xbf16>
    %c0_150 = arith.constant 0 : index
    %c0_151 = arith.constant 0 : index
    %c0_152 = arith.constant 0 : index
    %171 = vector.load %arg6[%c0_150, %c0_151, %c0_152] : memref<16x128x128xbf16, #tpu.memory_space<vmem>>, vector<1x128x128xbf16>
    %172 = vector.shape_cast %171 : vector<1x128x128xbf16> to vector<128x128xbf16>
    %cst_153 = arith.constant dense<0.000000e+00> : vector<12x128xf32>
    %173 = tpu.matmul %170, %172, %cst_153 {dimension_numbers = #tpu.dot_dimension_numbers<[1], [0], [0], [1], [0, 0, 1, 1], [], []>} : vector<12x128xbf16>, vector<128x128xbf16>, vector<12x128xf32> -> vector<12x128xf32>
    %174 = arith.addf %168, %173 : vector<12x128xf32>
    %c1_154 = arith.constant 1 : index
    %c0_155 = arith.constant 0 : index
    %175 = tpu.strided_load %arg16[%c1_154, %c0_155] {strides = array<i32: 2, 1>} : memref<39x128xf32, #tpu.memory_space<vmem>>, vector<12x128xf32>
    %176 = arith.truncf %175 : vector<12x128xf32> to vector<12x128xbf16>
    %c1_156 = arith.constant 1 : index
    %c0_157 = arith.constant 0 : index
    %c0_158 = arith.constant 0 : index
    %177 = vector.load %arg6[%c1_156, %c0_157, %c0_158] : memref<16x128x128xbf16, #tpu.memory_space<vmem>>, vector<1x128x128xbf16>
    %178 = vector.shape_cast %177 : vector<1x128x128xbf16> to vector<128x128xbf16>
    %cst_159 = arith.constant dense<0.000000e+00> : vector<12x128xf32>
    %179 = tpu.matmul %176, %178, %cst_159 {dimension_numbers = #tpu.dot_dimension_numbers<[1], [0], [0], [1], [0, 0, 1, 1], [], []>} : vector<12x128xbf16>, vector<128x128xbf16>, vector<12x128xf32> -> vector<12x128xf32>
    %180 = arith.addf %174, %179 : vector<12x128xf32>
    %c2_160 = arith.constant 2 : index
    %c0_161 = arith.constant 0 : index
    %181 = tpu.strided_load %arg16[%c2_160, %c0_161] {strides = array<i32: 2, 1>} : memref<39x128xf32, #tpu.memory_space<vmem>>, vector<12x128xf32>
    %182 = arith.truncf %181 : vector<12x128xf32> to vector<12x128xbf16>
    %c2_162 = arith.constant 2 : index
    %c0_163 = arith.constant 0 : index
    %c0_164 = arith.constant 0 : index
    %183 = vector.load %arg6[%c2_162, %c0_163, %c0_164] : memref<16x128x128xbf16, #tpu.memory_space<vmem>>, vector<1x128x128xbf16>
    %184 = vector.shape_cast %183 : vector<1x128x128xbf16> to vector<128x128xbf16>
    %cst_165 = arith.constant dense<0.000000e+00> : vector<12x128xf32>
    %185 = tpu.matmul %182, %184, %cst_165 {dimension_numbers = #tpu.dot_dimension_numbers<[1], [0], [0], [1], [0, 0, 1, 1], [], []>} : vector<12x128xbf16>, vector<128x128xbf16>, vector<12x128xf32> -> vector<12x128xf32>
    %186 = arith.addf %180, %185 : vector<12x128xf32>
    %c3_166 = arith.constant 3 : index
    %c0_167 = arith.constant 0 : index
    %187 = tpu.strided_load %arg16[%c3_166, %c0_167] {strides = array<i32: 2, 1>} : memref<39x128xf32, #tpu.memory_space<vmem>>, vector<12x128xf32>
    %188 = arith.truncf %187 : vector<12x128xf32> to vector<12x128xbf16>
    %c3_168 = arith.constant 3 : index
    %c0_169 = arith.constant 0 : index
    %c0_170 = arith.constant 0 : index
    %189 = vector.load %arg6[%c3_168, %c0_169, %c0_170] : memref<16x128x128xbf16, #tpu.memory_space<vmem>>, vector<1x128x128xbf16>
    %190 = vector.shape_cast %189 : vector<1x128x128xbf16> to vector<128x128xbf16>
    %cst_171 = arith.constant dense<0.000000e+00> : vector<12x128xf32>
    %191 = tpu.matmul %188, %190, %cst_171 {dimension_numbers = #tpu.dot_dimension_numbers<[1], [0], [0], [1], [0, 0, 1, 1], [], []>} : vector<12x128xbf16>, vector<128x128xbf16>, vector<12x128xf32> -> vector<12x128xf32>
    %192 = arith.addf %186, %191 : vector<12x128xf32>
    %c4_172 = arith.constant 4 : index
    %c0_173 = arith.constant 0 : index
    %193 = tpu.strided_load %arg16[%c4_172, %c0_173] {strides = array<i32: 2, 1>} : memref<39x128xf32, #tpu.memory_space<vmem>>, vector<12x128xf32>
    %194 = arith.truncf %193 : vector<12x128xf32> to vector<12x128xbf16>
    %c4_174 = arith.constant 4 : index
    %c0_175 = arith.constant 0 : index
    %c0_176 = arith.constant 0 : index
    %195 = vector.load %arg6[%c4_174, %c0_175, %c0_176] : memref<16x128x128xbf16, #tpu.memory_space<vmem>>, vector<1x128x128xbf16>
    %196 = vector.shape_cast %195 : vector<1x128x128xbf16> to vector<128x128xbf16>
    %cst_177 = arith.constant dense<0.000000e+00> : vector<12x128xf32>
    %197 = tpu.matmul %194, %196, %cst_177 {dimension_numbers = #tpu.dot_dimension_numbers<[1], [0], [0], [1], [0, 0, 1, 1], [], []>} : vector<12x128xbf16>, vector<128x128xbf16>, vector<12x128xf32> -> vector<12x128xf32>
    %198 = arith.addf %192, %197 : vector<12x128xf32>
    %c5_178 = arith.constant 5 : index
    %c0_179 = arith.constant 0 : index
    %199 = tpu.strided_load %arg16[%c5_178, %c0_179] {strides = array<i32: 2, 1>} : memref<39x128xf32, #tpu.memory_space<vmem>>, vector<12x128xf32>
    %200 = arith.truncf %199 : vector<12x128xf32> to vector<12x128xbf16>
    %c5_180 = arith.constant 5 : index
    %c0_181 = arith.constant 0 : index
    %c0_182 = arith.constant 0 : index
    %201 = vector.load %arg6[%c5_180, %c0_181, %c0_182] : memref<16x128x128xbf16, #tpu.memory_space<vmem>>, vector<1x128x128xbf16>
    %202 = vector.shape_cast %201 : vector<1x128x128xbf16> to vector<128x128xbf16>
    %cst_183 = arith.constant dense<0.000000e+00> : vector<12x128xf32>
    %203 = tpu.matmul %200, %202, %cst_183 {dimension_numbers = #tpu.dot_dimension_numbers<[1], [0], [0], [1], [0, 0, 1, 1], [], []>} : vector<12x128xbf16>, vector<128x128xbf16>, vector<12x128xf32> -> vector<12x128xf32>
    %204 = arith.addf %198, %203 : vector<12x128xf32>
    %c6_184 = arith.constant 6 : index
    %c0_185 = arith.constant 0 : index
    %205 = tpu.strided_load %arg16[%c6_184, %c0_185] {strides = array<i32: 2, 1>} : memref<39x128xf32, #tpu.memory_space<vmem>>, vector<12x128xf32>
    %206 = arith.truncf %205 : vector<12x128xf32> to vector<12x128xbf16>
    %c6_186 = arith.constant 6 : index
    %c0_187 = arith.constant 0 : index
    %c0_188 = arith.constant 0 : index
    %207 = vector.load %arg6[%c6_186, %c0_187, %c0_188] : memref<16x128x128xbf16, #tpu.memory_space<vmem>>, vector<1x128x128xbf16>
    %208 = vector.shape_cast %207 : vector<1x128x128xbf16> to vector<128x128xbf16>
    %cst_189 = arith.constant dense<0.000000e+00> : vector<12x128xf32>
    %209 = tpu.matmul %206, %208, %cst_189 {dimension_numbers = #tpu.dot_dimension_numbers<[1], [0], [0], [1], [0, 0, 1, 1], [], []>} : vector<12x128xbf16>, vector<128x128xbf16>, vector<12x128xf32> -> vector<12x128xf32>
    %210 = arith.addf %204, %209 : vector<12x128xf32>
    %c7_190 = arith.constant 7 : index
    %c0_191 = arith.constant 0 : index
    %211 = tpu.strided_load %arg16[%c7_190, %c0_191] {strides = array<i32: 2, 1>} : memref<39x128xf32, #tpu.memory_space<vmem>>, vector<12x128xf32>
    %212 = arith.truncf %211 : vector<12x128xf32> to vector<12x128xbf16>
    %c7_192 = arith.constant 7 : index
    %c0_193 = arith.constant 0 : index
    %c0_194 = arith.constant 0 : index
    %213 = vector.load %arg6[%c7_192, %c0_193, %c0_194] : memref<16x128x128xbf16, #tpu.memory_space<vmem>>, vector<1x128x128xbf16>
    %214 = vector.shape_cast %213 : vector<1x128x128xbf16> to vector<128x128xbf16>
    %cst_195 = arith.constant dense<0.000000e+00> : vector<12x128xf32>
    %215 = tpu.matmul %212, %214, %cst_195 {dimension_numbers = #tpu.dot_dimension_numbers<[1], [0], [0], [1], [0, 0, 1, 1], [], []>} : vector<12x128xbf16>, vector<128x128xbf16>, vector<12x128xf32> -> vector<12x128xf32>
    %216 = arith.addf %210, %215 : vector<12x128xf32>
    %c8_196 = arith.constant 8 : index
    %c0_197 = arith.constant 0 : index
    %217 = tpu.strided_load %arg16[%c8_196, %c0_197] {strides = array<i32: 2, 1>} : memref<39x128xf32, #tpu.memory_space<vmem>>, vector<12x128xf32>
    %218 = arith.truncf %217 : vector<12x128xf32> to vector<12x128xbf16>
    %c8_198 = arith.constant 8 : index
    %c0_199 = arith.constant 0 : index
    %c0_200 = arith.constant 0 : index
    %219 = vector.load %arg6[%c8_198, %c0_199, %c0_200] : memref<16x128x128xbf16, #tpu.memory_space<vmem>>, vector<1x128x128xbf16>
    %220 = vector.shape_cast %219 : vector<1x128x128xbf16> to vector<128x128xbf16>
    %cst_201 = arith.constant dense<0.000000e+00> : vector<12x128xf32>
    %221 = tpu.matmul %218, %220, %cst_201 {dimension_numbers = #tpu.dot_dimension_numbers<[1], [0], [0], [1], [0, 0, 1, 1], [], []>} : vector<12x128xbf16>, vector<128x128xbf16>, vector<12x128xf32> -> vector<12x128xf32>
    %222 = arith.addf %216, %221 : vector<12x128xf32>
    %c9_202 = arith.constant 9 : index
    %c0_203 = arith.constant 0 : index
    %223 = tpu.strided_load %arg16[%c9_202, %c0_203] {strides = array<i32: 2, 1>} : memref<39x128xf32, #tpu.memory_space<vmem>>, vector<12x128xf32>
    %224 = arith.truncf %223 : vector<12x128xf32> to vector<12x128xbf16>
    %c9_204 = arith.constant 9 : index
    %c0_205 = arith.constant 0 : index
    %c0_206 = arith.constant 0 : index
    %225 = vector.load %arg6[%c9_204, %c0_205, %c0_206] : memref<16x128x128xbf16, #tpu.memory_space<vmem>>, vector<1x128x128xbf16>
    %226 = vector.shape_cast %225 : vector<1x128x128xbf16> to vector<128x128xbf16>
    %cst_207 = arith.constant dense<0.000000e+00> : vector<12x128xf32>
    %227 = tpu.matmul %224, %226, %cst_207 {dimension_numbers = #tpu.dot_dimension_numbers<[1], [0], [0], [1], [0, 0, 1, 1], [], []>} : vector<12x128xbf16>, vector<128x128xbf16>, vector<12x128xf32> -> vector<12x128xf32>
    %228 = arith.addf %222, %227 : vector<12x128xf32>
    %c10_208 = arith.constant 10 : index
    %c0_209 = arith.constant 0 : index
    %229 = tpu.strided_load %arg16[%c10_208, %c0_209] {strides = array<i32: 2, 1>} : memref<39x128xf32, #tpu.memory_space<vmem>>, vector<12x128xf32>
    %230 = arith.truncf %229 : vector<12x128xf32> to vector<12x128xbf16>
    %c10_210 = arith.constant 10 : index
    %c0_211 = arith.constant 0 : index
    %c0_212 = arith.constant 0 : index
    %231 = vector.load %arg6[%c10_210, %c0_211, %c0_212] : memref<16x128x128xbf16, #tpu.memory_space<vmem>>, vector<1x128x128xbf16>
    %232 = vector.shape_cast %231 : vector<1x128x128xbf16> to vector<128x128xbf16>
    %cst_213 = arith.constant dense<0.000000e+00> : vector<12x128xf32>
    %233 = tpu.matmul %230, %232, %cst_213 {dimension_numbers = #tpu.dot_dimension_numbers<[1], [0], [0], [1], [0, 0, 1, 1], [], []>} : vector<12x128xbf16>, vector<128x128xbf16>, vector<12x128xf32> -> vector<12x128xf32>
    %234 = arith.addf %228, %233 : vector<12x128xf32>
    %c11_214 = arith.constant 11 : index
    %c0_215 = arith.constant 0 : index
    %235 = tpu.strided_load %arg16[%c11_214, %c0_215] {strides = array<i32: 2, 1>} : memref<39x128xf32, #tpu.memory_space<vmem>>, vector<12x128xf32>
    %236 = arith.truncf %235 : vector<12x128xf32> to vector<12x128xbf16>
    %c11_216 = arith.constant 11 : index
    %c0_217 = arith.constant 0 : index
    %c0_218 = arith.constant 0 : index
    %237 = vector.load %arg6[%c11_216, %c0_217, %c0_218] : memref<16x128x128xbf16, #tpu.memory_space<vmem>>, vector<1x128x128xbf16>
    %238 = vector.shape_cast %237 : vector<1x128x128xbf16> to vector<128x128xbf16>
    %cst_219 = arith.constant dense<0.000000e+00> : vector<12x128xf32>
    %239 = tpu.matmul %236, %238, %cst_219 {dimension_numbers = #tpu.dot_dimension_numbers<[1], [0], [0], [1], [0, 0, 1, 1], [], []>} : vector<12x128xbf16>, vector<128x128xbf16>, vector<12x128xf32> -> vector<12x128xf32>
    %240 = arith.addf %234, %239 : vector<12x128xf32>
    %c12_220 = arith.constant 12 : index
    %c0_221 = arith.constant 0 : index
    %241 = tpu.strided_load %arg16[%c12_220, %c0_221] {strides = array<i32: 2, 1>} : memref<39x128xf32, #tpu.memory_space<vmem>>, vector<12x128xf32>
    %242 = arith.truncf %241 : vector<12x128xf32> to vector<12x128xbf16>
    %c12_222 = arith.constant 12 : index
    %c0_223 = arith.constant 0 : index
    %c0_224 = arith.constant 0 : index
    %243 = vector.load %arg6[%c12_222, %c0_223, %c0_224] : memref<16x128x128xbf16, #tpu.memory_space<vmem>>, vector<1x128x128xbf16>
    %244 = vector.shape_cast %243 : vector<1x128x128xbf16> to vector<128x128xbf16>
    %cst_225 = arith.constant dense<0.000000e+00> : vector<12x128xf32>
    %245 = tpu.matmul %242, %244, %cst_225 {dimension_numbers = #tpu.dot_dimension_numbers<[1], [0], [0], [1], [0, 0, 1, 1], [], []>} : vector<12x128xbf16>, vector<128x128xbf16>, vector<12x128xf32> -> vector<12x128xf32>
    %246 = arith.addf %240, %245 : vector<12x128xf32>
    %c13_226 = arith.constant 13 : index
    %c0_227 = arith.constant 0 : index
    %247 = tpu.strided_load %arg16[%c13_226, %c0_227] {strides = array<i32: 2, 1>} : memref<39x128xf32, #tpu.memory_space<vmem>>, vector<12x128xf32>
    %248 = arith.truncf %247 : vector<12x128xf32> to vector<12x128xbf16>
    %c13_228 = arith.constant 13 : index
    %c0_229 = arith.constant 0 : index
    %c0_230 = arith.constant 0 : index
    %249 = vector.load %arg6[%c13_228, %c0_229, %c0_230] : memref<16x128x128xbf16, #tpu.memory_space<vmem>>, vector<1x128x128xbf16>
    %250 = vector.shape_cast %249 : vector<1x128x128xbf16> to vector<128x128xbf16>
    %cst_231 = arith.constant dense<0.000000e+00> : vector<12x128xf32>
    %251 = tpu.matmul %248, %250, %cst_231 {dimension_numbers = #tpu.dot_dimension_numbers<[1], [0], [0], [1], [0, 0, 1, 1], [], []>} : vector<12x128xbf16>, vector<128x128xbf16>, vector<12x128xf32> -> vector<12x128xf32>
    %252 = arith.addf %246, %251 : vector<12x128xf32>
    %c14_232 = arith.constant 14 : index
    %c0_233 = arith.constant 0 : index
    %253 = tpu.strided_load %arg16[%c14_232, %c0_233] {strides = array<i32: 2, 1>} : memref<39x128xf32, #tpu.memory_space<vmem>>, vector<12x128xf32>
    %254 = arith.truncf %253 : vector<12x128xf32> to vector<12x128xbf16>
    %c14_234 = arith.constant 14 : index
    %c0_235 = arith.constant 0 : index
    %c0_236 = arith.constant 0 : index
    %255 = vector.load %arg6[%c14_234, %c0_235, %c0_236] : memref<16x128x128xbf16, #tpu.memory_space<vmem>>, vector<1x128x128xbf16>
    %256 = vector.shape_cast %255 : vector<1x128x128xbf16> to vector<128x128xbf16>
    %cst_237 = arith.constant dense<0.000000e+00> : vector<12x128xf32>
    %257 = tpu.matmul %254, %256, %cst_237 {dimension_numbers = #tpu.dot_dimension_numbers<[1], [0], [0], [1], [0, 0, 1, 1], [], []>} : vector<12x128xbf16>, vector<128x128xbf16>, vector<12x128xf32> -> vector<12x128xf32>
    %258 = arith.addf %252, %257 : vector<12x128xf32>
    %c15_238 = arith.constant 15 : index
    %c0_239 = arith.constant 0 : index
    %259 = tpu.strided_load %arg16[%c15_238, %c0_239] {strides = array<i32: 2, 1>} : memref<39x128xf32, #tpu.memory_space<vmem>>, vector<12x128xf32>
    %260 = arith.truncf %259 : vector<12x128xf32> to vector<12x128xbf16>
    %c15_240 = arith.constant 15 : index
    %c0_241 = arith.constant 0 : index
    %c0_242 = arith.constant 0 : index
    %261 = vector.load %arg6[%c15_240, %c0_241, %c0_242] : memref<16x128x128xbf16, #tpu.memory_space<vmem>>, vector<1x128x128xbf16>
    %262 = vector.shape_cast %261 : vector<1x128x128xbf16> to vector<128x128xbf16>
    %cst_243 = arith.constant dense<0.000000e+00> : vector<12x128xf32>
    %263 = tpu.matmul %260, %262, %cst_243 {dimension_numbers = #tpu.dot_dimension_numbers<[1], [0], [0], [1], [0, 0, 1, 1], [], []>} : vector<12x128xbf16>, vector<128x128xbf16>, vector<12x128xf32> -> vector<12x128xf32>
    %264 = arith.addf %258, %263 : vector<12x128xf32>
    %c0_244 = arith.constant 0 : index
    %c0_245 = arith.constant 0 : index
    %265 = vector.load %arg7[%c0_244, %c0_245] : memref<1x128xf32, #tpu.memory_space<vmem>>, vector<1x128xf32>
    %266 = vector.broadcast %265 : vector<1x128xf32> to vector<12x128xf32>
    %267 = arith.addf %264, %266 : vector<12x128xf32>
    %cst_246 = arith.constant 0.000000e+00 : f32
    %268 = vector.broadcast %cst_246 : f32 to vector<12x128xf32>
    %269 = arith.maximumf %267, %268 : vector<12x128xf32>
    %c0_247 = arith.constant 0 : index
    %c0_248 = arith.constant 0 : index
    %270 = vector.load %arg17[%c0_247, %c0_248] : memref<12x128xf32, #tpu.memory_space<vmem>>, vector<12x128xf32>
    tpu.vector_store %arg17[%c0_247, %c0_248], %269 {strides = array<i32>} : memref<12x128xf32, #tpu.memory_space<vmem>>, vector<12x128xf32>,
    %c0_249 = arith.constant 0 : index
    %c0_250 = arith.constant 0 : index
    %271 = tpu.strided_load %arg17[%c0_249, %c0_250] {strides = array<i32: 2, 1>} : memref<12x128xf32, #tpu.memory_space<vmem>>, vector<5x128xf32>
    %c1_251 = arith.constant 1 : index
    %c0_252 = arith.constant 0 : index
    %272 = tpu.strided_load %arg17[%c1_251, %c0_252] {strides = array<i32: 2, 1>} : memref<12x128xf32, #tpu.memory_space<vmem>>, vector<5x128xf32>
    %c2_253 = arith.constant 2 : index
    %c0_254 = arith.constant 0 : index
    %273 = tpu.strided_load %arg17[%c2_253, %c0_254] {strides = array<i32: 2, 1>} : memref<12x128xf32, #tpu.memory_space<vmem>>, vector<5x128xf32>
    %274 = arith.maximumf %271, %272 : vector<5x128xf32>
    %275 = arith.maximumf %274, %273 : vector<5x128xf32>
    %276 = arith.truncf %275 : vector<5x128xf32> to vector<5x128xbf16>
    %cst_255 = arith.constant 0.000000e+00 : f32
    %277 = vector.broadcast %cst_255 : f32 to vector<1x256xf32>
    %278 = vector.extract_strided_slice %276 {offsets = [0, 0], sizes = [1, 128], strides = [1, 1]} : vector<5x128xbf16> to vector<1x128xbf16>
    %c0_256 = arith.constant 0 : index
    %c0_257 = arith.constant 0 : index
    %c0_258 = arith.constant 0 : index
    %279 = vector.load %arg8[%c0_256, %c0_257, %c0_258] : memref<5x128x256xbf16, #tpu.memory_space<vmem>>, vector<1x128x256xbf16>
    %280 = vector.shape_cast %279 : vector<1x128x256xbf16> to vector<128x256xbf16>
    %cst_259 = arith.constant dense<0.000000e+00> : vector<1x256xf32>
    %281 = tpu.matmul %278, %280, %cst_259 {dimension_numbers = #tpu.dot_dimension_numbers<[1], [0], [0], [1], [0, 0, 1, 1], [], []>} : vector<1x128xbf16>, vector<128x256xbf16>, vector<1x256xf32> -> vector<1x256xf32>
    %282 = arith.addf %277, %281 : vector<1x256xf32>
    %283 = vector.extract_strided_slice %276 {offsets = [1, 0], sizes = [1, 128], strides = [1, 1]} : vector<5x128xbf16> to vector<1x128xbf16>
    %c1_260 = arith.constant 1 : index
    %c0_261 = arith.constant 0 : index
    %c0_262 = arith.constant 0 : index
    %284 = vector.load %arg8[%c1_260, %c0_261, %c0_262] : memref<5x128x256xbf16, #tpu.memory_space<vmem>>, vector<1x128x256xbf16>
    %285 = vector.shape_cast %284 : vector<1x128x256xbf16> to vector<128x256xbf16>
    %cst_263 = arith.constant dense<0.000000e+00> : vector<1x256xf32>
    %286 = tpu.matmul %283, %285, %cst_263 {dimension_numbers = #tpu.dot_dimension_numbers<[1], [0], [0], [1], [0, 0, 1, 1], [], []>} : vector<1x128xbf16>, vector<128x256xbf16>, vector<1x256xf32> -> vector<1x256xf32>
    %287 = arith.addf %282, %286 : vector<1x256xf32>
    %288 = vector.extract_strided_slice %276 {offsets = [2, 0], sizes = [1, 128], strides = [1, 1]} : vector<5x128xbf16> to vector<1x128xbf16>
    %c2_264 = arith.constant 2 : index
    %c0_265 = arith.constant 0 : index
    %c0_266 = arith.constant 0 : index
    %289 = vector.load %arg8[%c2_264, %c0_265, %c0_266] : memref<5x128x256xbf16, #tpu.memory_space<vmem>>, vector<1x128x256xbf16>
    %290 = vector.shape_cast %289 : vector<1x128x256xbf16> to vector<128x256xbf16>
    %cst_267 = arith.constant dense<0.000000e+00> : vector<1x256xf32>
    %291 = tpu.matmul %288, %290, %cst_267 {dimension_numbers = #tpu.dot_dimension_numbers<[1], [0], [0], [1], [0, 0, 1, 1], [], []>} : vector<1x128xbf16>, vector<128x256xbf16>, vector<1x256xf32> -> vector<1x256xf32>
    %292 = arith.addf %287, %291 : vector<1x256xf32>
    %293 = vector.extract_strided_slice %276 {offsets = [3, 0], sizes = [1, 128], strides = [1, 1]} : vector<5x128xbf16> to vector<1x128xbf16>
    %c3_268 = arith.constant 3 : index
    %c0_269 = arith.constant 0 : index
    %c0_270 = arith.constant 0 : index
    %294 = vector.load %arg8[%c3_268, %c0_269, %c0_270] : memref<5x128x256xbf16, #tpu.memory_space<vmem>>, vector<1x128x256xbf16>
    %295 = vector.shape_cast %294 : vector<1x128x256xbf16> to vector<128x256xbf16>
    %cst_271 = arith.constant dense<0.000000e+00> : vector<1x256xf32>
    %296 = tpu.matmul %293, %295, %cst_271 {dimension_numbers = #tpu.dot_dimension_numbers<[1], [0], [0], [1], [0, 0, 1, 1], [], []>} : vector<1x128xbf16>, vector<128x256xbf16>, vector<1x256xf32> -> vector<1x256xf32>
    %297 = arith.addf %292, %296 : vector<1x256xf32>
    %298 = vector.extract_strided_slice %276 {offsets = [4, 0], sizes = [1, 128], strides = [1, 1]} : vector<5x128xbf16> to vector<1x128xbf16>
    %c4_272 = arith.constant 4 : index
    %c0_273 = arith.constant 0 : index
    %c0_274 = arith.constant 0 : index
    %299 = vector.load %arg8[%c4_272, %c0_273, %c0_274] : memref<5x128x256xbf16, #tpu.memory_space<vmem>>, vector<1x128x256xbf16>
    %300 = vector.shape_cast %299 : vector<1x128x256xbf16> to vector<128x256xbf16>
    %cst_275 = arith.constant dense<0.000000e+00> : vector<1x256xf32>
    %301 = tpu.matmul %298, %300, %cst_275 {dimension_numbers = #tpu.dot_dimension_numbers<[1], [0], [0], [1], [0, 0, 1, 1], [], []>} : vector<1x128xbf16>, vector<128x256xbf16>, vector<1x256xf32> -> vector<1x256xf32>
    %302 = arith.addf %297, %301 : vector<1x256xf32>
    %c0_276 = arith.constant 0 : index
    %c0_277 = arith.constant 0 : index
    %303 = vector.load %arg9[%c0_276, %c0_277] : memref<1x256xf32, #tpu.memory_space<vmem>>, vector<1x256xf32>
    %304 = arith.addf %302, %303 : vector<1x256xf32>
    %cst_278 = arith.constant 0.000000e+00 : f32
    %305 = vector.broadcast %cst_278 : f32 to vector<1x256xf32>
    %306 = arith.maximumf %304, %305 : vector<1x256xf32>
    %307 = arith.truncf %306 : vector<1x256xf32> to vector<1x256xbf16>
    %c0_279 = arith.constant 0 : index
    %c0_280 = arith.constant 0 : index
    %308 = vector.load %arg10[%c0_279, %c0_280] : memref<256x128xbf16, #tpu.memory_space<vmem>>, vector<256x128xbf16>
    %cst_281 = arith.constant dense<0.000000e+00> : vector<1x128xf32>
    %309 = tpu.matmul %307, %308, %cst_281 {dimension_numbers = #tpu.dot_dimension_numbers<[1], [0], [0], [1], [0, 0, 1, 1], [], []>} : vector<1x256xbf16>, vector<256x128xbf16>, vector<1x128xf32> -> vector<1x128xf32>
    %c0_282 = arith.constant 0 : index
    %c0_283 = arith.constant 0 : index
    %310 = vector.load %arg11[%c0_282, %c0_283] : memref<1x128xf32, #tpu.memory_space<vmem>>, vector<1x128xf32>
    %311 = arith.addf %309, %310 : vector<1x128xf32>
    %cst_284 = arith.constant dense<0xFF800000> : vector<1xf32>
    %312 = vector.multi_reduction <maximumf>, %311, %cst_284 [1] : vector<1x128xf32> to vector<1xf32>
    %313 = vector.shape_cast %312 : vector<1xf32> to vector<1x1xf32>
    %314 = vector.broadcast %313 : vector<1x1xf32> to vector<1x128xf32>
    %315 = arith.subf %311, %314 : vector<1x128xf32>
    %316 = math.exp %315 : vector<1x128xf32>
    %cst_285 = arith.constant dense<0.000000e+00> : vector<1xf32>
    %317 = vector.multi_reduction <add>, %316, %cst_285 [1] : vector<1x128xf32> to vector<1xf32>
    %318 = vector.shape_cast %317 : vector<1xf32> to vector<1x1xf32>
    %319 = math.log %318 : vector<1x1xf32>
    %320 = vector.broadcast %319 : vector<1x1xf32> to vector<1x128xf32>
    %321 = arith.subf %315, %320 : vector<1x128xf32>
    %c0_286 = arith.constant 0 : index
    %c0_287 = arith.constant 0 : index
    %c0_288 = arith.constant 0 : index
    %322 = vector.load %arg12[%c0_286, %c0_287, %c0_288] : memref<1x1x128xf32, #tpu.memory_space<vmem>>, vector<1x1x128xf32>
    %323 = vector.shape_cast %322 : vector<1x1x128xf32> to vector<1x128xf32>
    %324 = vector.shape_cast %321 : vector<1x128xf32> to vector<1x1x128xf32>
    tpu.vector_store %arg12[%c0_286, %c0_287, %c0_288], %324 {strides = array<i32>} : memref<1x1x128xf32, #tpu.memory_space<vmem>>, vector<1x1x128xf32>,
    return
  }
  func.func @transform_0(%arg0: i32) -> (i32, i32, i32) {
    %c0_i32 = arith.constant 0 : i32
    %c0_i32_0 = arith.constant 0 : i32
    %c0_i32_1 = arith.constant 0 : i32
    return %arg0, %c0_i32, %c0_i32_0 : i32, i32, i32
  }
  func.func @transform_1(%arg0: i32) -> (i32, i32, i32) {
    %c0_i32 = arith.constant 0 : i32
    %c0_i32_0 = arith.constant 0 : i32
    %c0_i32_1 = arith.constant 0 : i32
    %c0_i32_2 = arith.constant 0 : i32
    return %c0_i32, %c0_i32_0, %c0_i32_1 : i32, i32, i32
  }
  func.func @transform_2(%arg0: i32) -> (i32, i32) {
    %c0_i32 = arith.constant 0 : i32
    %c0_i32_0 = arith.constant 0 : i32
    %c0_i32_1 = arith.constant 0 : i32
    return %c0_i32, %c0_i32_0 : i32, i32
  }
  func.func @transform_3(%arg0: i32) -> (i32, i32, i32) {
    %c0_i32 = arith.constant 0 : i32
    %c0_i32_0 = arith.constant 0 : i32
    %c0_i32_1 = arith.constant 0 : i32
    %c0_i32_2 = arith.constant 0 : i32
    return %c0_i32, %c0_i32_0, %c0_i32_1 : i32, i32, i32
  }
  func.func @transform_4(%arg0: i32) -> (i32, i32) {
    %c0_i32 = arith.constant 0 : i32
    %c0_i32_0 = arith.constant 0 : i32
    %c0_i32_1 = arith.constant 0 : i32
    return %c0_i32, %c0_i32_0 : i32, i32
  }
  func.func @transform_5(%arg0: i32) -> (i32, i32, i32) {
    %c0_i32 = arith.constant 0 : i32
    %c0_i32_0 = arith.constant 0 : i32
    %c0_i32_1 = arith.constant 0 : i32
    %c0_i32_2 = arith.constant 0 : i32
    return %c0_i32, %c0_i32_0, %c0_i32_1 : i32, i32, i32
  }
  func.func @transform_6(%arg0: i32) -> (i32, i32) {
    %c0_i32 = arith.constant 0 : i32
    %c0_i32_0 = arith.constant 0 : i32
    %c0_i32_1 = arith.constant 0 : i32
    return %c0_i32, %c0_i32_0 : i32, i32
  }
  func.func @transform_7(%arg0: i32) -> (i32, i32, i32) {
    %c0_i32 = arith.constant 0 : i32
    %c0_i32_0 = arith.constant 0 : i32
    %c0_i32_1 = arith.constant 0 : i32
    %c0_i32_2 = arith.constant 0 : i32
    return %c0_i32, %c0_i32_0, %c0_i32_1 : i32, i32, i32
  }
  func.func @transform_8(%arg0: i32) -> (i32, i32) {
    %c0_i32 = arith.constant 0 : i32
    %c0_i32_0 = arith.constant 0 : i32
    %c0_i32_1 = arith.constant 0 : i32
    return %c0_i32, %c0_i32_0 : i32, i32
  }
  func.func @transform_9(%arg0: i32) -> (i32, i32) {
    %c0_i32 = arith.constant 0 : i32
    %c0_i32_0 = arith.constant 0 : i32
    %c0_i32_1 = arith.constant 0 : i32
    return %c0_i32, %c0_i32_0 : i32, i32
  }
  func.func @transform_10(%arg0: i32) -> (i32, i32) {
    %c0_i32 = arith.constant 0 : i32
    %c0_i32_0 = arith.constant 0 : i32
    %c0_i32_1 = arith.constant 0 : i32
    return %c0_i32, %c0_i32_0 : i32, i32
  }
  func.func @transform_11(%arg0: i32) -> (i32, i32, i32) {
    %c0_i32 = arith.constant 0 : i32
    %c0_i32_0 = arith.constant 0 : i32
    %c0_i32_1 = arith.constant 0 : i32
    return %arg0, %c0_i32, %c0_i32_0 : i32, i32, i32
  }
}

</mosaic_0001>

<bundles_post_ra>
// kernel: net_large_forward.1
= control target key start
LH: loop header
LB: loop body
LE: loop exit
PB: predicated region body
PF: predicated region fallthrough
CT: control target
= control target key end

     0   :  { %s6434_s0 = inlined_call_operand.vmem [shape: bf16[2,32,32], index: 0, kind: input, shape index: {}]   ;;  %s6435_s1 = inlined_call_operand.hbm [shape: bf16[8,32,64], index: 1, kind: input, shape index: {}]   ;;  %s6436_s2 = inlined_call_operand.vmem [shape: f32[1,64], index: 2, kind: input, shape index: {}]   ;;  %s6437_s3 = inlined_call_operand.hbm [shape: bf16[16,64,128], index: 3, kind: input, shape index: {}]   ;;  %s6438_s4 = inlined_call_operand.vmem [shape: f32[1,128], index: 4, kind: input, shape index: {}]   ;;  %s6439_s5 = inlined_call_operand.hbm [shape: bf16[16,128,128], index: 5, kind: input, shape index: {}]   ;;  %s6440_s6 = inlined_call_operand.vmem [shape: f32[1,128], index: 6, kind: input, shape index: {}]   ;;  %s6441_s7 = inlined_call_operand.hbm [shape: bf16[5,128,256], index: 7, kind: input, shape index: {}]   ;;  %s6442_s8 = inlined_call_operand.vmem [shape: f32[1,256], index: 8, kind: input, shape index: {}]   ;;  %s6443_s9 = inlined_call_operand.hbm [shape: bf16[256,128], index: 9, kind: input, shape index: {}]   ;;  %s6444_s10 = inlined_call_operand.vmem [shape: f32[1,128], index: 10, kind: input, shape index: {}]   ;;  %s6445_s11 = inlined_call_operand.hbm [shape: f32[2,1,128], index: 11, kind: output, shape index: {}]  }
   0x1   :  { %6454 = sst [smem:[#allocation28_spill]] %s6437_s3 }
   0x2   :  { %6455 = sst [smem:[#allocation29_spill]] %s6441_s7 }
   0x3   :  { %16 = vsyncpa [#allocation8], 0 }
   0x4   :  { %17 = vsyncpa [#allocation11], 0 }
   0x5   :  { %18 = vsyncpa [#allocation14], 0 }
   0x6   :  { %19 = vsyncpa [#allocation9], 0 }
   0x7   :  { %21 = vsyncpa [#allocation9 + $0x1], 0  ;;  %s6162_s17 = smov 0   ;;  %s6164_s18 = smov 0  }
   0x8   :  { %s6166_s19 = smov 0   ;;  %s6168_s20 = smov 0  }
   0x9 LB: > { %6456 = sst [smem:[#allocation21_spill]] %s6078_s17  ;;  %s6183_s21 = sadd.s32 4294967295, %s6090_s20   ;;  %s6090_s20 = sphi %s6168_s20, %s6473_s20   ;;  %s6086_s19 = sphi %s6166_s19, %s6475_s19   ;;  %s6082_s18 = sphi %s6164_s18, %s6477_s18   ;;  %s6078_s17 = sphi %s6162_s17, %s6476_s17  }
   0xa   : > { %6457 = sst [smem:[#allocation22_spill]] %s6086_s19  ;;  %s4183_s22 = sadd.s32 4294967294, %s6090_s20  }
   0xb   : > { %6458 = sst [smem:[#allocation23_spill]] %s6090_s20  ;;  %s6187_s23 = sadd.s32 1, %s6090_s20  }
   0xc   : > { %6459 = sst [smem:[#allocation24_spill]] %s6187_s23  ;;  %s270_s24 = sadd.s32 1, %s6086_s19 }
   0xd   : > { %s267_s25 = ssub.s32 %s6090_s20, %s6187_s23  ;;  %p280_p0 = scmp.ne.s32.totalorder %s6086_s19, %s6082_s18 }
   0xe   : > { %p268_p1 = scmp.eq.s32.totalorder %s267_s25, 0  ;;  %p281_p2 = scmp.eq.s32.totalorder %s6183_s21, 1 }
   0xf   : > { %p286_p3 = scmp.ne.s32.totalorder %s6082_s18, %s6078_s17  ;;  %p287_p4 = scmp.eq.s32.totalorder %s4183_s22, 1 }
  0x10   : > { %s6198_s26 = scalar_select %p268_p1, %s6086_s19, %s270_s24  }
  0x11   : > { %p6200_p5 = por %p281_p2, %p280_p0  ;;  %p6204_p6 = por %p287_p4, %p286_p3 }
  0x12   : > { %6460 = sst [smem:[#allocation25_spill]] %s6198_s26  ;;  %p4184_p7 = scmp.ge.s32.totalorder %s6090_s20, 1 }
  0x13   : > { %s6461_s27 = scalar_select %p6200_p5, 1, 0 }
  0x14   : > { %s6463_s28 = scalar_select %p6204_p6, 1, 0 }
  0x15   : > { %6462 = sst [smem:[#allocation26_spill]] %s6461_s27  ;;  %p294_p8 = scmp.lt.s32.totalorder %s6090_s20, 3 }
  0x16   : > { %6464 = sst [smem:[#allocation27_spill]] %s6463_s28  ;;  %p5806_p9 = scmp.eq.s32.totalorder %s6183_s21, 0 }
  0x17   : > { %p6211_p10 = pnand %p4184_p7, %p294_p8  ;;  %s6466_s3 = sld [smem:[#allocation28_spill]] }
  0x18   : > { %s6467_s7 = sld [smem:[#allocation29_spill]]  ;;  %s6092_s24 = smov [#allocation10]  }
  0x19   : > { %p5786_p11 = pneg %p6211_p10  ;;  %s324_s25 = sshll.u32 %s6092_s24, 4  ;;  %s325_s25 = int_to_ptr.vmem [resolvable:$true] %s324_s25 }
  0x1a   : > { %s6093_s30 = smov 64   ;;  %s6094_s12 = smov 4  }
  0x1b   : > { %p6225_p12 = pnand %p5806_p9, %p5786_p11  ;;  %s6096_s14 = smov 128  }
  0x1c   : > { %s6097_s15 = smov 8   ;;  %s305_s23 = sshll.u32 %s6435_s1, 4  ;;  %s306_s23 = int_to_ptr.hbm [resolvable:$true] %s305_s23 }
  0x1d   : > { %s322_s13 = sshll.u32 %s6466_s3, 4  ;;  %s6095_s3 = smov [#allocation13]   ;;  %s323_s13 = int_to_ptr.hbm [resolvable:$true] %s322_s13 }
  0x1e   : > { %s356_s16 = sshll.u32 %s6467_s7, 4  ;;  %s358_s26 = sshll.u32 %s6095_s3, 4  ;;  %s357_s16 = int_to_ptr.hbm [resolvable:$true] %s356_s16  ;;  %s359_s26 = int_to_ptr.vmem [resolvable:$true] %s358_s26 }
  0x1f   : > { %5792 = dma.hbm_to_vmem [thread:$0]  (!%p6225_p12), %s323_s13, 8192, %s325_s25, [#allocation11], %s6093_s30, %s6093_s30, %s6094_s12  }
  0x20   : > { %5798 = dma.hbm_to_vmem [thread:$0]  (!%p6225_p12), %s357_s16, 10240, %s359_s26, [#allocation14], %s6096_s14, %s6096_s14, %s6097_s15  }
  0x21   : > { %s6098_s24 = smov [#allocation7]   ;;  %s339_s13 = sshll.u32 %s6439_s5, 4  ;;  %s340_s13 = int_to_ptr.hbm [resolvable:$true] %s339_s13 }
  0x22   : > { %s307_s28 = sshll.u32 %s6098_s24, 4  ;;  %s6099_s3 = smov [#allocation12]   ;;  %s308_s28 = int_to_ptr.vmem [resolvable:$true] %s307_s28 }
  0x23   : > { %5789 = dma.hbm_to_vmem [thread:$0]  (!%p6225_p12), %s306_s23, 2048, %s308_s28, [#allocation8], %s6093_s30, %s6093_s30, %s6094_s12  }
  0x24   : > { %s341_s25 = sshll.u32 %s6099_s3, 4  ;;  %s373_s16 = sshll.u32 %s6443_s9, 4  ;;  %s342_s25 = int_to_ptr.vmem [resolvable:$true] %s341_s25  ;;  %s374_s16 = int_to_ptr.hbm [resolvable:$true] %s373_s16 }
  0x25   : > { %5795 = dma.hbm_to_vmem [thread:$0]  (!%p6225_p12), %s340_s13, 16384, %s342_s25, [#allocation11], %s6093_s30, %s6093_s30, %s6094_s12  }
  0x26   : > { %s6100_s7 = smov [#allocation15]   ;;  %402 = sbr.rel (%p6211_p10) target bundleno = 1291 (0x50b), region = 64 }
  0x27   : > { %s375_s19 = sshll.u32 %s6100_s7, 4  ;;  %s376_s19 = int_to_ptr.vmem [resolvable:$true] %s375_s19 }
  0x28   : > { %5801 = dma.hbm_to_vmem [thread:$0]  (!%p6225_p12), %s374_s16, 2048, %s376_s19, [#allocation14], %s6093_s30, %s6093_s30, %s6094_s12  }
  0x2b   : > { %6061 = dma.done.wait (%p5806_p9), [#allocation8], 2048  }
  0x2c   : > { %6063 = vsyncadd (%p5806_p9), [#allocation8], 4294965248 }
  0x2d   : > { %6065 = dma.done.wait (%p5806_p9), [#allocation11], 24576  }
  0x2e   : > { %6067 = vsyncadd (%p5806_p9), [#allocation11], 4294942720 }
  0x2f   : > { %6069 = dma.done.wait (%p5806_p9), [#allocation14], 12288  }
  0x30   : > { %6071 = vsyncadd (%p5806_p9), [#allocation14], 4294955008  ;;  %p462_p13 = scmp.lt.s32.totalorder %s6183_s21, 1  ;;  %v5463_v0 = vld [vmem:[#allocation7 + $0x18] sm:$0xff]  ;;  %v5461_v1 = vld [vmem:[#allocation7 + $0x8] sm:$0xff]  ;;  %vm585_vm1 = vcmask 1046528  }
  0x31   : > { %v5465_v2 = vld [vmem:[#allocation7 + $0x28] sm:$0xff]  ;;  %v5467_v3 = vld [vmem:[#allocation7 + $0x38] sm:$0xff]  ;;  %532 = vmatpush.bf16.msra.mxu0 %v5463_v0  ;;  %567 = vmatpush.bf16.msra.mxu1 %v5461_v1  ;;  %v5462_v4 = vld [vmem:[#allocation7 + $0x10] sm:$0xff]  ;;  %vm491_vm0 = vsmask.f32 7424  ;;  %vm519_vm2 = vcmask 261120  }
  0x32   : > { %s463_s17 = scalar_select %p462_p13, %s6183_s21, 1  ;;  %v5460_v5 = vld [vmem:[#allocation7] sm:$0xff]  ;;  %613 = vmatpush.bf16.msra.mxu2 %v5465_v2  ;;  %667 = vmatpush.bf16.msra.mxu3 %v5467_v3  ;;  %v5466_v8 = vld [vmem:[#allocation7 + $0x30] sm:$0xff]  ;;  %v5473_v13 = vld [vmem:[#allocation7 + $0x68] sm:$0xff]  ;;  %vm635_vm3 = vsmask.f32 6400 }
  0x33   : > { %v5464_v7 = vld [vmem:[#allocation7 + $0x20] sm:$0xff]  ;;  %v5469_v14 = vld [vmem:[#allocation7 + $0x48] sm:$0xff]  ;;  %v5475_v18 = vld [vmem:[#allocation7 + $0x78] sm:$0xff]  ;;  %vm739_vm4 = vsmask.f32 5376  ;;  %vm793_vm5 = vcmask 1044480  }
  0x34   : > { %s5457_s20 = sshll.u32 %s463_s17, 4  ;;  %v5471_v22 = vld [vmem:[#allocation7 + $0x58] sm:$0xff]  ;;  %v5472_v29 = vld [vmem:[#allocation7 + $0x60] sm:$0xff]  ;;  %v5474_v32 = vld [vmem:[#allocation7 + $0x70] sm:$0xff]  ;;  %vm689_vm6 = vcmask 1045504   ;;  %vm904_vm8 = vcmask 523264   ;;  %s4074_s17 = scalar_lea.hbm %s6445_s11, %s6183_s21 }
  0x35   : > { %s466_s28 = scalar_lea.vmem %s6434_s0, %s5457_s20  ;;  %533 = vmatpush.bf16.msra.mxu0 %v5462_v4  ;;  %568 = vmatpush.bf16.msra.mxu1 %v5460_v5  ;;  %v5468_v31 = vld [vmem:[#allocation7 + $0x40] sm:$0xff]  ;;  %v5470_v34 = vld [vmem:[#allocation7 + $0x50] sm:$0xff]  ;;  %vm843_vm7 = vsmask.f32 4352  ;;  %vm915_vm9 = vcmask 519168   ;;  %vm908_vm10 = vcmask 516096  }
  0x36   : > { %v6267_v6 = vld [vmem:[%s466_s28] sm:$0xff]  ;;  %v6269_v9 = vld [vmem:[%s466_s28 + $0x8] sm:$0xff]  ;;  %614 = vmatpush.bf16.msra.mxu2 %v5464_v7  ;;  %668 = vmatpush.bf16.msra.mxu3 %v5466_v8  ;;  %vm4051_vm11 = vcmask 1040384   ;;  %s460_s26 = sand.u32 1, %s6082_s18   ;;  %s4078_s27 = sshll.u32 %s4074_s17, 4  ;;  %s4079_s27 = int_to_ptr.hbm [resolvable:$true] %s4078_s27 }
  0x37   : > { %v6272_v10 = vshrl.u32 %v6267_v6, 16  ;;  %v6275_v11 = vshll.u32 %v6267_v6, 16  ;;  %v586_v12 = vrot.slane %v6267_v6, 1  ;;  %v6279_v15 = vshll.u32 %v6269_v9, 16  ;;  %s461_s20 = scalar_lea.vmem [#allocation16], %s460_s26  ;;  %s4066_s28 = scalar_lea.sflag [#allocation9], %s460_s26 }
  0x38   : > { %v587_v16 = vrot.slane %v6269_v9, 1  ;;  %v504_v17 = vshrl.u32 %v6269_v9, 16  ;;  %4225 = vmatmul.msk.bf16.vlgmr.msra.gmra.mxu1 %vm519_vm2, %v6267_v6  ;;  %v794_v47 = vrot.slane %v6267_v6, 3  ;;  %v795_v48 = vrot.slane %v6269_v9, 3  ;;  %s4076_s23 = sshll.u32 %s461_s20, 4  ;;  %s6030_s29 = sshra.s32 %s4079_s27, 4  ;;  %s4077_s23 = int_to_ptr.vmem [resolvable:$true] %s4076_s23  ;;  %s6031_s29 = int_to_ptr.hbm [resolvable:$true] %s6030_s29 }
  0x39   : > { %v497_v19 = vrot.slane %v6275_v11, 1  ;;  %v636_v20 = vrot.slane %v6272_v10, 1  ;;  %v637_v21 = vrot.slane %v6275_v11, 2  ;;  %v502_v23 = vrot.slane %v6279_v15, 1  ;;  %717 = vmatpush.bf16.msrb.mxu0 %v5469_v14  ;;  %771 = vmatpush.bf16.msrb.mxu1 %v5471_v22  ;;  %s6032_s22 = scalar_lea.hbm %s6031_s29, 1  ;;  %s6036_s21 = scalar_lea.hbm %s6445_s11, 2 }
  0x3a   : > { %v588_v24 = vsel %vm585_vm1, %v586_v12, %v587_v16  ;;  %v639_v25 = vrot.slane %v504_v17, 1  ;;  %v640_v26 = vrot.slane %v6279_v15, 2  ;;  %821 = vmatpush.bf16.msrb.mxu2 %v5473_v13  ;;  %875 = vmatpush.bf16.msrb.mxu3 %v5475_v18  ;;  %v740_v37 = vrot.slane %v6272_v10, 2  ;;  %p6033_p0 = scmp.ne.s32.totalorder %s6031_s29, %s6032_s22  ;;  %p6037_p3 = scmp.lt.s32.totalorder %s6031_s29, %s6445_s11 }
  0x3b   : > { %v498_v27 = vor.u32 %v497_v19, %v6272_v10  ;;  %v638_v28 = vor.u32 %v637_v21, %v636_v20  ;;  %4235 = vmatmul.msk.bf16.vlgmr.msra.gmra.mxu2 %vm519_vm2, %v588_v24  ;;  %v506_v36 = vor.u32 %v504_v17, %v502_v23  ;;  %v741_v38 = vrot.slane %v6275_v11, 3  ;;  %v6326_v20 = vld [vmem:[%s6436_s2] ss:$0 sm:$0xff]  ;;  %p6038_p4 = scmp.lt.s32.totalorder %s6036_s21, %s6032_s22 }
  0x3c   : > { %v641_v30 = vor.u32 %v640_v26, %v639_v25  ;;  %v743_v39 = vrot.slane %v504_v17, 2  ;;  %v744_v40 = vrot.slane %v6279_v15, 3  ;;  %v844_v41 = vrot.slane %v6272_v10, 3  ;;  %p6034_p1 = pnand %p6033_p0, %p6200_p5 }
  0x3d   : > { %v503_v33 = vsel %vm491_vm0, %v498_v27, %v502_v23  ;;  %718 = vmatpush.bf16.msrb.mxu0 %v5468_v31  ;;  %772 = vmatpush.bf16.msrb.mxu1 %v5470_v34  ;;  %v845_v42 = vrot.slane %v6275_v11, 4  ;;  %v847_v43 = vrot.slane %v504_v17, 3  ;;  %v848_v44 = vrot.slane %v6279_v15, 4  ;;  %v5487_v31 = vld [vmem:[#allocation10 + $0x58] sm:$0xff]  ;;  %p6039_p7 = por %p6038_p4, %p6037_p3 }
  0x3e   : > { %4215 = vmatmul.msk.bf16.vlgmr.msra.gmra.mxu0 %vm519_vm2, %v503_v33  ;;  %v642_v35 = vsel %vm635_vm3, %v638_v28, %v641_v30  ;;  %822 = vmatpush.bf16.msrb.mxu2 %v5472_v29  ;;  %v742_v45 = vor.u32 %v741_v38, %v740_v37  ;;  %v745_v46 = vor.u32 %v744_v40, %v743_v39  ;;  %v690_v49 = vrot.slane %v6267_v6, 2  ;;  %v5491_v33 = vld [vmem:[#allocation10 + $0x78] sm:$0xff]  ;;  %v5486_v39 = vld [vmem:[#allocation10 + $0x50] sm:$0xff]  ;;  %p6035_p2 = pneg %p6034_p1 }
  0x3f   : > { %4245 = vmatmul.msk.bf16.vlgmr.msra.gmra.mxu3 %vm519_vm2, %v642_v35  ;;  %v691_v50 = vrot.slane %v6269_v9, 2  ;;  %v846_v51 = vor.u32 %v845_v42, %v844_v41  ;;  %v849_v52 = vor.u32 %v848_v44, %v847_v43  ;;  %v796_v54 = vsel %vm793_vm5, %v794_v47, %v795_v48  ;;  %v5482_v40 = vld [vmem:[#allocation10 + $0x30] sm:$0xff] }
  0x40   : > { %876 = vmatpush.bf16.msrb.mxu3 %v5474_v32  ;;  %v746_v53 = vsel %vm739_vm4, %v742_v45, %v745_v46  ;;  %v6101_v28 = vmov 0.0   ;;  %v5483_v32 = vld [vmem:[#allocation10 + $0x38] sm:$0xff]  ;;  %v5478_v41 = vld [vmem:[#allocation10 + $0x10] sm:$0xff]  ;;  %p6040_p8 = pnand %p6039_p7, %p6035_p2 }
  0x41   : > { %v692_v55 = vsel %vm689_vm6, %v690_v49, %v691_v50  ;;  %v850_v56 = vsel %vm843_vm7, %v846_v51, %v849_v52  ;;  %910 = vst.msk [vmem:[#allocation3] sm:$0xff] %vm904_vm8, %v6101_v28  ;;  %991 = vmatpush.bf16.msra.mxu0 %v5483_v32  ;;  %v5490_v44 = vld [vmem:[#allocation10 + $0x70] sm:$0xff]  ;;  %v5485_v51 = vld [vmem:[#allocation10 + $0x48] sm:$0xff]  ;;  %v5496_v32 = vld [vmem:[#allocation10 + $0xa0] sm:$0xff] }
  0x42   : > { %911 = vst.msk [vmem:[#allocation3 + $0x8] sm:$0xff] %vm904_vm8, %v6101_v28  ;;  %1087 = vmatpush.bf16.msra.mxu2 %v5487_v31  ;;  %v5492_v31 = vld [vmem:[#allocation10 + $0x80] sm:$0xff] }
  0x43   : > { %912 = vst.msk [vmem:[#allocation3 + $0x10] sm:$0xff] %vm904_vm8, %v6101_v28 }
  0x44   : > { %913 = vst.msk [vmem:[#allocation3 + $0x18] sm:$0xff] %vm904_vm8, %v6101_v28  ;;  %1144 = vmatpush.bf16.msra.mxu3 %v5491_v33 }
  0x45   : > { %914 = vst.msk [vmem:[#allocation3 + $0x20] sm:$0xff] %vm904_vm8, %v6101_v28  ;;  %992 = vmatpush.bf16.msra.mxu0 %v5482_v40 }
  0x46   : > { %916 = vst.msk [vmem:[#allocation3 + $0x28] sm:$0xf] %vm915_vm9, %v6101_v28  ;;  %1088 = vmatpush.bf16.msra.mxu2 %v5486_v39 }
  0x47   : > { %1850 = vst [vmem:[#allocation5] sm:$0xff] %v6101_v28 }
  0x48   : > { %4226 = vmatmul.msk.bf16.gmra.mxu1 %vm519_vm2, %v6269_v9  ;;  %1851 = vst [vmem:[#allocation5 + $0x8] sm:$0xff] %v6101_v28  ;;  %1145 = vmatpush.bf16.msra.mxu3 %v5490_v44 }
  0x49   : > { %1852 = vst [vmem:[#allocation5 + $0x10] sm:$0xff] %v6101_v28 }
  0x4a   : > { %1853 = vst [vmem:[#allocation5 + $0x18] sm:$0xff] %v6101_v28  ;;  %1089 = vmatpush.bf16.msra.mxu2 %v5485_v51 }
  0x4b   : > { %4236 = vmatmul.msk.bf16.gmra.mxu2 %vm519_vm2, %v587_v16  ;;  %1854 = vst [vmem:[#allocation5 + $0x20] sm:$0x7f] %v6101_v28  ;;  %v5505_v28 = vld [vmem:[#allocation10 + $0xe8] sm:$0xff] }
  0x4e   : > { %4216 = vmatmul.msk.bf16.gmra.mxu0 %vm519_vm2, %v506_v36  ;;  %v5479_v36 = vld [vmem:[#allocation10 + $0x18] sm:$0xff] }
  0x4f   : > { %4246 = vmatmul.msk.bf16.gmra.mxu3 %vm519_vm2, %v641_v30  ;;  %1032 = vmatpush.bf16.msra.mxu1 %v5479_v36 }
  0x53   : > { %1033 = vmatpush.bf16.msra.mxu1 %v5478_v41  ;;  %v947_v41 = vld [vmem:[#allocation3 + $0x1] ss:$2 sm:$0xff] }
  0x58   : > { %4265 = vmatmul.msk.bf16.vlgmr.msrb.gmra.mxu1 %vm519_vm2, %v746_v53  ;;  %v5477_v53 = vld [vmem:[#allocation10 + $0x8] sm:$0xff] }
  0x59   : > { %1034 = vmatpush.bf16.msra.mxu1 %v5477_v53 }
  0x5b   : > { %4275 = vmatmul.msk.bf16.vlgmr.msrb.gmra.mxu2 %vm519_vm2, %v796_v54  ;;  %v5489_v54 = vld [vmem:[#allocation10 + $0x68] sm:$0xff] }
  0x5c   : > { %1146 = vmatpush.bf16.msra.mxu3 %v5489_v54 }
  0x5e   : > { %4255 = vmatmul.msk.bf16.vlgmr.msrb.gmra.mxu0 %vm519_vm2, %v692_v55 }
  0x5f   : > { %4285 = vmatmul.msk.bf16.vlgmr.msrb.gmra.mxu3 %vm519_vm2, %v850_v56 }
  0x68   : > { %4266 = vmatmul.msk.bf16.gmra.mxu1 %vm519_vm2, %v745_v46 }
  0x6b   : > { %4276 = vmatmul.msk.bf16.gmra.mxu2 %vm519_vm2, %v795_v48 }
  0x6e   : > { %4256 = vmatmul.msk.bf16.gmra.mxu0 %vm519_vm2, %v691_v50  ;;  %v5481_v50 = vld [vmem:[#allocation10 + $0x28] sm:$0xff] }
  0x6f   : > { %4286 = vmatmul.msk.bf16.gmra.mxu3 %vm519_vm2, %v849_v52  ;;  %993 = vmatpush.bf16.msra.mxu0 %v5481_v50 }
  0xb5   : > { %v570_v57 = vpop.f32.mrf.mxu1 }
  0xbb   : > { %v535_v58 = vpop.f32.mrf.mxu0 }
  0xbc   : > { %v571_v7 = vadd.f32 %v570_v57, %v535_v58 }
  0xbd   : > { %v572_v60 = vpop.f32.mrf.mxu1 }
  0xbe   : > { %v616_v59 = vpop.f32.mrf.mxu2 }
  0xbf   : > { %v626_v8 = vadd.f32 %v616_v59, %v571_v7  ;;  %v5480_v59 = vld [vmem:[#allocation10 + $0x20] sm:$0xff]  ;;  %v5495_v7 = vld [vmem:[#allocation10 + $0x98] sm:$0xff] }
  0xc0   : > { %994 = vmatpush.bf16.msra.mxu0 %v5480_v59  ;;  %v5518_v59 = vld [vmem:[#allocation10 + $0x150] sm:$0xff] }
  0xc2   : > { %v670_v61 = vpop.f32.mrf.mxu3 }
  0xc3   : > { %v537_v62 = vpop.f32.mrf.mxu0  ;;  %v680_v11 = vadd.f32 %v670_v61, %v626_v8  ;;  %v5499_v8 = vld [vmem:[#allocation10 + $0xb8] sm:$0xff] }
  0xc4   : > { %v573_v14 = vadd.f32 %v572_v60, %v537_v62  ;;  %v5484_v60 = vld [vmem:[#allocation10 + $0x40] sm:$0xff]  ;;  %1201 = vmatpush.bf16.msrb.mxu0 %v5495_v7 }
  0xc5   : > { %v575_v0 = vpop.f32.mrf.mxu1  ;;  %v5476_v62 = vld [vmem:[#allocation10] sm:$0xff]  ;;  %1090 = vmatpush.bf16.msra.mxu2 %v5484_v60  ;;  %v5522_v60 = vld [vmem:[#allocation10 + $0x170] sm:$0xff] }
  0xc6   : > { %v618_v63 = vpop.f32.mrf.mxu2  ;;  %1035 = vmatpush.bf16.msra.mxu1 %v5476_v62  ;;  %v5513_v62 = vld [vmem:[#allocation10 + $0x128] sm:$0xff] }
  0xc7   : > { %v627_v16 = vadd.f32 %v618_v63, %v573_v14  ;;  %v5488_v63 = vld [vmem:[#allocation10 + $0x60] sm:$0xff] }
  0xc8   : > { %1147 = vmatpush.bf16.msra.mxu3 %v5488_v63  ;;  %v5517_v63 = vld [vmem:[#allocation10 + $0x148] sm:$0xff] }
  0xca   : > { %v672_v1 = vpop.f32.mrf.mxu3  ;;  %1258 = vmatpush.bf16.msrb.mxu1 %v5499_v8 }
  0xcb   : > { %v540_v2 = vpop.f32.mrf.mxu0  ;;  %v681_v21 = vadd.f32 %v672_v1, %v627_v16 }
  0xcc   : > { %v576_v26 = vadd.f32 %v575_v0, %v540_v2 }
  0xcd   : > { %v577_v4 = vpop.f32.mrf.mxu1 }
  0xce   : > { %v621_v3 = vpop.f32.mrf.mxu2 }
  0xcf   : > { %v628_v30 = vadd.f32 %v621_v3, %v576_v26 }
  0xd2   : > { %v675_v5 = vpop.f32.mrf.mxu3 }
  0xd3   : > { %v542_v6 = vpop.f32.mrf.mxu0  ;;  %v682_v42 = vadd.f32 %v675_v5, %v628_v30 }
  0xd4   : > { %v578_v47 = vadd.f32 %v577_v4, %v542_v6 }
  0xd5   : > { %v774_v10 = vpop.f32.mrf.mxu1 }
  0xd6   : > { %v6319_v9 = vpop.f32.mrf.mxu2 }
  0xd7   : > { %v629_v55 = vadd.f32 %v6319_v9, %v578_v47  ;;  %v5503_v9 = vld [vmem:[#allocation10 + $0xd8] sm:$0xff] }
  0xd8   : > { %1315 = vmatpush.bf16.msrb.mxu2 %v5503_v9 }
  0xda   : > { %v6321_v12 = vpop.f32.mrf.mxu3 }
  0xdb   : > { %v720_v13 = vpop.f32.mrf.mxu0  ;;  %v683_v0 = vadd.f32 %v6321_v12, %v629_v55  ;;  %v5494_v12 = vld [vmem:[#allocation10 + $0x90] sm:$0xff]  ;;  %v5519_v55 = vld [vmem:[#allocation10 + $0x158] sm:$0xff] }
  0xdc   : > { %v730_v15 = vadd.f32 %v720_v13, %v680_v11  ;;  %v5507_v13 = vld [vmem:[#allocation10 + $0xf8] sm:$0xff]  ;;  %1202 = vmatpush.bf16.msrb.mxu0 %v5494_v12 }
  0xdd   : > { %v776_v23 = vpop.f32.mrf.mxu1  ;;  %1372 = vmatpush.bf16.msrb.mxu3 %v5507_v13 }
  0xde   : > { %v784_v17 = vadd.f32 %v774_v10, %v730_v15  ;;  %v824_v18 = vpop.f32.mrf.mxu2  ;;  %v5498_v15 = vld [vmem:[#allocation10 + $0xb0] sm:$0xff] }
  0xdf   : > { %1259 = vmatpush.bf16.msrb.mxu1 %v5498_v15  ;;  %v5527_v15 = vld [vmem:[#allocation10 + $0x198] sm:$0xff] }
  0xe0   : > { %v834_v19 = vadd.f32 %v824_v18, %v784_v17  ;;  %v5502_v17 = vld [vmem:[#allocation10 + $0xd0] sm:$0xff] }
  0xe1   : > { %v5506_v18 = vld [vmem:[#allocation10 + $0xf0] sm:$0xff]  ;;  %1316 = vmatpush.bf16.msrb.mxu2 %v5502_v17 }
  0xe2   : > { %v878_v22 = vpop.f32.mrf.mxu3  ;;  %1373 = vmatpush.bf16.msrb.mxu3 %v5506_v18 }
  0xe3   : > { %v888_v24 = vadd.f32 %v878_v22, %v834_v19  ;;  %v722_v25 = vpop.f32.mrf.mxu0 }
  0xe4   : > { %v731_v27 = vadd.f32 %v722_v25, %v681_v21 }
  0xe5   : > { %v896_v29 = vadd.f32 %v6326_v20, %v888_v24  ;;  %v779_v49 = vpop.f32.mrf.mxu1  ;;  %v5497_v24 = vld [vmem:[#allocation10 + $0xa8] sm:$0xff] }
  0xe6   : > { %v785_v35 = vadd.f32 %v776_v23, %v731_v27  ;;  %v826_v37 = vpop.f32.mrf.mxu2  ;;  %v5493_v23 = vld [vmem:[#allocation10 + $0x88] sm:$0xff]  ;;  %1260 = vmatpush.bf16.msrb.mxu1 %v5497_v24  ;;  %1374 = vmatpush.bf16.msrb.mxu3 %v5505_v28  ;;  %v5534_v24 = vld [vmem:[#allocation10 + $0x1d0] sm:$0xff] }
  0xe7   : > { %v900_v34 = vmax.f32 %v896_v29, 0.0  ;;  %v5501_v27 = vld [vmem:[#allocation10 + $0xc8] sm:$0xff]  ;;  %1203 = vmatpush.bf16.msrb.mxu0 %v5493_v23  ;;  %v5530_v23 = vld [vmem:[#allocation10 + $0x1b0] sm:$0xff] }
  0xe8   : > { %v835_v38 = vadd.f32 %v826_v37, %v785_v35  ;;  %1317 = vmatpush.bf16.msrb.mxu2 %v5501_v27  ;;  %v5504_v35 = vld [vmem:[#allocation10 + $0xe0] sm:$0xff]  ;;  %v5529_v27 = vld [vmem:[#allocation10 + $0x1a8] sm:$0xff] }
  0xe9   : > { %905 = vst.msk [vmem:[#allocation2] sm:$0xff] %vm904_vm8, %v900_v34  ;;  %v5500_v34 = vld [vmem:[#allocation10 + $0xc0] sm:$0xff]  ;;  %v5533_v28 = vld [vmem:[#allocation10 + $0x1c8] sm:$0xff] }
  0xea   : > { %v880_v43 = vpop.f32.mrf.mxu3  ;;  %1261 = vmatpush.bf16.msrb.mxu1 %v5496_v32  ;;  %1375 = vmatpush.bf16.msrb.mxu3 %v5504_v35 }
  0xeb   : > { %v889_v45 = vadd.f32 %v880_v43, %v835_v38  ;;  %v725_v46 = vpop.f32.mrf.mxu0  ;;  %1204 = vmatpush.bf16.msrb.mxu0 %v5492_v31 }
  0xec   : > { %v732_v48 = vadd.f32 %v725_v46, %v682_v42  ;;  %1318 = vmatpush.bf16.msrb.mxu2 %v5500_v34  ;;  %v934_v42 = vld [vmem:[#allocation3] ss:$2 sm:$0xff]  ;;  %v5515_v46 = vld [vmem:[#allocation10 + $0x138] sm:$0xff]  ;;  %v5528_v34 = vld [vmem:[#allocation10 + $0x1a0] sm:$0xff] }
  0xed   : > { %v897_v52 = vadd.f32 %v6326_v20, %v889_v45  ;;  %v781_v6 = vpop.f32.mrf.mxu1  ;;  %v5511_v45 = vld [vmem:[#allocation10 + $0x118] sm:$0xff] }
  0xee   : > { %v786_v57 = vadd.f32 %v779_v49, %v732_v48  ;;  %v829_v58 = vpop.f32.mrf.mxu2 }
  0xef   : > { %v901_v56 = vmax.f32 %v897_v52, 0.0 }
  0xf0   : > { %v836_v61 = vadd.f32 %v829_v58, %v786_v57  ;;  %v5510_v57 = vld [vmem:[#allocation10 + $0x110] sm:$0xff] }
  0xf1   : > { %906 = vst.msk [vmem:[#allocation2 + $0x8] sm:$0xff] %vm904_vm8, %v901_v56  ;;  %v5523_v56 = vld [vmem:[#allocation10 + $0x178] sm:$0xff]  ;;  %v5514_v58 = vld [vmem:[#allocation10 + $0x130] sm:$0xff] }
  0xf2   : > { %v883_v1 = vpop.f32.mrf.mxu3 }
  0xf3   : > { %v890_v2 = vadd.f32 %v883_v1, %v836_v61  ;;  %v727_v3 = vpop.f32.mrf.mxu0  ;;  %v5509_v61 = vld [vmem:[#allocation10 + $0x108] sm:$0xff]  ;;  %v5508_v1 = vld [vmem:[#allocation10 + $0x100] sm:$0xff] }
  0xf4   : > { %v733_v4 = vadd.f32 %v727_v3, %v683_v0  ;;  %v5521_v0 = vld [vmem:[#allocation10 + $0x168] sm:$0xff]  ;;  %v5516_v3 = vld [vmem:[#allocation10 + $0x140] sm:$0xff] }
  0xf5   : > { %v898_v5 = vadd.f32 %v6326_v20, %v890_v2  ;;  %v5512_v2 = vld [vmem:[#allocation10 + $0x120] sm:$0xff] }
  0xf6   : > { %v787_v11 = vadd.f32 %v781_v6, %v733_v4  ;;  %v831_v14 = vpop.f32.mrf.mxu2  ;;  %v5520_v4 = vld [vmem:[#allocation10 + $0x160] sm:$0xff] }
  0xf7   : > { %v902_v10 = vmax.f32 %v898_v5, 0.0 }
  0xf8   : > { %v837_v16 = vadd.f32 %v831_v14, %v787_v11  ;;  %v917_v22 = vld [vmem:[#allocation2] ss:$2 sm:$0xff]  ;;  %v921_v25 = vld [vmem:[#allocation2 + $0x1] ss:$2 sm:$0xff] }
  0xf9   : > { %907 = vst.msk [vmem:[#allocation2 + $0x10] sm:$0xff] %vm904_vm8, %v902_v10  ;;  %v928_v30 = vmax.f32 %v917_v22, %v921_v25  ;;  %v5526_v22 = vld [vmem:[#allocation10 + $0x190] sm:$0xff] }
  0xfa   : > { %v885_v19 = vpop.f32.mrf.mxu3  ;;  %v5538_v25 = vld [vmem:[#allocation10 + $0x1f0] sm:$0xff] }
  0xfb   : > { %v891_v21 = vadd.f32 %v885_v19, %v837_v16  ;;  %v5531_v16 = vld [vmem:[#allocation10 + $0x1b8] sm:$0xff] }
  0xfc   : > { %v5535_v19 = vld [vmem:[#allocation10 + $0x1d8] sm:$0xff] }
  0xfd   : > { %v899_v26 = vadd.f32 %v6326_v20, %v891_v21  ;;  %v5539_v21 = vld [vmem:[#allocation10 + $0x1f8] sm:$0xff] }
  0xff   : > { %v903_v29 = vmax.f32 %v899_v26, 0.0  ;;  %v5525_v26 = vld [vmem:[#allocation10 + $0x188] sm:$0xff] }
 0x100   : > { %v925_v33 = vld [vmem:[#allocation2 + $0x2] ss:$2 sm:$0xff]  ;;  %v923_v20 = vld [vmem:[#allocation2 + $0x11] ss:$2 sm:$0xf] }
 0x101   : > { %909 = vst.msk [vmem:[#allocation2 + $0x18] sm:$0x1] %vm908_vm10, %v903_v29  ;;  %v930_v36 = vmax.f32 %v928_v30, %v925_v33  ;;  %v919_v37 = vld [vmem:[#allocation2 + $0x10] ss:$2 sm:$0xf]  ;;  %v5537_v29 = vld [vmem:[#allocation10 + $0x1e8] sm:$0xff] }
 0x102   : > { %v929_v38 = vmax.f32 %v919_v37, %v923_v20  ;;  %v5524_v33 = vld [vmem:[#allocation10 + $0x180] sm:$0xff] }
 0x103   : > { %932 = vst.msk [vmem:[#allocation3 + $0x10] sm:$0xff] %vm904_vm8, %v930_v36  ;;  %v5532_v36 = vld [vmem:[#allocation10 + $0x1c0] sm:$0xff] }
 0x104   : > { %v5536_v37 = vld [vmem:[#allocation10 + $0x1e0] sm:$0xff] }
 0x108   : > { %v927_v39 = vld [vmem:[#allocation2 + $0x12] ss:$2 sm:$0xf] }
 0x109   : > { %v931_v40 = vmax.f32 %v929_v38, %v927_v39 }
 0x10a   : > { %v1043_v43 = vld [vmem:[#allocation3 + $0x2] ss:$2 sm:$0xff]  ;;  %v1100_v44 = vld [vmem:[#allocation3 + $0x3] ss:$2 sm:$0xff] }
 0x10b   : > { %933 = vst.msk [vmem:[#allocation3 + $0x18] sm:$0xf] %vm915_vm9, %v931_v40  ;;  %v1157_v9 = vld [vmem:[#allocation3 + $0x4] ss:$2 sm:$0xff]  ;;  %v1214_v10 = vld [vmem:[#allocation3 + $0x5] ss:$2 sm:$0xff] }
 0x10c   : > { %v1271_v11 = vld [vmem:[#allocation3 + $0x6] ss:$2 sm:$0xff]  ;;  %v1328_v12 = vld [vmem:[#allocation3 + $0x7] ss:$2 sm:$0xff] }
 0x10d   : > { %v1385_v39 = vld [vmem:[#allocation3 + $0x8] ss:$2 sm:$0xff]  ;;  %v1442_v40 = vld [vmem:[#allocation3 + $0x9] ss:$2 sm:$0xff] }
 0x112   : > { %v949_v47 = vld [vmem:[#allocation3 + $0x11] ss:$2 sm:$0x7f]  ;;  %v936_v48 = vld [vmem:[#allocation3 + $0x10] ss:$2 sm:$0x7f] }
 0x113   : > { %v950_v49 = vpack.c.bf16 %v949_v47, %v947_v41  ;;  %v937_v50 = vpack.c.bf16 %v936_v48, %v934_v42  ;;  %v1045_v51 = vld [vmem:[#allocation3 + $0x12] ss:$2 sm:$0x7f]  ;;  %v1102_v52 = vld [vmem:[#allocation3 + $0x13] ss:$2 sm:$0x7f] }
 0x114   : > { %v1046_v53 = vpack.c.bf16 %v1045_v51, %v1043_v43  ;;  %v1103_v54 = vpack.c.bf16 %v1102_v52, %v1100_v44  ;;  %v1159_v5 = vld [vmem:[#allocation3 + $0x14] ss:$2 sm:$0x7f]  ;;  %v1216_v6 = vld [vmem:[#allocation3 + $0x15] ss:$2 sm:$0x7f] }
 0x115   : > { %4303 = vmatmul.msk.bf16.vlgmr.msra.gmra.mxu0 %vm904_vm8, %v950_v49  ;;  %4320 = vmatmul.msk.bf16.vlgmr.msra.gmra.mxu1 %vm904_vm8, %v937_v50  ;;  %v1273_v7 = vld [vmem:[#allocation3 + $0x16] ss:$2 sm:$0x7f]  ;;  %v1330_v8 = vld [vmem:[#allocation3 + $0x17] ss:$2 sm:$0x7f]  ;;  %v1160_v13 = vpack.c.bf16 %v1159_v5, %v1157_v9  ;;  %v1217_v14 = vpack.c.bf16 %v1216_v6, %v1214_v10 }
 0x116   : > { %4337 = vmatmul.msk.bf16.vlgmr.msra.gmra.mxu2 %vm904_vm8, %v1046_v53  ;;  %4354 = vmatmul.msk.bf16.vlgmr.msra.gmra.mxu3 %vm904_vm8, %v1103_v54  ;;  %v1274_v17 = vpack.c.bf16 %v1273_v7, %v1271_v11  ;;  %v1331_v18 = vpack.c.bf16 %v1330_v8, %v1328_v12  ;;  %v1387_v30 = vld [vmem:[#allocation3 + $0x18] ss:$2 sm:$0x7f]  ;;  %v1444_v31 = vld [vmem:[#allocation3 + $0x19] ss:$2 sm:$0x7f] }
 0x117   : > { %1429 = vmatpush.bf16.msra.mxu0 %v5511_v45  ;;  %1486 = vmatpush.bf16.msra.mxu1 %v5515_v46  ;;  %v1499_v32 = vld [vmem:[#allocation3 + $0xa] ss:$2 sm:$0xff]  ;;  %v1501_v35 = vld [vmem:[#allocation3 + $0x1a] ss:$2 sm:$0x7f]  ;;  %v1388_v41 = vpack.c.bf16 %v1387_v30, %v1385_v39  ;;  %v1445_v42 = vpack.c.bf16 %v1444_v31, %v1442_v40 }
 0x118   : > { %1543 = vmatpush.bf16.msra.mxu2 %v5519_v55  ;;  %1600 = vmatpush.bf16.msra.mxu3 %v5523_v56  ;;  %v1556_v20 = vld [vmem:[#allocation3 + $0xb] ss:$2 sm:$0xff]  ;;  %v1558_v38 = vld [vmem:[#allocation3 + $0x1b] ss:$2 sm:$0x7f]  ;;  %v1502_v43 = vpack.c.bf16 %v1501_v35, %v1499_v32 }
 0x119   : > { %v1559_v44 = vpack.c.bf16 %v1558_v38, %v1556_v20  ;;  %v1615_v45 = vld [vmem:[#allocation3 + $0x1c] ss:$2 sm:$0x7f]  ;;  %v1672_v46 = vld [vmem:[#allocation3 + $0x1d] ss:$2 sm:$0x7f] }
 0x11a   : > { %v1729_v47 = vld [vmem:[#allocation3 + $0x1e] ss:$2 sm:$0x7f]  ;;  %v1786_v48 = vld [vmem:[#allocation3 + $0x1f] ss:$2 sm:$0x7f] }
 0x11b   : > { %1430 = vmatpush.bf16.msra.mxu0 %v5510_v57  ;;  %1487 = vmatpush.bf16.msra.mxu1 %v5514_v58  ;;  %v1613_v49 = vld [vmem:[#allocation3 + $0xc] ss:$2 sm:$0xff]  ;;  %v1670_v50 = vld [vmem:[#allocation3 + $0xd] ss:$2 sm:$0xff]  ;;  %v5553_v7 = vld [vmem:[#allocation12 + $0x68] sm:$0xff] }
 0x11c   : > { %1544 = vmatpush.bf16.msra.mxu2 %v5518_v59  ;;  %1601 = vmatpush.bf16.msra.mxu3 %v5522_v60  ;;  %v1727_v51 = vld [vmem:[#allocation3 + $0xe] ss:$2 sm:$0xff]  ;;  %v1784_v52 = vld [vmem:[#allocation3 + $0xf] ss:$2 sm:$0xff]  ;;  %v1616_v53 = vpack.c.bf16 %v1615_v45, %v1613_v49  ;;  %v1673_v54 = vpack.c.bf16 %v1672_v46, %v1670_v50  ;;  %v5545_v8 = vld [vmem:[#allocation12 + $0x28] sm:$0xff] }
 0x11d   : > { %v1730_v55 = vpack.c.bf16 %v1729_v47, %v1727_v51  ;;  %v1787_v56 = vpack.c.bf16 %v1786_v48, %v1784_v52  ;;  %v5555_v59 = vld [vmem:[#allocation12 + $0x78] sm:$0xff]  ;;  %v5562_v5 = vld [vmem:[#allocation12 + $0xb0] sm:$0xff]  ;;  %v5561_v9 = vld [vmem:[#allocation12 + $0xa8] sm:$0xff] }
 0x11e   : > { %v5547_v60 = vld [vmem:[#allocation12 + $0x38] sm:$0xff]  ;;  %v5570_v6 = vld [vmem:[#allocation12 + $0xf0] sm:$0xff]  ;;  %v5569_v10 = vld [vmem:[#allocation12 + $0xe8] sm:$0xff] }
 0x11f   : > { %1431 = vmatpush.bf16.msra.mxu0 %v5509_v61  ;;  %1488 = vmatpush.bf16.msra.mxu1 %v5513_v62  ;;  %v5563_v61 = vld [vmem:[#allocation12 + $0xb8] sm:$0xff]  ;;  %v5550_v40 = vld [vmem:[#allocation12 + $0x50] sm:$0xff]  ;;  %v5549_v45 = vld [vmem:[#allocation12 + $0x48] sm:$0xff] }
 0x120   : > { %1545 = vmatpush.bf16.msra.mxu2 %v5517_v63  ;;  %1602 = vmatpush.bf16.msra.mxu3 %v5521_v0  ;;  %v5571_v62 = vld [vmem:[#allocation12 + $0xf8] sm:$0xff]  ;;  %v5541_v46 = vld [vmem:[#allocation12 + $0x8] sm:$0xff] }
 0x121   : > { %v5557_v47 = vld [vmem:[#allocation12 + $0x88] sm:$0xff] }
 0x122   : > { %v5565_v48 = vld [vmem:[#allocation12 + $0xc8] sm:$0xff] }
 0x123   : > { %1432 = vmatpush.bf16.msra.mxu0 %v5508_v1  ;;  %1489 = vmatpush.bf16.msra.mxu1 %v5512_v2 }
 0x124   : > { %1546 = vmatpush.bf16.msra.mxu2 %v5516_v3  ;;  %1603 = vmatpush.bf16.msra.mxu3 %v5520_v4  ;;  %v5554_v3 = vld [vmem:[#allocation12 + $0x70] sm:$0xff] }
 0x125   : > { %4371 = vmatmul.msk.bf16.vlgmr.msrb.gmra.mxu0 %vm904_vm8, %v1160_v13  ;;  %4388 = vmatmul.msk.bf16.vlgmr.msrb.gmra.mxu1 %vm904_vm8, %v1217_v14  ;;  %v5546_v4 = vld [vmem:[#allocation12 + $0x30] sm:$0xff] }
 0x126   : > { %4405 = vmatmul.msk.bf16.vlgmr.msrb.gmra.mxu2 %vm904_vm8, %v1274_v17  ;;  %4422 = vmatmul.msk.bf16.vlgmr.msrb.gmra.mxu3 %vm904_vm8, %v1331_v18  ;;  %v5544_v17 = vld [vmem:[#allocation12 + $0x20] sm:$0xff] }
 0x127   : > { %1657 = vmatpush.bf16.msrb.mxu0 %v5527_v15  ;;  %1714 = vmatpush.bf16.msrb.mxu1 %v5531_v16  ;;  %v5552_v16 = vld [vmem:[#allocation12 + $0x60] sm:$0xff] }
 0x128   : > { %1771 = vmatpush.bf16.msrb.mxu2 %v5535_v19  ;;  %1828 = vmatpush.bf16.msrb.mxu3 %v5539_v21  ;;  %v5560_v18 = vld [vmem:[#allocation12 + $0xa0] sm:$0xff] }
 0x129   : > { %v5568_v19 = vld [vmem:[#allocation12 + $0xe0] sm:$0xff] }
 0x12b   : > { %1658 = vmatpush.bf16.msrb.mxu0 %v5526_v22  ;;  %1715 = vmatpush.bf16.msrb.mxu1 %v5530_v23  ;;  %v5551_v22 = vld [vmem:[#allocation12 + $0x58] sm:$0xff] }
 0x12c   : > { %1772 = vmatpush.bf16.msrb.mxu2 %v5534_v24  ;;  %1829 = vmatpush.bf16.msrb.mxu3 %v5538_v25  ;;  %v5543_v23 = vld [vmem:[#allocation12 + $0x18] sm:$0xff] }
 0x12d   : > { %v5559_v24 = vld [vmem:[#allocation12 + $0x98] sm:$0xff] }
 0x12e   : > { %v5567_v25 = vld [vmem:[#allocation12 + $0xd8] sm:$0xff] }
 0x12f   : > { %1659 = vmatpush.bf16.msrb.mxu0 %v5525_v26  ;;  %1716 = vmatpush.bf16.msrb.mxu1 %v5529_v27 }
 0x130   : > { %1773 = vmatpush.bf16.msrb.mxu2 %v5533_v28  ;;  %1830 = vmatpush.bf16.msrb.mxu3 %v5537_v29 }
 0x133   : > { %1660 = vmatpush.bf16.msrb.mxu0 %v5524_v33  ;;  %1717 = vmatpush.bf16.msrb.mxu1 %v5528_v34 }
 0x134   : > { %1774 = vmatpush.bf16.msrb.mxu2 %v5532_v36  ;;  %1831 = vmatpush.bf16.msrb.mxu3 %v5536_v37 }
 0x135   : > { %4439 = vmatmul.msk.bf16.vlgmr.msra.gmra.mxu0 %vm904_vm8, %v1388_v41  ;;  %4456 = vmatmul.msk.bf16.vlgmr.msra.gmra.mxu1 %vm904_vm8, %v1445_v42  ;;  %v5542_v41 = vld [vmem:[#allocation12 + $0x10] sm:$0xff] }
 0x136   : > { %4473 = vmatmul.msk.bf16.vlgmr.msra.gmra.mxu2 %vm904_vm8, %v1502_v43  ;;  %4490 = vmatmul.msk.bf16.vlgmr.msra.gmra.mxu3 %vm904_vm8, %v1559_v44  ;;  %v5558_v42 = vld [vmem:[#allocation12 + $0x90] sm:$0xff] }
 0x137   : > { %1953 = vmatpush.bf16.msra.mxu0 %v5555_v59  ;;  %2015 = vmatpush.bf16.msra.mxu1 %v5547_v60  ;;  %v5566_v43 = vld [vmem:[#allocation12 + $0xd0] sm:$0xff]  ;;  %v5556_v59 = vld [vmem:[#allocation12 + $0x80] sm:$0xff] }
 0x138   : > { %2099 = vmatpush.bf16.msra.mxu2 %v5563_v61  ;;  %2185 = vmatpush.bf16.msra.mxu3 %v5571_v62  ;;  %v5564_v61 = vld [vmem:[#allocation12 + $0xc0] sm:$0xff]  ;;  %v5579_v62 = vld [vmem:[#allocation12 + $0x138] sm:$0xff] }
 0x13b   : > { %1954 = vmatpush.bf16.msra.mxu0 %v5554_v3  ;;  %2016 = vmatpush.bf16.msra.mxu1 %v5546_v4 }
 0x13c   : > { %2100 = vmatpush.bf16.msra.mxu2 %v5562_v5  ;;  %2186 = vmatpush.bf16.msra.mxu3 %v5570_v6  ;;  %v5578_v5 = vld [vmem:[#allocation12 + $0x130] sm:$0xff] }
 0x13d   : > { %v5586_v6 = vld [vmem:[#allocation12 + $0x170] sm:$0xff] }
 0x13f   : > { %1955 = vmatpush.bf16.msra.mxu0 %v5553_v7  ;;  %2017 = vmatpush.bf16.msra.mxu1 %v5545_v8  ;;  %v5594_v7 = vld [vmem:[#allocation12 + $0x1b0] sm:$0xff] }
 0x140   : > { %2101 = vmatpush.bf16.msra.mxu2 %v5561_v9  ;;  %2187 = vmatpush.bf16.msra.mxu3 %v5569_v10  ;;  %v5602_v10 = vld [vmem:[#allocation12 + $0x1f0] sm:$0xff] }
 0x143   : > { %1956 = vmatpush.bf16.msra.mxu0 %v5552_v16  ;;  %2018 = vmatpush.bf16.msra.mxu1 %v5544_v17  ;;  %v5585_v16 = vld [vmem:[#allocation12 + $0x168] sm:$0xff] }
 0x144   : > { %2102 = vmatpush.bf16.msra.mxu2 %v5560_v18  ;;  %2188 = vmatpush.bf16.msra.mxu3 %v5568_v19  ;;  %v5593_v17 = vld [vmem:[#allocation12 + $0x1a8] sm:$0xff] }
 0x145   : > { %4507 = vmatmul.msk.bf16.vlgmr.msrb.gmra.mxu0 %vm904_vm8, %v1616_v53  ;;  %4524 = vmatmul.msk.bf16.vlgmr.msrb.gmra.mxu1 %vm904_vm8, %v1673_v54  ;;  %v5601_v19 = vld [vmem:[#allocation12 + $0x1e8] sm:$0xff] }
 0x146   : > { %4541 = vmatmul.msk.bf16.vlgmr.msrb.gmra.mxu2 %vm904_vm8, %v1730_v55  ;;  %4558 = vmatmul.msk.bf16.vlgmr.msrb.gmra.mxu3 %vm904_vm8, %v1787_v56 }
 0x147   : > { %1957 = vmatpush.bf16.msra.mxu0 %v5551_v22  ;;  %2019 = vmatpush.bf16.msra.mxu1 %v5543_v23  ;;  %v5576_v22 = vld [vmem:[#allocation12 + $0x120] sm:$0xff] }
 0x148   : > { %2103 = vmatpush.bf16.msra.mxu2 %v5559_v24  ;;  %2189 = vmatpush.bf16.msra.mxu3 %v5567_v25  ;;  %v5584_v23 = vld [vmem:[#allocation12 + $0x160] sm:$0xff] }
 0x149   : > { %v5592_v25 = vld [vmem:[#allocation12 + $0x1a0] sm:$0xff] }
 0x14b   : > { %1958 = vmatpush.bf16.msra.mxu0 %v5550_v40  ;;  %2020 = vmatpush.bf16.msra.mxu1 %v5542_v41  ;;  %v5574_v40 = vld [vmem:[#allocation12 + $0x110] sm:$0xff] }
 0x14c   : > { %2104 = vmatpush.bf16.msra.mxu2 %v5558_v42  ;;  %2190 = vmatpush.bf16.msra.mxu3 %v5566_v43  ;;  %v5582_v41 = vld [vmem:[#allocation12 + $0x150] sm:$0xff] }
 0x14f   : > { %1959 = vmatpush.bf16.msra.mxu0 %v5549_v45  ;;  %2021 = vmatpush.bf16.msra.mxu1 %v5541_v46  ;;  %v5598_v45 = vld [vmem:[#allocation12 + $0x1d0] sm:$0xff] }
 0x150   : > { %2105 = vmatpush.bf16.msra.mxu2 %v5557_v47  ;;  %2191 = vmatpush.bf16.msra.mxu3 %v5565_v48 }
 0x154   : > { %2106 = vmatpush.bf16.msra.mxu2 %v5556_v59  ;;  %2192 = vmatpush.bf16.msra.mxu3 %v5564_v61  ;;  %v5596_v59 = vld [vmem:[#allocation12 + $0x1c0] sm:$0xff] }
 0x192   : > { %v996_v57 = vpop.f32.mrf.mxu0  ;;  %v1037_v58 = vpop.f32.mrf.mxu1 }
 0x193   : > { %v1038_v15 = vadd.f32 %v1037_v58, %v996_v57  ;;  %v5548_v57 = vld [vmem:[#allocation12 + $0x40] sm:$0xff] }
 0x194   : > { %v5540_v58 = vld [vmem:[#allocation12] sm:$0xff]  ;;  %1960 = vmatpush.bf16.msra.mxu0 %v5548_v57 }
 0x195   : > { %2022 = vmatpush.bf16.msra.mxu1 %v5540_v58  ;;  %v5588_v58 = vld [vmem:[#allocation12 + $0x180] sm:$0xff] }
 0x198   : > { %2271 = vmatpush.bf16.msrb.mxu0 %v5579_v62 }
 0x199   : > { %v1092_v63 = vpop.f32.mrf.mxu2  ;;  %v1149_v0 = vpop.f32.mrf.mxu3 }
 0x19a   : > { %v998_v1 = vpop.f32.mrf.mxu0  ;;  %v1039_v2 = vpop.f32.mrf.mxu1  ;;  %v1097_v21 = vadd.f32 %v1092_v63, %v1038_v15  ;;  %v5587_v63 = vld [vmem:[#allocation12 + $0x178] sm:$0xff]  ;;  %v5577_v15 = vld [vmem:[#allocation12 + $0x128] sm:$0xff] }
 0x19b   : > { %v1040_v31 = vadd.f32 %v1039_v2, %v998_v1  ;;  %v5603_v1 = vld [vmem:[#allocation12 + $0x1f8] sm:$0xff]  ;;  %2357 = vmatpush.bf16.msrb.mxu1 %v5587_v63 }
 0x19c   : > { %v1154_v28 = vadd.f32 %v1149_v0, %v1097_v21  ;;  %v5595_v0 = vld [vmem:[#allocation12 + $0x1b8] sm:$0xff]  ;;  %2529 = vmatpush.bf16.msrb.mxu3 %v5603_v1  ;;  %2272 = vmatpush.bf16.msrb.mxu0 %v5578_v5  ;;  %v1884_v1 = vld [vmem:[#allocation5 + $0x1] ss:$2 sm:$0xff] }
 0x19d   : > { %2443 = vmatpush.bf16.msrb.mxu2 %v5595_v0 }
 0x19f   : > { %2358 = vmatpush.bf16.msrb.mxu1 %v5586_v6 }
 0x1a0   : > { %2530 = vmatpush.bf16.msrb.mxu3 %v5602_v10  ;;  %2273 = vmatpush.bf16.msrb.mxu0 %v5577_v15  ;;  %v5635_v15 = vld [vmem:[#allocation12 + $0x2f8] sm:$0xff] }
 0x1a1   : > { %v1094_v11 = vpop.f32.mrf.mxu2  ;;  %v1151_v13 = vpop.f32.mrf.mxu3  ;;  %2444 = vmatpush.bf16.msrb.mxu2 %v5594_v7 }
 0x1a2   : > { %v1206_v14 = vpop.f32.mrf.mxu0  ;;  %v1263_v12 = vpop.f32.mrf.mxu1  ;;  %v1098_v33 = vadd.f32 %v1094_v11, %v1040_v31  ;;  %v5860_v31 = vld [vmem:[%s6438_s4] ss:$0 sm:$0xff] }
 0x1a3   : > { %v1211_v32 = vadd.f32 %v1206_v14, %v1154_v28  ;;  %2359 = vmatpush.bf16.msrb.mxu1 %v5585_v16 }
 0x1a4   : > { %v1155_v37 = vadd.f32 %v1151_v13, %v1098_v33  ;;  %2531 = vmatpush.bf16.msrb.mxu3 %v5601_v19  ;;  %2274 = vmatpush.bf16.msrb.mxu0 %v5576_v22  ;;  %v5575_v33 = vld [vmem:[#allocation12 + $0x118] sm:$0xff]  ;;  %v5626_v19 = vld [vmem:[#allocation12 + $0x2b0] sm:$0xff]  ;;  %v5609_v22 = vld [vmem:[#allocation12 + $0x228] sm:$0xff] }
 0x1a5   : > { %v1268_v34 = vadd.f32 %v1263_v12, %v1211_v32  ;;  %2445 = vmatpush.bf16.msrb.mxu2 %v5593_v17  ;;  %v5610_v17 = vld [vmem:[#allocation12 + $0x230] sm:$0xff] }
 0x1a7   : > { %2360 = vmatpush.bf16.msrb.mxu1 %v5584_v23  ;;  %v5617_v23 = vld [vmem:[#allocation12 + $0x268] sm:$0xff] }
 0x1a8   : > { %2275 = vmatpush.bf16.msrb.mxu0 %v5575_v33 }
 0x1a9   : > { %v1320_v26 = vpop.f32.mrf.mxu2  ;;  %v1377_v27 = vpop.f32.mrf.mxu3  ;;  %2446 = vmatpush.bf16.msrb.mxu2 %v5592_v25  ;;  %v5633_v25 = vld [vmem:[#allocation12 + $0x2e8] sm:$0xff] }
 0x1aa   : > { %v1208_v29 = vpop.f32.mrf.mxu0  ;;  %v1265_v30 = vpop.f32.mrf.mxu1  ;;  %v1325_v20 = vadd.f32 %v1320_v26, %v1268_v34  ;;  %v5600_v26 = vld [vmem:[#allocation12 + $0x1e0] sm:$0xff]  ;;  %v5583_v34 = vld [vmem:[#allocation12 + $0x158] sm:$0xff] }
 0x1ab   : > { %v1212_v44 = vadd.f32 %v1208_v29, %v1155_v37  ;;  %2532 = vmatpush.bf16.msrb.mxu3 %v5600_v26  ;;  %v5591_v37 = vld [vmem:[#allocation12 + $0x198] sm:$0xff]  ;;  %2361 = vmatpush.bf16.msrb.mxu1 %v5583_v34  ;;  %v5608_v26 = vld [vmem:[#allocation12 + $0x220] sm:$0xff] }
 0x1ac   : > { %v1382_v49 = vadd.f32 %v1377_v27, %v1325_v20  ;;  %v5599_v20 = vld [vmem:[#allocation12 + $0x1d8] sm:$0xff]  ;;  %2276 = vmatpush.bf16.msrb.mxu0 %v5574_v40 }
 0x1ad   : > { %v1269_v50 = vadd.f32 %v1265_v30, %v1212_v44  ;;  %2447 = vmatpush.bf16.msrb.mxu2 %v5591_v37  ;;  %v5590_v44 = vld [vmem:[#allocation12 + $0x190] sm:$0xff]  ;;  %v2462_v37 = vld [vmem:[#allocation5 + $0x17] ss:$2 sm:$0xf] }
 0x1ae   : > { %v5615_v40 = vld [vmem:[#allocation12 + $0x258] sm:$0xff] }
 0x1af   : > { %2533 = vmatpush.bf16.msrb.mxu3 %v5599_v20  ;;  %2362 = vmatpush.bf16.msrb.mxu1 %v5582_v41  ;;  %v5607_v20 = vld [vmem:[#allocation12 + $0x218] sm:$0xff] }
 0x1b1   : > { %v1322_v35 = vpop.f32.mrf.mxu2  ;;  %v1379_v36 = vpop.f32.mrf.mxu3  ;;  %2448 = vmatpush.bf16.msrb.mxu2 %v5590_v44 }
 0x1b2   : > { %v1434_v38 = vpop.f32.mrf.mxu0  ;;  %v1491_v39 = vpop.f32.mrf.mxu1  ;;  %v1326_v54 = vadd.f32 %v1322_v35, %v1269_v50  ;;  %v5581_v50 = vld [vmem:[#allocation12 + $0x148] sm:$0xff] }
 0x1b3   : > { %v1439_v51 = vadd.f32 %v1434_v38, %v1382_v49  ;;  %v5573_v49 = vld [vmem:[#allocation12 + $0x108] sm:$0xff]  ;;  %2534 = vmatpush.bf16.msrb.mxu3 %v5598_v45  ;;  %2363 = vmatpush.bf16.msrb.mxu1 %v5581_v50  ;;  %v5606_v45 = vld [vmem:[#allocation12 + $0x210] sm:$0xff] }
 0x1b4   : > { %v1383_v2 = vadd.f32 %v1379_v36, %v1326_v54  ;;  %2277 = vmatpush.bf16.msrb.mxu0 %v5573_v49  ;;  %v5605_v49 = vld [vmem:[#allocation12 + $0x208] sm:$0xff] }
 0x1b5   : > { %v1496_v60 = vadd.f32 %v1491_v39, %v1439_v51  ;;  %v5613_v50 = vld [vmem:[#allocation12 + $0x248] sm:$0xff] }
 0x1b9   : > { %v1548_v52 = vpop.f32.mrf.mxu2  ;;  %v1605_v53 = vpop.f32.mrf.mxu3 }
 0x1ba   : > { %v1436_v55 = vpop.f32.mrf.mxu0  ;;  %v1493_v56 = vpop.f32.mrf.mxu1  ;;  %v1553_v3 = vadd.f32 %v1548_v52, %v1496_v60  ;;  %v5589_v52 = vld [vmem:[#allocation12 + $0x188] sm:$0xff] }
 0x1bb   : > { %v1440_v4 = vadd.f32 %v1436_v55, %v1383_v2  ;;  %v5572_v55 = vld [vmem:[#allocation12 + $0x100] sm:$0xff]  ;;  %2449 = vmatpush.bf16.msrb.mxu2 %v5589_v52  ;;  %v1863_v2 = vld [vmem:[#allocation5] ss:$2 sm:$0xff] }
 0x1bc   : > { %v1610_v11 = vadd.f32 %v1605_v53, %v1553_v3  ;;  %v5597_v53 = vld [vmem:[#allocation12 + $0x1c8] sm:$0xff]  ;;  %2278 = vmatpush.bf16.msrb.mxu0 %v5572_v55  ;;  %v5611_v3 = vld [vmem:[#allocation12 + $0x238] sm:$0xff] }
 0x1bd   : > { %v1497_v14 = vadd.f32 %v1493_v56, %v1440_v4  ;;  %v5580_v56 = vld [vmem:[#allocation12 + $0x140] sm:$0xff]  ;;  %2535 = vmatpush.bf16.msrb.mxu3 %v5597_v53  ;;  %v5619_v4 = vld [vmem:[#allocation12 + $0x278] sm:$0xff]  ;;  %v5629_v52 = vld [vmem:[#allocation12 + $0x2c8] sm:$0xff] }
 0x1be   : > { %2364 = vmatpush.bf16.msrb.mxu1 %v5580_v56  ;;  %v5604_v53 = vld [vmem:[#allocation12 + $0x200] sm:$0xff]  ;;  %v5643_v55 = vld [vmem:[#allocation12 + $0x338] sm:$0xff] }
 0x1bf   : > { %2450 = vmatpush.bf16.msrb.mxu2 %v5588_v58  ;;  %v2548_v56 = vld [vmem:[#allocation5 + $0x18] ss:$2 sm:$0xf] }
 0x1c0   : > { %v5628_v58 = vld [vmem:[#allocation12 + $0x2c0] sm:$0xff] }
 0x1c1   : > { %v1550_v8 = vpop.f32.mrf.mxu2  ;;  %v1607_v9 = vpop.f32.mrf.mxu3  ;;  %2536 = vmatpush.bf16.msrb.mxu3 %v5596_v59  ;;  %v2634_v59 = vld [vmem:[#allocation5 + $0x19] ss:$2 sm:$0xf] }
 0x1c2   : > { %v1662_v13 = vpop.f32.mrf.mxu0  ;;  %v1719_v18 = vpop.f32.mrf.mxu1  ;;  %v1554_v21 = vadd.f32 %v1550_v8, %v1497_v14 }
 0x1c3   : > { %v1667_v12 = vadd.f32 %v1662_v13, %v1610_v11  ;;  %v5627_v11 = vld [vmem:[#allocation12 + $0x2b8] sm:$0xff] }
 0x1c4   : > { %v1611_v29 = vadd.f32 %v1607_v9, %v1554_v21  ;;  %v5634_v21 = vld [vmem:[#allocation12 + $0x2f0] sm:$0xff] }
 0x1c5   : > { %v1724_v24 = vadd.f32 %v1719_v18, %v1667_v12  ;;  %v5618_v18 = vld [vmem:[#allocation12 + $0x270] sm:$0xff] }
 0x1c9   : > { %v1776_v27 = vpop.f32.mrf.mxu2  ;;  %v1833_v28 = vpop.f32.mrf.mxu3 }
 0x1ca   : > { %v1781_v30 = vadd.f32 %v1776_v27, %v1724_v24  ;;  %v1664_v32 = vpop.f32.mrf.mxu0  ;;  %v1721_v39 = vpop.f32.mrf.mxu1  ;;  %v5625_v24 = vld [vmem:[#allocation12 + $0x2a8] sm:$0xff]  ;;  %v5616_v27 = vld [vmem:[#allocation12 + $0x260] sm:$0xff] }
 0x1cb   : > { %v1668_v36 = vadd.f32 %v1664_v32, %v1611_v29 }
 0x1cc   : > { %v1838_v35 = vadd.f32 %v1833_v28, %v1781_v30  ;;  %v5624_v28 = vld [vmem:[#allocation12 + $0x2a0] sm:$0xff] }
 0x1cd   : > { %v1725_v43 = vadd.f32 %v1721_v39, %v1668_v36 }
 0x1ce   : > { %v1844_v38 = vadd.f32 %v5860_v31, %v1838_v35 }
 0x1d0   : > { %v1846_v42 = vmax.f32 %v1844_v38, 0.0 }
 0x1d1   : > { %v1778_v46 = vpop.f32.mrf.mxu2  ;;  %v1835_v48 = vpop.f32.mrf.mxu3 }
 0x1d2   : > { %1848 = vst [vmem:[#allocation4] sm:$0xff] %v1846_v42  ;;  %v1782_v47 = vadd.f32 %v1778_v46, %v1725_v43  ;;  %v5623_v42 = vld [vmem:[#allocation12 + $0x298] sm:$0xff]  ;;  %v5614_v46 = vld [vmem:[#allocation12 + $0x250] sm:$0xff] }
 0x1d3   : > { %v5631_v43 = vld [vmem:[#allocation12 + $0x2d8] sm:$0xff] }
 0x1d4   : > { %v1839_v51 = vadd.f32 %v1835_v48, %v1782_v47  ;;  %v5622_v47 = vld [vmem:[#allocation12 + $0x290] sm:$0xff] }
 0x1d5   : > { %v5630_v48 = vld [vmem:[#allocation12 + $0x2d0] sm:$0xff] }
 0x1d6   : > { %v1845_v54 = vadd.f32 %v5860_v31, %v1839_v51  ;;  %v5632_v31 = vld [vmem:[#allocation12 + $0x2e0] sm:$0xff]  ;;  %v5621_v51 = vld [vmem:[#allocation12 + $0x288] sm:$0xff] }
 0x1d8   : > { %v1847_v57 = vmax.f32 %v1845_v54, 0.0  ;;  %v5612_v54 = vld [vmem:[#allocation12 + $0x240] sm:$0xff] }
 0x1da   : > { %1849 = vst [vmem:[#allocation4 + $0x8] sm:$0x7f] %v1847_v57  ;;  %v5620_v57 = vld [vmem:[#allocation12 + $0x280] sm:$0xff] }
 0x1e1   : > { %v1855_v60 = vld [vmem:[#allocation4] ss:$2 sm:$0x7f]  ;;  %v1857_v61 = vld [vmem:[#allocation4 + $0x1] ss:$2 sm:$0x7f] }
 0x1e2   : > { %v1860_v62 = vmax.f32 %v1855_v60, %v1857_v61  ;;  %v1859_v63 = vld [vmem:[#allocation4 + $0x2] ss:$2 sm:$0x7f] }
 0x1e3   : > { %v2720_v60 = vld [vmem:[#allocation5 + $0x1a] ss:$2 sm:$0xf]  ;;  %v5651_v61 = vld [vmem:[#allocation12 + $0x378] sm:$0xff] }
 0x1e4   : > { %v1861_v0 = vmax.f32 %v1860_v62, %v1859_v63  ;;  %v5659_v62 = vld [vmem:[#allocation12 + $0x3b8] sm:$0xff] }
 0x1e6   : > { %1862 = vst [vmem:[#allocation5 + $0x10] sm:$0x7f] %v1861_v0  ;;  %v5667_v0 = vld [vmem:[#allocation12 + $0x3f8] sm:$0xff] }
 0x1ed   : > { %v1886_v5 = vld [vmem:[#allocation5 + $0x11] ss:$2 sm:$0xf]  ;;  %v1865_v6 = vld [vmem:[#allocation5 + $0x10] ss:$2 sm:$0xf] }
 0x1ee   : > { %v1887_v7 = vpack.c.bf16 %v1886_v5, %v1884_v1  ;;  %v1866_v8 = vpack.c.bf16 %v1865_v6, %v1863_v2  ;;  %v2030_v9 = vld [vmem:[#allocation5 + $0x2] ss:$2 sm:$0xff]  ;;  %v2032_v10 = vld [vmem:[#allocation5 + $0x12] ss:$2 sm:$0xf] }
 0x1ef   : > { %v2033_v13 = vpack.c.bf16 %v2032_v10, %v2030_v9  ;;  %v2116_v14 = vld [vmem:[#allocation5 + $0x3] ss:$2 sm:$0xff]  ;;  %v2118_v12 = vld [vmem:[#allocation5 + $0x13] ss:$2 sm:$0xf] }
 0x1f0   : > { %1961 = vmatmul.bf16.vlgmr.msra.gmra.mxu0 %v1887_v7  ;;  %2023 = vmatmul.bf16.vlgmr.msra.gmra.mxu1 %v1866_v8  ;;  %v2119_v16 = vpack.c.bf16 %v2118_v12, %v2116_v14  ;;  %v2202_v29 = vld [vmem:[#allocation5 + $0x4] ss:$2 sm:$0xff]  ;;  %v2204_v30 = vld [vmem:[#allocation5 + $0x14] ss:$2 sm:$0xf] }
 0x1f1   : > { %2107 = vmatmul.bf16.vlgmr.msra.gmra.mxu2 %v2033_v13  ;;  %2615 = vmatpush.bf16.msra.mxu0 %v5611_v3  ;;  %v2288_v32 = vld [vmem:[#allocation5 + $0x5] ss:$2 sm:$0xff]  ;;  %v2290_v33 = vld [vmem:[#allocation5 + $0x15] ss:$2 sm:$0xf]  ;;  %v2205_v38 = vpack.c.bf16 %v2204_v30, %v2202_v29 }
 0x1f2   : > { %2193 = vmatmul.bf16.vlgmr.msra.gmra.mxu3 %v2119_v16  ;;  %2701 = vmatpush.bf16.msra.mxu1 %v5619_v4  ;;  %v2374_v34 = vld [vmem:[#allocation5 + $0x6] ss:$2 sm:$0xff]  ;;  %v2376_v35 = vld [vmem:[#allocation5 + $0x16] ss:$2 sm:$0xf]  ;;  %v2291_v39 = vpack.c.bf16 %v2290_v33, %v2288_v32 }
 0x1f3   : > { %2787 = vmatpush.bf16.msra.mxu2 %v5627_v11  ;;  %2873 = vmatpush.bf16.msra.mxu3 %v5635_v15  ;;  %v2460_v36 = vld [vmem:[#allocation5 + $0x7] ss:$2 sm:$0xff]  ;;  %v2377_v41 = vpack.c.bf16 %v2376_v35, %v2374_v34  ;;  %v2546_v63 = vld [vmem:[#allocation5 + $0x8] ss:$2 sm:$0xff]  ;;  %v5636_v34 = vld [vmem:[#allocation12 + $0x300] sm:$0xff] }
 0x1f4   : > { %v2463_v44 = vpack.c.bf16 %v2462_v37, %v2460_v36  ;;  %v2632_v1 = vld [vmem:[#allocation5 + $0x9] ss:$2 sm:$0xff]  ;;  %v2718_v2 = vld [vmem:[#allocation5 + $0xa] ss:$2 sm:$0xff]  ;;  %v2549_v5 = vpack.c.bf16 %v2548_v56, %v2546_v63  ;;  %v5641_v14 = vld [vmem:[#allocation12 + $0x328] sm:$0xff] }
 0x1f5   : > { %2616 = vmatpush.bf16.msra.mxu0 %v5610_v17  ;;  %v2804_v3 = vld [vmem:[#allocation5 + $0xb] ss:$2 sm:$0xff]  ;;  %v2806_v4 = vld [vmem:[#allocation5 + $0x1b] ss:$2 sm:$0xf]  ;;  %v2635_v7 = vpack.c.bf16 %v2634_v59, %v2632_v1  ;;  %v2721_v8 = vpack.c.bf16 %v2720_v60, %v2718_v2 }
 0x1f6   : > { %2702 = vmatpush.bf16.msra.mxu1 %v5618_v18  ;;  %v5642_v6 = vld [vmem:[#allocation12 + $0x330] sm:$0xff]  ;;  %v2807_v11 = vpack.c.bf16 %v2806_v4, %v2804_v3  ;;  %v5649_v12 = vld [vmem:[#allocation12 + $0x368] sm:$0xff]  ;;  %v5640_v17 = vld [vmem:[#allocation12 + $0x320] sm:$0xff] }
 0x1f7   : > { %2788 = vmatpush.bf16.msra.mxu2 %v5626_v19  ;;  %2874 = vmatpush.bf16.msra.mxu3 %v5634_v21  ;;  %v5650_v9 = vld [vmem:[#allocation12 + $0x370] sm:$0xff]  ;;  %v5657_v15 = vld [vmem:[#allocation12 + $0x3a8] sm:$0xff]  ;;  %v5648_v18 = vld [vmem:[#allocation12 + $0x360] sm:$0xff] }
 0x1f8   : > { %v5658_v10 = vld [vmem:[#allocation12 + $0x3b0] sm:$0xff]  ;;  %v5665_v16 = vld [vmem:[#allocation12 + $0x3e8] sm:$0xff]  ;;  %v5656_v19 = vld [vmem:[#allocation12 + $0x3a0] sm:$0xff] }
 0x1f9   : > { %2617 = vmatpush.bf16.msra.mxu0 %v5609_v22  ;;  %v5666_v13 = vld [vmem:[#allocation12 + $0x3f0] sm:$0xff]  ;;  %v5664_v21 = vld [vmem:[#allocation12 + $0x3e0] sm:$0xff]  ;;  %v5639_v22 = vld [vmem:[#allocation12 + $0x318] sm:$0xff] }
 0x1fa   : > { %2703 = vmatpush.bf16.msra.mxu1 %v5617_v23  ;;  %v5647_v23 = vld [vmem:[#allocation12 + $0x358] sm:$0xff]  ;;  %v5662_v29 = vld [vmem:[#allocation12 + $0x3d0] sm:$0xff]  ;;  %v5637_v30 = vld [vmem:[#allocation12 + $0x308] sm:$0xff] }
 0x1fb   : > { %2789 = vmatpush.bf16.msra.mxu2 %v5625_v24  ;;  %2875 = vmatpush.bf16.msra.mxu3 %v5633_v25  ;;  %v5655_v24 = vld [vmem:[#allocation12 + $0x398] sm:$0xff]  ;;  %v5653_v32 = vld [vmem:[#allocation12 + $0x388] sm:$0xff]  ;;  %v5644_v36 = vld [vmem:[#allocation12 + $0x340] sm:$0xff] }
 0x1fc   : > { %v5663_v25 = vld [vmem:[#allocation12 + $0x3d8] sm:$0xff]  ;;  %v5661_v33 = vld [vmem:[#allocation12 + $0x3c8] sm:$0xff]  ;;  %v5652_v37 = vld [vmem:[#allocation12 + $0x380] sm:$0xff] }
 0x1fd   : > { %2618 = vmatpush.bf16.msra.mxu0 %v5608_v26  ;;  %v5638_v26 = vld [vmem:[#allocation12 + $0x310] sm:$0xff]  ;;  %v2892_v35 = vld [vmem:[#allocation5 + $0x1c] ss:$2 sm:$0xf]  ;;  %v5699_v56 = vld [vmem:[#allocation13 + $0xf4] sm:$0xf0] }
 0x1fe   : > { %2704 = vmatpush.bf16.msra.mxu1 %v5616_v27  ;;  %v5646_v27 = vld [vmem:[#allocation12 + $0x350] sm:$0xff]  ;;  %v5131_v59 = vld [vmem:[#allocation13 + $0xf8] sm:$0xf0]  ;;  %v5121_v60 = vld [vmem:[#allocation13 + $0xe0] sm:$0xf] }
 0x1ff   : > { %2790 = vmatpush.bf16.msra.mxu2 %v5624_v28  ;;  %2876 = vmatpush.bf16.msra.mxu3 %v5632_v31  ;;  %v5654_v28 = vld [vmem:[#allocation12 + $0x390] sm:$0xff]  ;;  %v5645_v31 = vld [vmem:[#allocation12 + $0x348] sm:$0xff] }
 0x200   : > { %2279 = vmatmul.bf16.vlgmr.msrb.gmra.mxu0 %v2205_v38  ;;  %2365 = vmatmul.bf16.vlgmr.msrb.gmra.mxu1 %v2291_v39  ;;  %v5660_v38 = vld [vmem:[#allocation12 + $0x3c0] sm:$0xff]  ;;  %v5123_v1 = vld [vmem:[#allocation13 + $0xe8] sm:$0xf0]  ;;  %v5193_v2 = vld [vmem:[#allocation13 + $0x70] sm:$0xf] }
 0x201   : > { %2451 = vmatmul.bf16.vlgmr.msrb.gmra.mxu2 %v2377_v41  ;;  %2619 = vmatpush.bf16.msra.mxu0 %v5607_v20  ;;  %v2978_v20 = vld [vmem:[#allocation5 + $0x1d] ss:$2 sm:$0xf]  ;;  %v2890_v39 = vld [vmem:[#allocation5 + $0xc] ss:$2 sm:$0xff] }
 0x202   : > { %2537 = vmatmul.bf16.vlgmr.msrb.gmra.mxu3 %v2463_v44  ;;  %2705 = vmatpush.bf16.msra.mxu1 %v5615_v40  ;;  %v3064_v40 = vld [vmem:[#allocation5 + $0x1e] ss:$2 sm:$0xf]  ;;  %v2976_v41 = vld [vmem:[#allocation5 + $0xd] ss:$2 sm:$0xff] }
 0x203   : > { %2791 = vmatpush.bf16.msra.mxu2 %v5623_v42  ;;  %2877 = vmatpush.bf16.msra.mxu3 %v5631_v43  ;;  %v3062_v42 = vld [vmem:[#allocation5 + $0xe] ss:$2 sm:$0xff]  ;;  %v3148_v43 = vld [vmem:[#allocation5 + $0xf] ss:$2 sm:$0xff] }
 0x204   : > { %v3150_v44 = vld [vmem:[#allocation5 + $0x1f] ss:$2 sm:$0xf] }
 0x205   : > { %2620 = vmatpush.bf16.msra.mxu0 %v5606_v45  ;;  %v2893_v45 = vpack.c.bf16 %v2892_v35, %v2890_v39  ;;  %v5177_v35 = vld [vmem:[#allocation13 + $0x50] sm:$0xf] }
 0x206   : > { %2706 = vmatpush.bf16.msra.mxu1 %v5614_v46  ;;  %v2979_v46 = vpack.c.bf16 %v2978_v20, %v2976_v41  ;;  %v5097_v41 = vld [vmem:[#allocation13 + $0xb0] sm:$0xf] }
 0x207   : > { %2792 = vmatpush.bf16.msra.mxu2 %v5622_v47  ;;  %2878 = vmatpush.bf16.msra.mxu3 %v5630_v48  ;;  %v3065_v47 = vpack.c.bf16 %v3064_v40, %v3062_v42  ;;  %v3151_v48 = vpack.c.bf16 %v3150_v44, %v3148_v43  ;;  %v5179_v40 = vld [vmem:[#allocation13 + $0x58] sm:$0xf0]  ;;  %v5691_v42 = vld [vmem:[#allocation13 + $0xb4] sm:$0xf0] }
 0x208   : > { %v5098_v44 = vor.u32 %v5691_v42, %v5097_v41  ;;  %v5714_v41 = vld [vmem:[#allocation13 + $0x174] sm:$0xf]  ;;  %v5259_v42 = vld [vmem:[#allocation13 + $0x178] sm:$0xf0] }
 0x209   : > { %2621 = vmatpush.bf16.msra.mxu0 %v5605_v49 }
 0x20a   : > { %2707 = vmatpush.bf16.msra.mxu1 %v5613_v50 }
 0x20b   : > { %2793 = vmatpush.bf16.msra.mxu2 %v5621_v51  ;;  %2879 = vmatpush.bf16.msra.mxu3 %v5629_v52 }
 0x20d   : > { %2622 = vmatpush.bf16.msra.mxu0 %v5604_v53 }
 0x20e   : > { %2708 = vmatpush.bf16.msra.mxu1 %v5612_v54 }
 0x20f   : > { %2794 = vmatpush.bf16.msra.mxu2 %v5620_v57  ;;  %2880 = vmatpush.bf16.msra.mxu3 %v5628_v58  ;;  %v5698_v57 = vld [vmem:[#allocation13 + $0xf4] sm:$0xf] }
 0x210   : > { %2623 = vmatmul.bf16.vlgmr.msra.gmra.mxu0 %v2549_v5  ;;  %v5134_v63 = vor.u32 %v5698_v57, %v5131_v59  ;;  %v5683_v5 = vld [vmem:[#allocation13 + $0x74] sm:$0xf0] }
 0x211   : > { %2959 = vmatpush.bf16.msrb.mxu0 %v5643_v55  ;;  %2709 = vmatmul.bf16.vlgmr.msra.gmra.mxu1 %v2635_v7  ;;  %v5129_v55 = vld [vmem:[#allocation13 + $0xf0] sm:$0xf]  ;;  %v5195_v7 = vld [vmem:[#allocation13 + $0x78] sm:$0xf0] }
 0x212   : > { %3045 = vmatpush.bf16.msrb.mxu1 %v5651_v61  ;;  %2795 = vmatmul.bf16.vlgmr.msra.gmra.mxu2 %v2721_v8  ;;  %v5130_v58 = vor.u32 %v5699_v56, %v5129_v55  ;;  %v5697_v61 = vld [vmem:[#allocation13 + $0xe4] sm:$0xf0]  ;;  %v5171_v55 = vld [vmem:[#allocation13 + $0x48] sm:$0xf0] }
 0x213   : > { %3131 = vmatpush.bf16.msrb.mxu2 %v5659_v62  ;;  %3217 = vmatpush.bf16.msrb.mxu3 %v5667_v0  ;;  %v5696_v0 = vld [vmem:[#allocation13 + $0xe4] sm:$0xf]  ;;  %v5122_v4 = vor.u32 %v5697_v61, %v5121_v60 }
 0x214   : > { %2881 = vmatmul.bf16.vlgmr.msra.gmra.mxu3 %v2807_v11  ;;  %v5126_v8 = vor.u32 %v5696_v0, %v5123_v1  ;;  %v5113_v11 = vld [vmem:[#allocation13 + $0xd0] sm:$0xf]  ;;  %v5089_v1 = vld [vmem:[#allocation13 + $0xa0] sm:$0xf] }
 0x215   : > { %2960 = vmatpush.bf16.msrb.mxu0 %v5642_v6  ;;  %v5682_v6 = vld [vmem:[#allocation13 + $0x74] sm:$0xf] }
 0x216   : > { %3046 = vmatpush.bf16.msrb.mxu1 %v5650_v9  ;;  %v5194_v9 = vor.u32 %v5683_v5, %v5193_v2  ;;  %v5689_v2 = vld [vmem:[#allocation13 + $0xa4] sm:$0xf0] }
 0x217   : > { %3132 = vmatpush.bf16.msrb.mxu2 %v5658_v10  ;;  %3218 = vmatpush.bf16.msrb.mxu3 %v5666_v13  ;;  %v5198_v10 = vor.u32 %v5682_v6, %v5195_v7  ;;  %v5695_v13 = vld [vmem:[#allocation13 + $0xd4] sm:$0xf0]  ;;  %v5090_v7 = vor.u32 %v5689_v2, %v5089_v1  ;;  %v5669_v2 = vld [vmem:[#allocation13 + $0x4] sm:$0xf0] }
 0x219   : > { %2961 = vmatpush.bf16.msrb.mxu0 %v5641_v14  ;;  %v5694_v14 = vld [vmem:[#allocation13 + $0xd4] sm:$0xf] }
 0x21a   : > { %3047 = vmatpush.bf16.msrb.mxu1 %v5649_v12 }
 0x21b   : > { %3133 = vmatpush.bf16.msrb.mxu2 %v5657_v15  ;;  %3219 = vmatpush.bf16.msrb.mxu3 %v5665_v16  ;;  %v5115_v15 = vld [vmem:[#allocation13 + $0xd8] sm:$0xf0]  ;;  %v5185_v16 = vld [vmem:[#allocation13 + $0x60] sm:$0xf] }
 0x21d   : > { %2962 = vmatpush.bf16.msrb.mxu0 %v5640_v17  ;;  %v5681_v17 = vld [vmem:[#allocation13 + $0x64] sm:$0xf0] }
 0x21e   : > { %3048 = vmatpush.bf16.msrb.mxu1 %v5648_v18  ;;  %v5186_v18 = vor.u32 %v5681_v17, %v5185_v16 }
 0x21f   : > { %3134 = vmatpush.bf16.msrb.mxu2 %v5656_v19  ;;  %3220 = vmatpush.bf16.msrb.mxu3 %v5664_v21  ;;  %v5680_v19 = vld [vmem:[#allocation13 + $0x64] sm:$0xf]  ;;  %v5187_v21 = vld [vmem:[#allocation13 + $0x68] sm:$0xf0] }
 0x221   : > { %2963 = vmatpush.bf16.msrb.mxu0 %v5639_v22  ;;  %v5114_v22 = vor.u32 %v5695_v13, %v5113_v11  ;;  %v5674_v11 = vld [vmem:[#allocation13 + $0x34] sm:$0xf] }
 0x222   : > { %3049 = vmatpush.bf16.msrb.mxu1 %v5647_v23  ;;  %v5190_v23 = vor.u32 %v5680_v19, %v5187_v21  ;;  %v5686_v19 = vld [vmem:[#allocation13 + $0x94] sm:$0xf]  ;;  %v5083_v21 = vld [vmem:[#allocation13 + $0x98] sm:$0xf0] }
 0x223   : > { %3135 = vmatpush.bf16.msrb.mxu2 %v5655_v24  ;;  %3221 = vmatpush.bf16.msrb.mxu3 %v5663_v25  ;;  %v5118_v25 = vor.u32 %v5694_v14, %v5115_v15  ;;  %v5163_v14 = vld [vmem:[#allocation13 + $0x38] sm:$0xf0]  ;;  %v5687_v15 = vld [vmem:[#allocation13 + $0x94] sm:$0xf0] }
 0x224   : > { %v5166_v17 = vor.u32 %v5674_v11, %v5163_v14  ;;  %v5323_v11 = vld [vmem:[#allocation13 + $0x1f8] sm:$0xf0] }
 0x225   : > { %2964 = vmatpush.bf16.msrb.mxu0 %v5638_v26  ;;  %v5105_v26 = vld [vmem:[#allocation13 + $0xc0] sm:$0xf] }
 0x226   : > { %3050 = vmatpush.bf16.msrb.mxu1 %v5646_v27  ;;  %v5693_v27 = vld [vmem:[#allocation13 + $0xc4] sm:$0xf0] }
 0x227   : > { %3136 = vmatpush.bf16.msrb.mxu2 %v5654_v28  ;;  %3222 = vmatpush.bf16.msrb.mxu3 %v5662_v29  ;;  %v5692_v28 = vld [vmem:[#allocation13 + $0xc4] sm:$0xf]  ;;  %v5107_v29 = vld [vmem:[#allocation13 + $0xc8] sm:$0xf0] }
 0x229   : > { %2965 = vmatpush.bf16.msrb.mxu0 %v5637_v30  ;;  %v5106_v30 = vor.u32 %v5693_v27, %v5105_v26 }
 0x22a   : > { %3051 = vmatpush.bf16.msrb.mxu1 %v5645_v31 }
 0x22b   : > { %3137 = vmatpush.bf16.msrb.mxu2 %v5653_v32  ;;  %3223 = vmatpush.bf16.msrb.mxu3 %v5661_v33  ;;  %v5110_v32 = vor.u32 %v5692_v28, %v5107_v29 }
 0x22d   : > { %2966 = vmatpush.bf16.msrb.mxu0 %v5636_v34 }
 0x22e   : > { %3052 = vmatpush.bf16.msrb.mxu1 %v5644_v36  ;;  %v5679_v36 = vld [vmem:[#allocation13 + $0x54] sm:$0xf0] }
 0x22f   : > { %3138 = vmatpush.bf16.msrb.mxu2 %v5652_v37  ;;  %3224 = vmatpush.bf16.msrb.mxu3 %v5660_v38  ;;  %v5678_v37 = vld [vmem:[#allocation13 + $0x54] sm:$0xf]  ;;  %v5178_v39 = vor.u32 %v5679_v36, %v5177_v35 }
 0x230   : > { %2967 = vmatmul.bf16.vlgmr.msrb.gmra.mxu0 %v2893_v45  ;;  %v5182_v43 = vor.u32 %v5678_v37, %v5179_v40  ;;  %v5690_v45 = vld [vmem:[#allocation13 + $0xb4] sm:$0xf] }
 0x231   : > { %3053 = vmatmul.bf16.vlgmr.msrb.gmra.mxu1 %v2979_v46  ;;  %3371 = vmatpush.bf16.msra.mxu0 %v5130_v58  ;;  %v5099_v46 = vld [vmem:[#allocation13 + $0xb8] sm:$0xf0] }
 0x232   : > { %3139 = vmatmul.bf16.vlgmr.msrb.gmra.mxu2 %v3065_v47  ;;  %3225 = vmatmul.bf16.vlgmr.msrb.gmra.mxu3 %v3151_v48  ;;  %v5169_v47 = vld [vmem:[#allocation13 + $0x40] sm:$0xf]  ;;  %v5102_v48 = vor.u32 %v5690_v45, %v5099_v46  ;;  %v5262_v45 = vor.u32 %v5714_v41, %v5259_v42  ;;  %v5145_v46 = vld [vmem:[#allocation13 + $0x10] sm:$0xf]  ;;  %v5707_v41 = vld [vmem:[#allocation13 + $0x134] sm:$0xf0] }
 0x233   : > { %3384 = vmatpush.bf16.msra.mxu1 %v5134_v63  ;;  %3477 = vmatpush.bf16.msra.mxu2 %v5194_v9  ;;  %v5706_v42 = vld [vmem:[#allocation13 + $0x134] sm:$0xf] }
 0x234   : > { %3490 = vmatpush.bf16.msra.mxu3 %v5198_v10 }
 0x235   : > { %3372 = vmatpush.bf16.msra.mxu0 %v5122_v4  ;;  %v5688_v4 = vld [vmem:[#allocation13 + $0xa4] sm:$0xf] }
 0x237   : > { %3385 = vmatpush.bf16.msra.mxu1 %v5126_v8  ;;  %3478 = vmatpush.bf16.msra.mxu2 %v5186_v18 }
 0x238   : > { %3491 = vmatpush.bf16.msra.mxu3 %v5190_v23  ;;  %v5086_v23 = vor.u32 %v5686_v19, %v5083_v21  ;;  %v5729_v21 = vld [vmem:[#allocation13 + $0x1e4] sm:$0xf0] }
 0x239   : > { %3373 = vmatpush.bf16.msra.mxu0 %v5114_v22  ;;  %v5153_v22 = vld [vmem:[#allocation13 + $0x20] sm:$0xf] }
 0x23b   : > { %3386 = vmatpush.bf16.msra.mxu1 %v5118_v25  ;;  %3479 = vmatpush.bf16.msra.mxu2 %v5178_v39  ;;  %v5155_v25 = vld [vmem:[#allocation13 + $0x28] sm:$0xf0]  ;;  %v5715_v39 = vld [vmem:[#allocation13 + $0x174] sm:$0xf0] }
 0x23c   : > { %3492 = vmatpush.bf16.msra.mxu3 %v5182_v43 }
 0x23d   : > { %3374 = vmatpush.bf16.msra.mxu0 %v5106_v30  ;;  %v5073_v30 = vld [vmem:[#allocation13 + $0x80] sm:$0xf] }
 0x23f   : > { %3387 = vmatpush.bf16.msra.mxu1 %v5110_v32  ;;  %v5684_v32 = vld [vmem:[#allocation13 + $0x84] sm:$0xf] }
 0x241   : > { %3375 = vmatpush.bf16.msra.mxu0 %v5098_v44 }
 0x243   : > { %3388 = vmatpush.bf16.msra.mxu1 %v5102_v48  ;;  %v5670_v48 = vld [vmem:[#allocation13 + $0x14] sm:$0xf] }
 0x245   : > { %3376 = vmatpush.bf16.msra.mxu0 %v5090_v7 }
 0x26d   : > { %v1962_v49 = vpop.f32.mrf.mxu0  ;;  %v2024_v50 = vpop.f32.mrf.mxu1 }
 0x26e   : > { %v2025_v33 = vadd.f32 %v2024_v50, %v1962_v49  ;;  %v5677_v49 = vld [vmem:[#allocation13 + $0x44] sm:$0xf0]  ;;  %v5676_v50 = vld [vmem:[#allocation13 + $0x44] sm:$0xf] }
 0x26f   : > { %v5174_v57 = vor.u32 %v5676_v50, %v5171_v55  ;;  %v5147_v50 = vld [vmem:[#allocation13 + $0x18] sm:$0xf0]  ;;  %v5249_v55 = vld [vmem:[#allocation13 + $0x160] sm:$0xf] }
 0x271   : > { %3493 = vmatpush.bf16.msra.mxu3 %v5174_v57  ;;  %v5150_v57 = vor.u32 %v5670_v48, %v5147_v50  ;;  %v5297_v48 = vld [vmem:[#allocation13 + $0x1c0] sm:$0xf]  ;;  %v5724_v50 = vld [vmem:[#allocation13 + $0x1c4] sm:$0xf] }
 0x274   : > { %v2108_v51 = vpop.f32.mrf.mxu2 }
 0x275   : > { %v6364_v52 = vpop.f32.mrf.mxu3  ;;  %v6366_v53 = vpop.f32.mrf.mxu0  ;;  %v2113_v20 = vadd.f32 %v2108_v51, %v2025_v33  ;;  %v5170_v51 = vor.u32 %v5677_v49, %v5169_v47  ;;  %3494 = vmatpush.bf16.msra.mxu3 %v5166_v17  ;;  %v5671_v47 = vld [vmem:[#allocation13 + $0x14] sm:$0xf0]  ;;  %v5243_v17 = vld [vmem:[#allocation13 + $0x158] sm:$0xf0] }
 0x276   : > { %v6368_v54 = vpop.f32.mrf.mxu1  ;;  %v5146_v49 = vor.u32 %v5671_v47, %v5145_v46 }
 0x277   : > { %v2199_v58 = vadd.f32 %v6364_v52, %v2113_v20  ;;  %v2027_v59 = vadd.f32 %v6368_v54, %v6366_v53  ;;  %3480 = vmatpush.bf16.msra.mxu2 %v5170_v51  ;;  %v5091_v52 = vld [vmem:[#allocation13 + $0xa8] sm:$0xf0]  ;;  %v5161_v53 = vld [vmem:[#allocation13 + $0x30] sm:$0xf]  ;;  %v5675_v54 = vld [vmem:[#allocation13 + $0x34] sm:$0xf0] }
 0x278   : > { %v5094_v8 = vor.u32 %v5688_v4, %v5091_v52  ;;  %v5075_v20 = vld [vmem:[#allocation13 + $0x88] sm:$0xf0]  ;;  %v5668_v4 = vld [vmem:[#allocation13 + $0x4] sm:$0xf] }
 0x279   : > { %v5078_v40 = vor.u32 %v5684_v32, %v5075_v20  ;;  %v5235_v32 = vld [vmem:[#allocation13 + $0x148] sm:$0xf0] }
 0x27a   : > { %3389 = vmatpush.bf16.msra.mxu1 %v5094_v8 }
 0x27c   : > { %v6370_v62 = vpop.f32.mrf.mxu2 }
 0x27d   : > { %v6372_v3 = vpop.f32.mrf.mxu3  ;;  %v2280_v12 = vpop.f32.mrf.mxu0  ;;  %v2114_v63 = vadd.f32 %v6370_v62, %v2027_v59  ;;  %v5162_v62 = vor.u32 %v5675_v54, %v5161_v53  ;;  %v5712_v59 = vld [vmem:[#allocation13 + $0x164] sm:$0xf]  ;;  %v5730_v53 = vld [vmem:[#allocation13 + $0x1f4] sm:$0xf] }
 0x27e   : > { %v2366_v24 = vpop.f32.mrf.mxu1  ;;  %v2285_v60 = vadd.f32 %v2280_v12, %v2199_v58  ;;  %v5081_v12 = vld [vmem:[#allocation13 + $0x90] sm:$0xf]  ;;  %3390 = vmatpush.bf16.msra.mxu1 %v5086_v23  ;;  %v5315_v23 = vld [vmem:[#allocation13 + $0x1e8] sm:$0xf0] }
 0x27f   : > { %v2200_v9 = vadd.f32 %v6372_v3, %v2114_v63  ;;  %v5082_v18 = vor.u32 %v5687_v15, %v5081_v12  ;;  %3481 = vmatpush.bf16.msra.mxu2 %v5162_v62  ;;  %v5673_v3 = vld [vmem:[#allocation13 + $0x24] sm:$0xf0]  ;;  %v5711_v62 = vld [vmem:[#allocation13 + $0x154] sm:$0xf0]  ;;  %v5326_v12 = vor.u32 %v5730_v53, %v5323_v11 }
 0x280   : > { %v2371_v5 = vadd.f32 %v2366_v24, %v2285_v60  ;;  %v5672_v24 = vld [vmem:[#allocation13 + $0x24] sm:$0xf]  ;;  %v5154_v27 = vor.u32 %v5673_v3, %v5153_v22  ;;  %v5251_v60 = vld [vmem:[#allocation13 + $0x168] sm:$0xf0] }
 0x281   : > { %3377 = vmatpush.bf16.msra.mxu0 %v5082_v18  ;;  %v5158_v28 = vor.u32 %v5672_v24, %v5155_v25  ;;  %v5254_v1 = vor.u32 %v5712_v59, %v5251_v60  ;;  %v5313_v18 = vld [vmem:[#allocation13 + $0x1e0] sm:$0xf]  ;;  %v5728_v22 = vld [vmem:[#allocation13 + $0x1e4] sm:$0xf] }
 0x282   : > { %3391 = vmatpush.bf16.msra.mxu1 %v5078_v40  ;;  %v5225_v40 = vld [vmem:[#allocation13 + $0x130] sm:$0xf]  ;;  %v5704_v60 = vld [vmem:[#allocation13 + $0x124] sm:$0xf] }
 0x283   : > { %3482 = vmatpush.bf16.msra.mxu2 %v5154_v27  ;;  %3495 = vmatpush.bf16.msra.mxu3 %v5158_v28  ;;  %v5233_v27 = vld [vmem:[#allocation13 + $0x140] sm:$0xf]  ;;  %v5709_v28 = vld [vmem:[#allocation13 + $0x144] sm:$0xf0]  ;;  %v5226_v47 = vor.u32 %v5707_v41, %v5225_v40  ;;  %v5275_v41 = vld [vmem:[#allocation13 + $0x198] sm:$0xf0] }
 0x284   : > { %v2452_v31 = vpop.f32.mrf.mxu2 }
 0x285   : > { %v6374_v34 = vpop.f32.mrf.mxu3  ;;  %v2282_v38 = vpop.f32.mrf.mxu0  ;;  %v2457_v10 = vadd.f32 %v2452_v31, %v2371_v5  ;;  %v5685_v31 = vld [vmem:[#allocation13 + $0x84] sm:$0xf0]  ;;  %v5139_v5 = vld [vmem:[#allocation13 + $0x8] sm:$0xf0] }
 0x286   : > { %v2368_v56 = vpop.f32.mrf.mxu1  ;;  %v2286_v16 = vadd.f32 %v2282_v38, %v2200_v9  ;;  %v5074_v37 = vor.u32 %v5685_v31, %v5073_v30  ;;  %v5257_v38 = vld [vmem:[#allocation13 + $0x170] sm:$0xf]  ;;  %3615 = vmatpush.bf16.msrb.mxu1 %v5262_v45  ;;  %v5142_v8 = vor.u32 %v5668_v4, %v5139_v5  ;;  %v5318_v30 = vor.u32 %v5728_v22, %v5315_v23  ;;  %v5861_v4 = vld [vmem:[%s6440_s6] ss:$0 sm:$0xff]  ;;  %v5720_v23 = vld [vmem:[#allocation13 + $0x1a4] sm:$0xf] }
 0x287   : > { %v2543_v26 = vadd.f32 %v6374_v34, %v2457_v10  ;;  %v5258_v34 = vor.u32 %v5715_v39, %v5257_v38  ;;  %3483 = vmatpush.bf16.msra.mxu2 %v5146_v49  ;;  %3496 = vmatpush.bf16.msra.mxu3 %v5150_v57  ;;  %v5321_v9 = vld [vmem:[#allocation13 + $0x1f0] sm:$0xf]  ;;  %v5731_v10 = vld [vmem:[#allocation13 + $0x1f4] sm:$0xf0]  ;;  %v5234_v31 = vor.u32 %v5709_v28, %v5233_v27  ;;  %v5307_v39 = vld [vmem:[#allocation13 + $0x1d8] sm:$0xf0] }
 0x288   : > { %v2372_v33 = vadd.f32 %v2368_v56, %v2286_v16  ;;  %3378 = vmatpush.bf16.msra.mxu0 %v5074_v37  ;;  %v5713_v56 = vld [vmem:[#allocation13 + $0x164] sm:$0xf0]  ;;  %v5322_v54 = vor.u32 %v5731_v10, %v5321_v9  ;;  %v5710_v16 = vld [vmem:[#allocation13 + $0x154] sm:$0xf]  ;;  %v5217_v57 = vld [vmem:[#allocation13 + $0x120] sm:$0xf] }
 0x289   : > { %v5250_v58 = vor.u32 %v5713_v56, %v5249_v55  ;;  %v5246_v19 = vor.u32 %v5710_v16, %v5243_v17  ;;  %v5725_v49 = vld [vmem:[#allocation13 + $0x1c4] sm:$0xf0]  ;;  %v5723_v9 = vld [vmem:[#allocation13 + $0x1b4] sm:$0xf0]  ;;  %v5722_v10 = vld [vmem:[#allocation13 + $0x1b4] sm:$0xf] }
 0x28a   : > { %3616 = vmatpush.bf16.msrb.mxu1 %v5254_v1  ;;  %v5721_v22 = vld [vmem:[#allocation13 + $0x1a4] sm:$0xf0]  ;;  %v5201_v27 = vld [vmem:[#allocation13 + $0x100] sm:$0xf] }
 0x28b   : > { %3497 = vmatpush.bf16.msra.mxu3 %v5142_v8  ;;  %v5289_v8 = vld [vmem:[#allocation13 + $0x1b0] sm:$0xf]  ;;  %v5701_v28 = vld [vmem:[#allocation13 + $0x104] sm:$0xf0] }
 0x28c   : > { %v2454_v61 = vpop.f32.mrf.mxu2  ;;  %3602 = vmatpush.bf16.msrb.mxu0 %v5258_v34  ;;  %v5290_v17 = vor.u32 %v5723_v9, %v5289_v8  ;;  %v5745_v8 = vld [vmem:[#allocation13 + $0x264] sm:$0xf0] }
 0x28d   : > { %v6380_v0 = vpop.f32.mrf.mxu3  ;;  %v2624_v6 = vpop.f32.mrf.mxu0  ;;  %v2458_v43 = vadd.f32 %v2454_v61, %v2372_v33  ;;  %v5137_v61 = vld [vmem:[#allocation13] sm:$0xf]  ;;  %v5305_v33 = vld [vmem:[#allocation13 + $0x1d0] sm:$0xf] }
 0x28e   : > { %v2710_v13 = vpop.f32.mrf.mxu1  ;;  %v2629_v35 = vadd.f32 %v2624_v6, %v2543_v26  ;;  %v5138_v52 = vor.u32 %v5669_v2, %v5137_v61  ;;  %v5314_v26 = vor.u32 %v5729_v21, %v5313_v18  ;;  %3617 = vmatpush.bf16.msrb.mxu1 %v5246_v19  ;;  %v5219_v61 = vld [vmem:[#allocation13 + $0x128] sm:$0xf0]  ;;  %v5281_v18 = vld [vmem:[#allocation13 + $0x1a0] sm:$0xf] }
 0x28f   : > { %v2544_v6 = vadd.f32 %v6380_v0, %v2458_v43  ;;  %3742 = vmatpush.bf16.msrb.mxu3 %v5326_v12  ;;  %v5227_v43 = vld [vmem:[#allocation13 + $0x138] sm:$0xf0]  ;;  %v5222_v11 = vor.u32 %v5704_v60, %v5219_v61  ;;  %v5702_v12 = vld [vmem:[#allocation13 + $0x114] sm:$0xf]  ;;  %v5385_v61 = vld [vmem:[#allocation13 + $0x270] sm:$0xf] }
 0x290   : > { %v2715_v51 = vadd.f32 %v2710_v13, %v2629_v35  ;;  %3603 = vmatpush.bf16.msrb.mxu0 %v5250_v58  ;;  %v5241_v13 = vld [vmem:[#allocation13 + $0x150] sm:$0xf]  ;;  %3484 = vmatpush.bf16.msra.mxu2 %v5138_v52  ;;  %v5727_v35 = vld [vmem:[#allocation13 + $0x1d4] sm:$0xf0]  ;;  %v5230_v56 = vor.u32 %v5706_v42, %v5227_v43  ;;  %v5705_v58 = vld [vmem:[#allocation13 + $0x124] sm:$0xf0] }
 0x291   : > { %v5242_v15 = vor.u32 %v5711_v62, %v5241_v13  ;;  %v5306_v45 = vor.u32 %v5727_v35, %v5305_v33  ;;  %v5218_v52 = vor.u32 %v5705_v58, %v5217_v57  ;;  %v5291_v13 = vld [vmem:[#allocation13 + $0x1b8] sm:$0xf0]  ;;  %v5209_v62 = vld [vmem:[#allocation13 + $0x110] sm:$0xf]  ;;  %v5282_v33 = vor.u32 %v5721_v22, %v5281_v18  ;;  %v5741_v18 = vld [vmem:[#allocation13 + $0x244] sm:$0xf0] }
 0x292   : > { %v5294_v19 = vor.u32 %v5722_v10, %v5291_v13  ;;  %v5744_v10 = vld [vmem:[#allocation13 + $0x264] sm:$0xf]  ;;  %v5369_v13 = vld [vmem:[#allocation13 + $0x250] sm:$0xf] }
 0x293   : > { %3743 = vmatpush.bf16.msrb.mxu3 %v5318_v30  ;;  %v5700_v30 = vld [vmem:[#allocation13 + $0x104] sm:$0xf] }
 0x294   : > { %3729 = vmatpush.bf16.msrb.mxu2 %v5322_v54  ;;  %3604 = vmatpush.bf16.msrb.mxu0 %v5242_v15  ;;  %v5211_v15 = vld [vmem:[#allocation13 + $0x118] sm:$0xf0] }
 0x295   : > { %v2796_v29 = vpop.f32.mrf.mxu2  ;;  %v2626_v44 = vpop.f32.mrf.mxu0 }
 0x296   : > { %v2712_v63 = vpop.f32.mrf.mxu1  ;;  %v2801_v7 = vadd.f32 %v2796_v29, %v2715_v51  ;;  %v2630_v14 = vadd.f32 %v2626_v44, %v2544_v6  ;;  %v5708_v29 = vld [vmem:[#allocation13 + $0x144] sm:$0xf]  ;;  %v5299_v51 = vld [vmem:[#allocation13 + $0x1c8] sm:$0xf0]  ;;  %v5298_v6 = vor.u32 %v5725_v49, %v5297_v48 }
 0x297   : > { %v6384_v36 = vpop.f32.mrf.mxu3  ;;  %v5238_v38 = vor.u32 %v5708_v29, %v5235_v32  ;;  %v5716_v48 = vld [vmem:[#allocation13 + $0x184] sm:$0xf]  ;;  %v5267_v49 = vld [vmem:[#allocation13 + $0x188] sm:$0xf0] }
 0x298   : > { %v2887_v3 = vadd.f32 %v6384_v36, %v2801_v7  ;;  %v2716_v37 = vadd.f32 %v2712_v63, %v2630_v14  ;;  %v5726_v36 = vld [vmem:[#allocation13 + $0x1d4] sm:$0xf]  ;;  %3730 = vmatpush.bf16.msrb.mxu2 %v5314_v26  ;;  %3605 = vmatpush.bf16.msrb.mxu0 %v5234_v31  ;;  %v5302_v7 = vor.u32 %v5724_v50, %v5299_v51  ;;  %v5703_v14 = vld [vmem:[#allocation13 + $0x114] sm:$0xf0]  ;;  %v5203_v31 = vld [vmem:[#allocation13 + $0x108] sm:$0xf0] }
 0x299   : > { %v5310_v46 = vor.u32 %v5726_v36, %v5307_v39  ;;  %3618 = vmatpush.bf16.msrb.mxu1 %v5238_v38  ;;  %v5210_v21 = vor.u32 %v5703_v14, %v5209_v62  ;;  %v5214_v26 = vor.u32 %v5702_v12, %v5211_v15  ;;  %v5273_v38 = vld [vmem:[#allocation13 + $0x190] sm:$0xf]  ;;  %v5719_v36 = vld [vmem:[#allocation13 + $0x194] sm:$0xf0]  ;;  %v5206_v40 = vor.u32 %v5700_v30, %v5203_v31  ;;  %v5742_v14 = vld [vmem:[#allocation13 + $0x254] sm:$0xf] }
 0x29a   : > { %v5274_v43 = vor.u32 %v5719_v36, %v5273_v38  ;;  %v5743_v62 = vld [vmem:[#allocation13 + $0x254] sm:$0xf0]  ;;  %v5371_v12 = vld [vmem:[#allocation13 + $0x258] sm:$0xf0]  ;;  %v5737_v30 = vld [vmem:[#allocation13 + $0x224] sm:$0xf0] }
 0x29b   : > { %3744 = vmatpush.bf16.msrb.mxu3 %v5310_v46  ;;  %v5717_v46 = vld [vmem:[#allocation13 + $0x184] sm:$0xf0]  ;;  %v5370_v15 = vor.u32 %v5743_v62, %v5369_v13  ;;  %v5735_v38 = vld [vmem:[#allocation13 + $0x214] sm:$0xf0]  ;;  %v5734_v36 = vld [vmem:[#allocation13 + $0x214] sm:$0xf] }
 0x29c   : > { %3731 = vmatpush.bf16.msrb.mxu2 %v5306_v45  ;;  %3606 = vmatpush.bf16.msrb.mxu0 %v5226_v47  ;;  %v5265_v45 = vld [vmem:[#allocation13 + $0x180] sm:$0xf] }
 0x29d   : > { %v2798_v0 = vpop.f32.mrf.mxu2  ;;  %3619 = vmatpush.bf16.msrb.mxu1 %v5230_v56  ;;  %v5266_v50 = vor.u32 %v5717_v46, %v5265_v45 }
 0x29e   : > { %v2802_v44 = vadd.f32 %v2798_v0, %v2716_v37 }
 0x29f   : > { %v2884_v24 = vpop.f32.mrf.mxu3  ;;  %3745 = vmatpush.bf16.msrb.mxu3 %v5302_v7 }
 0x2a0   : > { %v2888_v63 = vadd.f32 %v2884_v24, %v2802_v44  ;;  %3732 = vmatpush.bf16.msrb.mxu2 %v5298_v6  ;;  %3607 = vmatpush.bf16.msrb.mxu0 %v5218_v52  ;;  %v5377_v52 = vld [vmem:[#allocation13 + $0x260] sm:$0xf] }
 0x2a1   : > { %3620 = vmatpush.bf16.msrb.mxu1 %v5222_v11 }
 0x2a3   : > { %3746 = vmatpush.bf16.msrb.mxu3 %v5294_v19  ;;  %v5363_v19 = vld [vmem:[#allocation13 + $0x248] sm:$0xf0] }
 0x2a4   : > { %3733 = vmatpush.bf16.msrb.mxu2 %v5290_v17  ;;  %3608 = vmatpush.bf16.msrb.mxu0 %v5210_v21  ;;  %v5361_v17 = vld [vmem:[#allocation13 + $0x240] sm:$0xf] }
 0x2a5   : > { %3621 = vmatpush.bf16.msrb.mxu1 %v5214_v26  ;;  %v5362_v22 = vor.u32 %v5741_v18, %v5361_v17  ;;  %v5355_v26 = vld [vmem:[#allocation13 + $0x238] sm:$0xf0] }
 0x2a8   : > { %3734 = vmatpush.bf16.msrb.mxu2 %v5282_v33  ;;  %v5347_v33 = vld [vmem:[#allocation13 + $0x228] sm:$0xf0] }
 0x2a9   : > { %3622 = vmatpush.bf16.msrb.mxu1 %v5206_v40 }
 0x2ac   : > { %3735 = vmatpush.bf16.msrb.mxu2 %v5274_v43  ;;  %v5732_v43 = vld [vmem:[#allocation13 + $0x204] sm:$0xf] }
 0x2ad   : > { %v2968_v25 = vpop.f32.mrf.mxu0 }
 0x2ae   : > { %v2973_v20 = vadd.f32 %v2968_v25, %v2887_v3  ;;  %v3054_v34 = vpop.f32.mrf.mxu1  ;;  %v5283_v3 = vld [vmem:[#allocation13 + $0x1a8] sm:$0xf0] }
 0x2af   : > { %v5286_v37 = vor.u32 %v5720_v23, %v5283_v3  ;;  %v5353_v3 = vld [vmem:[#allocation13 + $0x230] sm:$0xf] }
 0x2b0   : > { %v3059_v55 = vadd.f32 %v3054_v34, %v2973_v20  ;;  %v5202_v20 = vor.u32 %v5701_v28, %v5201_v27  ;;  %v5718_v34 = vld [vmem:[#allocation13 + $0x194] sm:$0xf]  ;;  %3736 = vmatpush.bf16.msrb.mxu2 %v5266_v50 }
 0x2b1   : > { %3747 = vmatpush.bf16.msrb.mxu3 %v5286_v37  ;;  %v5278_v44 = vor.u32 %v5718_v34, %v5275_v41  ;;  %v5329_v41 = vld [vmem:[#allocation13 + $0x200] sm:$0xf]  ;;  %v5754_v50 = vld [vmem:[#allocation15 + $0x30] sm:$0xff] }
 0x2b2   : > { %3609 = vmatpush.bf16.msrb.mxu0 %v5202_v20  ;;  %v5337_v20 = vld [vmem:[#allocation13 + $0x210] sm:$0xf] }
 0x2b3   : > { %v5338_v40 = vor.u32 %v5735_v38, %v5337_v20 }
 0x2b5   : > { %v3140_v59 = vpop.f32.mrf.mxu2  ;;  %v3226_v2 = vpop.f32.mrf.mxu3  ;;  %3748 = vmatpush.bf16.msrb.mxu3 %v5278_v44  ;;  %v5331_v44 = vld [vmem:[#allocation13 + $0x208] sm:$0xf0] }
 0x2b6   : > { %v3145_v1 = vadd.f32 %v3140_v59, %v3059_v55  ;;  %v2970_v5 = vpop.f32.mrf.mxu0  ;;  %v3056_v0 = vpop.f32.mrf.mxu1  ;;  %v5270_v55 = vor.u32 %v5716_v48, %v5267_v49  ;;  %v5334_v46 = vor.u32 %v5732_v43, %v5331_v44  ;;  %v5755_v48 = vld [vmem:[#allocation15 + $0x38] sm:$0xff] }
 0x2b7   : > { %v2974_v54 = vadd.f32 %v2970_v5, %v2888_v63  ;;  %v5763_v49 = vld [vmem:[#allocation15 + $0x78] sm:$0xff] }
 0x2b8   : > { %v3231_v53 = vadd.f32 %v3226_v2, %v3145_v1  ;;  %v5747_v1 = vld [vmem:[#allocation13 + $0x274] sm:$0xf0]  ;;  %v5746_v2 = vld [vmem:[#allocation13 + $0x274] sm:$0xf] }
 0x2b9   : > { %v3060_v25 = vadd.f32 %v3056_v0, %v2974_v54  ;;  %3749 = vmatpush.bf16.msrb.mxu3 %v5270_v55  ;;  %v5386_v6 = vor.u32 %v5747_v1, %v5385_v61  ;;  %v5378_v54 = vor.u32 %v5745_v8, %v5377_v52  ;;  %v5740_v0 = vld [vmem:[#allocation13 + $0x244] sm:$0xf]  ;;  %v5762_v55 = vld [vmem:[#allocation15 + $0x70] sm:$0xff] }
 0x2ba   : > { %v3237_v16 = vadd.f32 %v5861_v4, %v3231_v53  ;;  %v5379_v53 = vld [vmem:[#allocation13 + $0x268] sm:$0xf0]  ;;  %v5366_v23 = vor.u32 %v5740_v0, %v5363_v19  ;;  %v5750_v61 = vld [vmem:[#allocation15 + $0x10] sm:$0xff] }
 0x2bb   : > { %v5382_v11 = vor.u32 %v5744_v10, %v5379_v53  ;;  %v5748_v53 = vld [vmem:[#allocation15] sm:$0xff] }
 0x2bc   : > { %v3239_v24 = vmax.f32 %v3237_v16, 0.0  ;;  %v5374_v16 = vor.u32 %v5742_v14, %v5371_v12 }
 0x2bd   : > { %v3142_v29 = vpop.f32.mrf.mxu2  ;;  %v3228_v35 = vpop.f32.mrf.mxu3 }
 0x2be   : > { %3241 = vst [vmem:[#allocation6] sm:$0xff] %v3239_v24  ;;  %v3146_v32 = vadd.f32 %v3142_v29, %v3060_v25  ;;  %v5739_v24 = vld [vmem:[#allocation13 + $0x234] sm:$0xf0]  ;;  %v5738_v25 = vld [vmem:[#allocation13 + $0x234] sm:$0xf] }
 0x2bf   : > { %v5354_v27 = vor.u32 %v5739_v24, %v5353_v3  ;;  %v5358_v28 = vor.u32 %v5738_v25, %v5355_v26  ;;  %v5345_v29 = vld [vmem:[#allocation13 + $0x220] sm:$0xf] }
 0x2c0   : > { %v3232_v39 = vadd.f32 %v3228_v35, %v3146_v32  ;;  %v5736_v32 = vld [vmem:[#allocation13 + $0x224] sm:$0xf]  ;;  %v5346_v35 = vor.u32 %v5737_v30, %v5345_v29 }
 0x2c1   : > { %v5350_v37 = vor.u32 %v5736_v32, %v5347_v33 }
 0x2c2   : > { %v3238_v42 = vadd.f32 %v5861_v4, %v3232_v39  ;;  %v5387_v4 = vld [vmem:[#allocation13 + $0x278] sm:$0xf0] }
 0x2c3   : > { %v5390_v7 = vor.u32 %v5746_v2, %v5387_v4  ;;  %v5339_v39 = vld [vmem:[#allocation13 + $0x218] sm:$0xf0] }
 0x2c4   : > { %v3240_v47 = vmax.f32 %v3238_v42, 0.0  ;;  %v5342_v34 = vor.u32 %v5734_v36, %v5339_v39  ;;  %v5733_v42 = vld [vmem:[#allocation13 + $0x204] sm:$0xf0] }
 0x2c5   : > { %v5330_v45 = vor.u32 %v5733_v42, %v5329_v41  ;;  %v3928_v36 = vld [vmem:[%s6444_s10] sm:$0x1] }
 0x2c6   : > { %3242 = vst [vmem:[#allocation6 + $0x8] sm:$0xf] %v3240_v47 }
 0x2cd   : > { %v3243_v56 = vld [vmem:[#allocation6] ss:$2 sm:$0x1f]  ;;  %v3245_v51 = vld [vmem:[#allocation6 + $0x1] ss:$2 sm:$0x1f] }
 0x2ce   : > { %v3248_v57 = vmax.f32 %v3243_v56, %v3245_v51  ;;  %v3247_v58 = vld [vmem:[#allocation6 + $0x2] ss:$2 sm:$0x1f]  ;;  %v5753_v56 = vld [vmem:[#allocation15 + $0x28] sm:$0xff] }
 0x2cf   : > { %v5761_v51 = vld [vmem:[#allocation15 + $0x68] sm:$0xff] }
 0x2d0   : > { %v3249_v59 = vmax.f32 %v3248_v57, %v3247_v58  ;;  %v5752_v57 = vld [vmem:[#allocation15 + $0x20] sm:$0xff] }
 0x2d1   : > { %v5760_v58 = vld [vmem:[#allocation15 + $0x60] sm:$0xff] }
 0x2d2   : > { %v3250_v60 = vpack.c.bf16 %v3249_v59, %v3249_v59  ;;  %v5751_v59 = vld [vmem:[#allocation15 + $0x18] sm:$0xff] }
 0x2d4   : > { %v3285_v63 = vunpack.c.l.b16 %v3250_v60  ;;  %3485 = vmatmul.bf16.vlgmr.msra.gmra.mxu2 %v3250_v60  ;;  %3498 = vmatmul.bf16.vlgmr.msra.gmra.mxu3 %v3250_v60  ;;  %v5759_v60 = vld [vmem:[#allocation15 + $0x58] sm:$0xff] }
 0x2d5   : > { %4025 = vmatpush.bf16.msra.mxu2 %v5755_v48  ;;  %4038 = vmatpush.bf16.msra.mxu3 %v5763_v49 }
 0x2d6   : > { %v6391_v5 = vpack.c.b16 %v3285_v63, %v3285_v63  ;;  %v5758_v63 = vld [vmem:[#allocation15 + $0x50] sm:$0xff] }
 0x2d8   : > { %v3288_v9 = vshrl.u32 %v6391_v5, 16  ;;  %v3520_v31 = vrot.slane %v6391_v5, 1  ;;  %v3774_v47 = vrot.slane %v6391_v5, 2 }
 0x2d9   : > { %4026 = vmatpush.bf16.msra.mxu2 %v5754_v50  ;;  %4039 = vmatpush.bf16.msra.mxu3 %v5762_v55 }
 0x2da   : > { %3379 = vmatmul.bf16.vlgmr.msra.gmra.mxu0 %v3288_v9  ;;  %3392 = vmatmul.bf16.vlgmr.msra.gmra.mxu1 %v3288_v9  ;;  %v3647_v21 = vrot.slane %v3288_v9, 1 }
 0x2db   : > { %3856 = vmatpush.bf16.msra.mxu0 %v5386_v6  ;;  %3869 = vmatpush.bf16.msra.mxu1 %v5390_v7  ;;  %v5749_v6 = vld [vmem:[#allocation15 + $0x8] sm:$0xff] }
 0x2dc   : > { %v5757_v7 = vld [vmem:[#allocation15 + $0x48] sm:$0xff] }
 0x2dd   : > { %4027 = vmatpush.bf16.msra.mxu2 %v5753_v56  ;;  %4040 = vmatpush.bf16.msra.mxu3 %v5761_v51 }
 0x2df   : > { %3857 = vmatpush.bf16.msra.mxu0 %v5378_v54  ;;  %3870 = vmatpush.bf16.msra.mxu1 %v5382_v11  ;;  %v5756_v54 = vld [vmem:[#allocation15 + $0x40] sm:$0xff] }
 0x2e1   : > { %4028 = vmatpush.bf16.msra.mxu2 %v5752_v57  ;;  %4041 = vmatpush.bf16.msra.mxu3 %v5760_v58 }
 0x2e3   : > { %3858 = vmatpush.bf16.msra.mxu0 %v5370_v15  ;;  %3871 = vmatpush.bf16.msra.mxu1 %v5374_v16 }
 0x2e4   : > { %3737 = vmatmul.bf16.vlgmr.msrb.gmra.mxu2 %v3647_v21  ;;  %3750 = vmatmul.bf16.vlgmr.msrb.gmra.mxu3 %v3647_v21 }
 0x2e5   : > { %4029 = vmatpush.bf16.msra.mxu2 %v5751_v59  ;;  %4042 = vmatpush.bf16.msra.mxu3 %v5759_v60 }
 0x2e7   : > { %3859 = vmatpush.bf16.msra.mxu0 %v5362_v22  ;;  %3872 = vmatpush.bf16.msra.mxu1 %v5366_v23  ;;  %v3884_v22 = vld [vmem:[%s6442_s8] sm:$0x3] }
 0x2e8   : > { %v3886_v24 = vperm.slane %v3884_v22, 0  ;;  %v3887_v25 = vperm.slane %v3884_v22, 1 }
 0x2e9   : > { %4030 = vmatpush.bf16.msra.mxu2 %v5750_v61  ;;  %4043 = vmatpush.bf16.msra.mxu3 %v5758_v63 }
 0x2ea   : > { %3610 = vmatmul.bf16.vlgmr.msrb.gmra.mxu0 %v3520_v31  ;;  %3623 = vmatmul.bf16.vlgmr.msrb.gmra.mxu1 %v3520_v31 }
 0x2eb   : > { %3860 = vmatpush.bf16.msra.mxu0 %v5354_v27  ;;  %3873 = vmatpush.bf16.msra.mxu1 %v5358_v28 }
 0x2ed   : > { %4031 = vmatpush.bf16.msra.mxu2 %v5749_v6  ;;  %4044 = vmatpush.bf16.msra.mxu3 %v5757_v7 }
 0x2ef   : > { %3861 = vmatpush.bf16.msra.mxu0 %v5346_v35  ;;  %3874 = vmatpush.bf16.msra.mxu1 %v5350_v37 }
 0x2f1   : > { %4032 = vmatpush.bf16.msra.mxu2 %v5748_v53  ;;  %4045 = vmatpush.bf16.msra.mxu3 %v5756_v54 }
 0x2f3   : > { %3862 = vmatpush.bf16.msra.mxu0 %v5338_v40  ;;  %3875 = vmatpush.bf16.msra.mxu1 %v5342_v34 }
 0x2f7   : > { %3863 = vmatpush.bf16.msra.mxu0 %v5330_v45  ;;  %3876 = vmatpush.bf16.msra.mxu1 %v5334_v46 }
 0x2fa   : > { %3864 = vmatmul.bf16.vlgmr.msra.gmra.mxu0 %v3774_v47  ;;  %3877 = vmatmul.bf16.vlgmr.msra.gmra.mxu1 %v3774_v47 }
 0x357   : > { %v3380_v1 = vpop.f32.mrf.mxu0  ;;  %v3393_v2 = vpop.f32.mrf.mxu1 }
 0x358   : > { %v3486_v4 = vpop.f32.mrf.mxu2  ;;  %v3499_v5 = vpop.f32.mrf.mxu3 }
 0x359   : > { %v3487_v16 = vadd.f32 %v3486_v4, %v3380_v1  ;;  %v3500_v17 = vadd.f32 %v3499_v5, %v3393_v2 }
 0x35f   : > { %v3382_v52 = vpop.f32.mrf.mxu0  ;;  %v3395_v8 = vpop.f32.mrf.mxu1 }
 0x360   : > { %v3488_v9 = vpop.f32.mrf.mxu2  ;;  %v3501_v10 = vpop.f32.mrf.mxu3 }
 0x367   : > { %v3611_v11 = vpop.f32.mrf.mxu0  ;;  %v3624_v13 = vpop.f32.mrf.mxu1 }
 0x368   : > { %v3738_v62 = vpop.f32.mrf.mxu2  ;;  %v3751_v14 = vpop.f32.mrf.mxu3  ;;  %v3628_v19 = vadd.f32 %v3611_v11, %v3487_v16  ;;  %v3629_v21 = vadd.f32 %v3624_v13, %v3500_v17 }
 0x36a   : > { %v3755_v23 = vadd.f32 %v3738_v62, %v3628_v19  ;;  %v3756_v3 = vadd.f32 %v3751_v14, %v3629_v21 }
 0x36f   : > { %v3613_v12 = vpop.f32.mrf.mxu0  ;;  %v3626_v15 = vpop.f32.mrf.mxu1 }
 0x370   : > { %v3740_v18 = vpop.f32.mrf.mxu2  ;;  %v3753_v0 = vpop.f32.mrf.mxu3 }
 0x377   : > { %v3865_v26 = vpop.f32.mrf.mxu0  ;;  %v3878_v27 = vpop.f32.mrf.mxu1 }
 0x378   : > { %v3882_v28 = vadd.f32 %v3865_v26, %v3755_v23  ;;  %v3883_v29 = vadd.f32 %v3878_v27, %v3756_v3 }
 0x37a   : > { %v3890_v30 = vadd.f32 %v3886_v24, %v3882_v28  ;;  %v3891_v31 = vadd.f32 %v3887_v25, %v3883_v29 }
 0x37c   : > { %v3892_v32 = vmax.f32 %v3890_v30, 0.0  ;;  %v3893_v33 = vmax.f32 %v3891_v31, 0.0 }
 0x37e   : > { %v3894_v35 = vpack.c.bf16 %v3892_v32, %v3892_v32  ;;  %v3895_v37 = vpack.c.bf16 %v3893_v33, %v3893_v33 }
 0x37f   : > { %v3867_v20 = vpop.f32.mrf.mxu0  ;;  %v3880_v38 = vpop.f32.mrf.mxu1 }
 0x380   : > { %4033 = vmatmul.bf16.vlgmr.msra.gmra.mxu2 %v3894_v35  ;;  %4046 = vmatmul.bf16.vlgmr.msra.gmra.mxu3 %v3895_v37 }
 0x403   : > { %v4034_v39 = vpop.f32.mrf.mxu2  ;;  %v4047_v40 = vpop.f32.mrf.mxu3 }
 0x404   : > { %v4035_v34 = vadd.f32 %v4034_v39, %v3928_v36 }
 0x406   : > { %v4048_v41 = vadd.f32 %v4047_v40, %v4035_v34 }
 0x408   : > { %v4052_v42 = vsel %vm4051_vm11, %v4048_v41, -inf }
 0x409   : > { %4053 = vmax.xlane.f32.xlu0 %v4052_v42 }
 0x40b   : > { %v4036_v43 = vpop.f32.mrf.mxu2  ;;  %v4049_v44 = vpop.f32.mrf.mxu3 }
 0x47c   : > { %v4054_v45 = vpop.xlane.xlu0 %4053 }
 0x47d   : > { %v4055_v46 = vsub.f32 %v4048_v41, %v4054_v45 }
 0x47f   : > { %v4056_v47 = vmul.f32 1.442695, %v4055_v46 }
 0x481   : > { %5862 = vpow2.f32 %v4056_v47 }
 0x487   : > { %v5863_v48 = vpop.eup %5862 }
 0x488   : > { %v4058_v49 = vsel %vm4051_vm11, %v5863_v48, 0.0 }
 0x489   : > { %4059 = vadd.xlane.f32.xlu0 %v4058_v49 }
 0x4fc   : > { %v4060_v50 = vpop.xlane.xlu0 %4059 }
 0x4fd   : > { %5864 = vlog2.f32 %v4060_v50 }
 0x503   : > { %v5865_v55 = vpop.eup %5864 }
 0x504   : > { %v4062_v56 = vmul.f32 0.6931472, %v5865_v55 }
 0x506   : > { %v4063_v51 = vsub.f32 %v4055_v46, %v4062_v56 }
 0x508   : > { %4064 = vst [vmem:[%s461_s20] sm:$0x1] %v4063_v51 }
 0x509   : > { %6043 = shalt.err (!%p6040_p8)
}
 0x50a   : > { %5784 = dma.vmem_to_hbm [thread:$0]  (%p6200_p5), %s4077_s23, 16, %s4079_s27, %s4066_s28  }
 0x50b PF: > { %s6470_s24 = sld [smem:[#allocation23_spill]] }
 0x50c   : > { %s6471_s13 = sld [smem:[#allocation21_spill]] }
 0x511   : > { %p5816_p9 = scmp.ge.s32.totalorder %s6470_s24, 2 }
 0x512   : > { %s4090_s25 = sand.u32 1, %s6471_s13  }
 0x513   : > { %p5803_p10 = pnand %p5816_p9, %p6204_p6  ;;  %s4091_s26 = scalar_lea.sflag [#allocation9], %s4090_s25 }
 0x515   : > { %p5804_p11 = pneg %p5803_p10 }
 0x517   : > { %6073 = dma.done.wait (%p5804_p11), %s4091_s26, 16  }
 0x518   : > { %6075 = vsyncadd (%p5804_p11), %s4091_s26, 4294967280  ;;  %s6473_s20 = sld [smem:[#allocation24_spill]]  ;;  %s6476_s17 = smov %s6082_s18 }
 0x519   : > { %s6474_s16 = sld [smem:[#allocation22_spill]] }
 0x51a   : > { %s6475_s19 = sld [smem:[#allocation25_spill]] }
 0x51e   : > { %p24_p12 = scmp.ge.s32.totalorder %s6473_s20, 4  }
 0x51f   : > { %s6477_s18 = smov %s6474_s16 }
 0x520   :  { %26 = sbr.rel (!%p24_p12) target bundleno = 9 (0x9), region = 232 }
 0x525   :  { %4096 = vsyncpa [#allocation8], 1 }
 0x526   :  { %4098 = vsyncpa [#allocation8 + $0x1], 1 }
 0x527   :  { %4099 = vsyncpa [#allocation11], 1 }
 0x528   :  { %4100 = vsyncpa [#allocation14], 1 }
 0x529   :  { %4101 = vsyncpa [#allocation9], 1 }
 0x52a   :  { %4103 = vsyncpa [#allocation9 + $0x1], 1 }

</bundles_post_ra>
